<compile_context>
chip_gen: v5e
topology: v5e:2x2
jax: 0.10.0
libtpu: 0.0.40
codegen_flags: <defaults>
</compile_context>

<pallas_src>
import functools

import jax
import jax.numpy as jnp
from jax.experimental import pallas as pl
from jax.experimental.pallas import tpu as pltpu

ROW_CHUNK = 8  # output rows processed per accumulator chunk (bounds live f32 acc)


def _conv3x3_rows(src_pad_ref, w_taps, r0, rows, W):
    """3x3 conv (stride 1) for output rows [r0, r0+rows) from a zero-padded f32 source.

    src_pad_ref : VMEM ref [H+2, W+2, Cin] (f32, already zero-padded)
    w_taps      : list of 9 bf16 arrays [Cin, Cout], tap order dy*3+dx
    returns f32 accumulator [rows, W, Cout]
    """
    cout = w_taps[0].shape[-1]
    acc = jnp.zeros((rows, W, cout), jnp.float32)
    for dy in range(3):
        for dx in range(3):
            patch = src_pad_ref[r0 + dy:r0 + dy + rows, dx:dx + W, :]   # [rows, W, Cin] f32
            acc = acc + jax.lax.dot_general(
                patch.astype(jnp.bfloat16), w_taps[dy * 3 + dx],
                dimension_numbers=(((2,), (0,)), ((), ())),
                preferred_element_type=jnp.float32)
    return acc


def _basic_block_kernel(x_ref, w1_ref, s1_ref, b1_ref, w2_ref, s2_ref, b2_ref,
                        o_ref, xpad_s, hpad_s, *, H, W):
    """Fused BasicBlock for one batch sample (one grid program).

    x_ref  : [1, H, W, Cin]    f32   (also the residual identity)
    w*_ref : [9, Cin, Cout]    bf16  (resident across grid steps)
    s*/b*  : [1, Cout]         f32   (folded BN scale / bias)
    o_ref  : [1, H, W, Cout]   f32
    xpad_s : VMEM [H+2, W+2, Cin]  f32 scratch (zero-padded input tile)
    hpad_s : VMEM [H+2, W+2, Cmid] f32 scratch (zero-padded conv1 output, never hits HBM)
    """
    # Load weights / BN params once (hoisted out of all loops).
    w1 = [w1_ref[t] for t in range(9)]
    w2 = [w2_ref[t] for t in range(9)]
    s1 = s1_ref[...]
    b1 = b1_ref[...]
    s2 = s2_ref[...]
    b2 = b2_ref[...]

    # Build the zero-padded input tile in VMEM (halo handled in-kernel, no HBM pad pass).
    xpad_s[...] = jnp.zeros(xpad_s.shape, xpad_s.dtype)
    xpad_s[1:H + 1, 1:W + 1, :] = x_ref[0]
    hpad_s[...] = jnp.zeros(hpad_s.shape, hpad_s.dtype)

    rc = min(ROW_CHUNK, H)

    # conv1 + BN + ReLU  ->  intermediate stays in VMEM scratch.
    for r0 in range(0, H, rc):
        rows = min(rc, H - r0)
        a = _conv3x3_rows(xpad_s, w1, r0, rows, W)
        y = jnp.maximum(a * s1 + b1, 0.0)                     # f32 epilogue (VPU)
        hpad_s[1 + r0:1 + r0 + rows, 1:W + 1, :] = y

    # conv2 + BN + residual add + ReLU  ->  written straight to the output tile.
    for r0 in range(0, H, rc):
        rows = min(rc, H - r0)
        a = _conv3x3_rows(hpad_s, w2, r0, rows, W)
        res = x_ref[0, r0:r0 + rows, :, :]                    # identity (already in VMEM)
        y = jnp.maximum(a * s2 + b2 + res, 0.0)
        o_ref[0, r0:r0 + rows, :, :] = y.astype(o_ref.dtype)


def fold_bn(gamma, beta, mean, var, eps=1e-5):
    scale = gamma / jnp.sqrt(var + eps)
    bias = beta - mean * scale
    return scale, bias


def basic_block_forward(x_nchw, params):
    """BasicBlock.forward with stride=1, downsample=None.  Input/output: NCHW."""
    x = jnp.transpose(x_nchw, (0, 2, 3, 1)).astype(jnp.float32)   # NCHW -> NHWC
    N, H, W, Cin = x.shape
    w1, w2 = params["w1"], params["w2"]
    Cmid, Cout = w1.shape[-1], w2.shape[-1]
    assert Cin == Cout, "stride=1 / no-downsample BasicBlock requires inplanes == planes"

    # Weights: 3x3 taps flattened on dim 0, cast to bf16 for the MXU (halves weight DMA).
    w1_9 = w1.reshape(9, Cin, Cmid).astype(jnp.bfloat16)
    w2_9 = w2.reshape(9, Cmid, Cout).astype(jnp.bfloat16)
    s1 = params["s1"].reshape(1, Cmid).astype(jnp.float32)
    b1 = params["b1"].reshape(1, Cmid).astype(jnp.float32)
    s2 = params["s2"].reshape(1, Cout).astype(jnp.float32)
    b2 = params["b2"].reshape(1, Cout).astype(jnp.float32)

    kernel = functools.partial(_basic_block_kernel, H=H, W=W)

    out_nhwc = pl.pallas_call(
        kernel,
        out_shape=jax.ShapeDtypeStruct((N, H, W, Cout), jnp.float32),
        grid=(N,),
        in_specs=[
            pl.BlockSpec((1, H, W, Cin), lambda n: (n, 0, 0, 0)),   # x (per-sample tile)
            pl.BlockSpec((9, Cin, Cmid), lambda n: (0, 0, 0)),      # w1 (resident)
            pl.BlockSpec((1, Cmid), lambda n: (0, 0)),              # s1 (resident)
            pl.BlockSpec((1, Cmid), lambda n: (0, 0)),              # b1 (resident)
            pl.BlockSpec((9, Cmid, Cout), lambda n: (0, 0, 0)),     # w2 (resident)
            pl.BlockSpec((1, Cout), lambda n: (0, 0)),              # s2 (resident)
            pl.BlockSpec((1, Cout), lambda n: (0, 0)),              # b2 (resident)
        ],
        out_specs=pl.BlockSpec((1, H, W, Cout), lambda n: (n, 0, 0, 0)),
        scratch_shapes=[
            pltpu.VMEM((H + 2, W + 2, Cin), jnp.float32),    # padded input tile
            pltpu.VMEM((H + 2, W + 2, Cmid), jnp.float32),   # padded conv1 output (VMEM only)
        ],
        compiler_params=pltpu.CompilerParams(
            dimension_semantics=("parallel",),               # pipelining + v7x 2-TC sharding
            vmem_limit_bytes=32 * 1024 * 1024,               # fits v5e/v6e/v7x with headroom
        ),
    )(x, w1_9, s1, b1, w2_9, s2, b2)

    return jnp.transpose(out_nhwc, (0, 3, 1, 2))             # NHWC -> NCHW


def _reference_forward(x_nchw, params):
    """Pure-JAX reference with the same precision scheme (bf16 MXU ops, f32 accum/epilogue)."""
    x = jnp.transpose(x_nchw, (0, 2, 3, 1)).astype(jnp.float32)

    def conv(v, w):
        return jax.lax.conv_general_dilated(
            v.astype(jnp.bfloat16), w.astype(jnp.bfloat16),
            window_strides=(1, 1), padding=((1, 1), (1, 1)),
            dimension_numbers=("NHWC", "HWIO", "NHWC"),
            preferred_element_type=jnp.float32)

    o = jnp.maximum(conv(x, params["w1"]) * params["s1"] + params["b1"], 0.0)
    o = jnp.maximum(conv(o, params["w2"]) * params["s2"] + params["b2"] + x, 0.0)
    return jnp.transpose(o, (0, 3, 1, 2))


def init_params(key, inplanes, planes):
    ks = jax.random.split(key, 10)
    w1 = jax.random.normal(ks[0], (3, 3, inplanes, planes), jnp.float32) * 0.1
    w2 = jax.random.normal(ks[1], (3, 3, planes, planes), jnp.float32) * 0.1
    # BN params (deterministic synthetic values), folded to per-channel scale/bias.
    g1 = 1.0 + 0.1 * jax.random.normal(ks[2], (planes,), jnp.float32)
    b1 = 0.1 * jax.random.normal(ks[3], (planes,), jnp.float32)
    m1 = 0.1 * jax.random.normal(ks[4], (planes,), jnp.float32)
    v1 = jnp.abs(1.0 + 0.1 * jax.random.normal(ks[5], (planes,), jnp.float32))
    g2 = 1.0 + 0.1 * jax.random.normal(ks[6], (planes,), jnp.float32)
    b2 = 0.1 * jax.random.normal(ks[7], (planes,), jnp.float32)
    m2 = 0.1 * jax.random.normal(ks[8], (planes,), jnp.float32)
    v2 = jnp.abs(1.0 + 0.1 * jax.random.normal(ks[9], (planes,), jnp.float32))
    s1, bb1 = fold_bn(g1, b1, m1, v1)
    s2, bb2 = fold_bn(g2, b2, m2, v2)
    return {"w1": w1, "s1": s1, "b1": bb1, "w2": w2, "s2": s2, "b2": bb2}


if __name__ == "__main__":
    key = jax.random.PRNGKey(0)
    k_x, k_p = jax.random.split(key)

    N, C, H, W = 2, 4, 16, 16          # inplanes = planes = 4, stride = 1, no downsample
    x = jax.random.normal(k_x, (N, C, H, W), jnp.float32)
    params = init_params(k_p, C, C)

    out = jax.block_until_ready(jax.jit(basic_block_forward)(x, params))

    ref = _reference_forward(x, params)
    assert out.shape == (N, C, H, W)
    assert jnp.allclose(out, ref, rtol=1e-2, atol=1e-2), "mismatch vs reference"

    print("KERNEL_OK")
</pallas_src>

<mosaic_0001>
module attributes {stable_mosaic.version = 11 : i64} {
  func.func @_basic_block_kernel(%arg0: i32, %arg1: memref<1x16x16x4xf32, #tpu.memory_space<vmem>>, %arg2: memref<9x4x4xbf16, #tpu.memory_space<vmem>>, %arg3: memref<1x4xf32, #tpu.memory_space<vmem>>, %arg4: memref<1x4xf32, #tpu.memory_space<vmem>>, %arg5: memref<9x4x4xbf16, #tpu.memory_space<vmem>>, %arg6: memref<1x4xf32, #tpu.memory_space<vmem>>, %arg7: memref<1x4xf32, #tpu.memory_space<vmem>>, %arg8: memref<1x16x16x4xf32, #tpu.memory_space<vmem>>, %arg9: memref<18x18x4xf32, #tpu.memory_space<vmem>>, %arg10: memref<18x18x4xf32, #tpu.memory_space<vmem>>) attributes {dimension_semantics = [#tpu.dimension_semantics<parallel>], iteration_bounds = array<i64: 2>, scalar_prefetch = 0 : i64, scratch_operands = 2 : i64, tpu.core_type = #tpu.core_type<tc>, window_params = [{transform_indices = @transform_0, window_bounds = array<i64: 1, 16, 16, 4>}, {pipeline_mode = #tpu.pipeline_mode<synchronous>, transform_indices = @transform_1, window_bounds = array<i64: 9, 4, 4>}, {pipeline_mode = #tpu.pipeline_mode<synchronous>, transform_indices = @transform_2, window_bounds = array<i64: 1, 4>}, {pipeline_mode = #tpu.pipeline_mode<synchronous>, transform_indices = @transform_3, window_bounds = array<i64: 1, 4>}, {pipeline_mode = #tpu.pipeline_mode<synchronous>, transform_indices = @transform_4, window_bounds = array<i64: 9, 4, 4>}, {pipeline_mode = #tpu.pipeline_mode<synchronous>, transform_indices = @transform_5, window_bounds = array<i64: 1, 4>}, {pipeline_mode = #tpu.pipeline_mode<synchronous>, transform_indices = @transform_6, window_bounds = array<i64: 1, 4>}, {transform_indices = @transform_7, window_bounds = array<i64: 1, 16, 16, 4>}]} {
    %c0 = arith.constant 0 : index
    %c0_0 = arith.constant 0 : index
    %c0_1 = arith.constant 0 : index
    %0 = vector.load %arg2[%c0, %c0_0, %c0_1] : memref<9x4x4xbf16, #tpu.memory_space<vmem>>, vector<1x4x4xbf16>
    %1 = vector.shape_cast %0 : vector<1x4x4xbf16> to vector<4x4xbf16>
    %c1 = arith.constant 1 : index
    %c0_2 = arith.constant 0 : index
    %c0_3 = arith.constant 0 : index
    %2 = vector.load %arg2[%c1, %c0_2, %c0_3] : memref<9x4x4xbf16, #tpu.memory_space<vmem>>, vector<1x4x4xbf16>
    %3 = vector.shape_cast %2 : vector<1x4x4xbf16> to vector<4x4xbf16>
    %c2 = arith.constant 2 : index
    %c0_4 = arith.constant 0 : index
    %c0_5 = arith.constant 0 : index
    %4 = vector.load %arg2[%c2, %c0_4, %c0_5] : memref<9x4x4xbf16, #tpu.memory_space<vmem>>, vector<1x4x4xbf16>
    %5 = vector.shape_cast %4 : vector<1x4x4xbf16> to vector<4x4xbf16>
    %c3 = arith.constant 3 : index
    %c0_6 = arith.constant 0 : index
    %c0_7 = arith.constant 0 : index
    %6 = vector.load %arg2[%c3, %c0_6, %c0_7] : memref<9x4x4xbf16, #tpu.memory_space<vmem>>, vector<1x4x4xbf16>
    %7 = vector.shape_cast %6 : vector<1x4x4xbf16> to vector<4x4xbf16>
    %c4 = arith.constant 4 : index
    %c0_8 = arith.constant 0 : index
    %c0_9 = arith.constant 0 : index
    %8 = vector.load %arg2[%c4, %c0_8, %c0_9] : memref<9x4x4xbf16, #tpu.memory_space<vmem>>, vector<1x4x4xbf16>
    %9 = vector.shape_cast %8 : vector<1x4x4xbf16> to vector<4x4xbf16>
    %c5 = arith.constant 5 : index
    %c0_10 = arith.constant 0 : index
    %c0_11 = arith.constant 0 : index
    %10 = vector.load %arg2[%c5, %c0_10, %c0_11] : memref<9x4x4xbf16, #tpu.memory_space<vmem>>, vector<1x4x4xbf16>
    %11 = vector.shape_cast %10 : vector<1x4x4xbf16> to vector<4x4xbf16>
    %c6 = arith.constant 6 : index
    %c0_12 = arith.constant 0 : index
    %c0_13 = arith.constant 0 : index
    %12 = vector.load %arg2[%c6, %c0_12, %c0_13] : memref<9x4x4xbf16, #tpu.memory_space<vmem>>, vector<1x4x4xbf16>
    %13 = vector.shape_cast %12 : vector<1x4x4xbf16> to vector<4x4xbf16>
    %c7 = arith.constant 7 : index
    %c0_14 = arith.constant 0 : index
    %c0_15 = arith.constant 0 : index
    %14 = vector.load %arg2[%c7, %c0_14, %c0_15] : memref<9x4x4xbf16, #tpu.memory_space<vmem>>, vector<1x4x4xbf16>
    %15 = vector.shape_cast %14 : vector<1x4x4xbf16> to vector<4x4xbf16>
    %c8 = arith.constant 8 : index
    %c0_16 = arith.constant 0 : index
    %c0_17 = arith.constant 0 : index
    %16 = vector.load %arg2[%c8, %c0_16, %c0_17] : memref<9x4x4xbf16, #tpu.memory_space<vmem>>, vector<1x4x4xbf16>
    %17 = vector.shape_cast %16 : vector<1x4x4xbf16> to vector<4x4xbf16>
    %c0_18 = arith.constant 0 : index
    %c0_19 = arith.constant 0 : index
    %c0_20 = arith.constant 0 : index
    %18 = vector.load %arg5[%c0_18, %c0_19, %c0_20] : memref<9x4x4xbf16, #tpu.memory_space<vmem>>, vector<1x4x4xbf16>
    %19 = vector.shape_cast %18 : vector<1x4x4xbf16> to vector<4x4xbf16>
    %c1_21 = arith.constant 1 : index
    %c0_22 = arith.constant 0 : index
    %c0_23 = arith.constant 0 : index
    %20 = vector.load %arg5[%c1_21, %c0_22, %c0_23] : memref<9x4x4xbf16, #tpu.memory_space<vmem>>, vector<1x4x4xbf16>
    %21 = vector.shape_cast %20 : vector<1x4x4xbf16> to vector<4x4xbf16>
    %c2_24 = arith.constant 2 : index
    %c0_25 = arith.constant 0 : index
    %c0_26 = arith.constant 0 : index
    %22 = vector.load %arg5[%c2_24, %c0_25, %c0_26] : memref<9x4x4xbf16, #tpu.memory_space<vmem>>, vector<1x4x4xbf16>
    %23 = vector.shape_cast %22 : vector<1x4x4xbf16> to vector<4x4xbf16>
    %c3_27 = arith.constant 3 : index
    %c0_28 = arith.constant 0 : index
    %c0_29 = arith.constant 0 : index
    %24 = vector.load %arg5[%c3_27, %c0_28, %c0_29] : memref<9x4x4xbf16, #tpu.memory_space<vmem>>, vector<1x4x4xbf16>
    %25 = vector.shape_cast %24 : vector<1x4x4xbf16> to vector<4x4xbf16>
    %c4_30 = arith.constant 4 : index
    %c0_31 = arith.constant 0 : index
    %c0_32 = arith.constant 0 : index
    %26 = vector.load %arg5[%c4_30, %c0_31, %c0_32] : memref<9x4x4xbf16, #tpu.memory_space<vmem>>, vector<1x4x4xbf16>
    %27 = vector.shape_cast %26 : vector<1x4x4xbf16> to vector<4x4xbf16>
    %c5_33 = arith.constant 5 : index
    %c0_34 = arith.constant 0 : index
    %c0_35 = arith.constant 0 : index
    %28 = vector.load %arg5[%c5_33, %c0_34, %c0_35] : memref<9x4x4xbf16, #tpu.memory_space<vmem>>, vector<1x4x4xbf16>
    %29 = vector.shape_cast %28 : vector<1x4x4xbf16> to vector<4x4xbf16>
    %c6_36 = arith.constant 6 : index
    %c0_37 = arith.constant 0 : index
    %c0_38 = arith.constant 0 : index
    %30 = vector.load %arg5[%c6_36, %c0_37, %c0_38] : memref<9x4x4xbf16, #tpu.memory_space<vmem>>, vector<1x4x4xbf16>
    %31 = vector.shape_cast %30 : vector<1x4x4xbf16> to vector<4x4xbf16>
    %c7_39 = arith.constant 7 : index
    %c0_40 = arith.constant 0 : index
    %c0_41 = arith.constant 0 : index
    %32 = vector.load %arg5[%c7_39, %c0_40, %c0_41] : memref<9x4x4xbf16, #tpu.memory_space<vmem>>, vector<1x4x4xbf16>
    %33 = vector.shape_cast %32 : vector<1x4x4xbf16> to vector<4x4xbf16>
    %c8_42 = arith.constant 8 : index
    %c0_43 = arith.constant 0 : index
    %c0_44 = arith.constant 0 : index
    %34 = vector.load %arg5[%c8_42, %c0_43, %c0_44] : memref<9x4x4xbf16, #tpu.memory_space<vmem>>, vector<1x4x4xbf16>
    %35 = vector.shape_cast %34 : vector<1x4x4xbf16> to vector<4x4xbf16>
    %c0_45 = arith.constant 0 : index
    %c0_46 = arith.constant 0 : index
    %36 = vector.load %arg3[%c0_45, %c0_46] : memref<1x4xf32, #tpu.memory_space<vmem>>, vector<1x4xf32>
    %c0_47 = arith.constant 0 : index
    %c0_48 = arith.constant 0 : index
    %37 = vector.load %arg4[%c0_47, %c0_48] : memref<1x4xf32, #tpu.memory_space<vmem>>, vector<1x4xf32>
    %c0_49 = arith.constant 0 : index
    %c0_50 = arith.constant 0 : index
    %38 = vector.load %arg6[%c0_49, %c0_50] : memref<1x4xf32, #tpu.memory_space<vmem>>, vector<1x4xf32>
    %c0_51 = arith.constant 0 : index
    %c0_52 = arith.constant 0 : index
    %39 = vector.load %arg7[%c0_51, %c0_52] : memref<1x4xf32, #tpu.memory_space<vmem>>, vector<1x4xf32>
    %cst = arith.constant 0.000000e+00 : f32
    %40 = vector.broadcast %cst : f32 to vector<18x18x4xf32>
    %c0_53 = arith.constant 0 : index
    %c0_54 = arith.constant 0 : index
    %c0_55 = arith.constant 0 : index
    %41 = vector.load %arg9[%c0_53, %c0_54, %c0_55] : memref<18x18x4xf32, #tpu.memory_space<vmem>>, vector<18x18x4xf32>
    tpu.vector_store %arg9[%c0_53, %c0_54, %c0_55], %40 {strides = array<i32>} : memref<18x18x4xf32, #tpu.memory_space<vmem>>, vector<18x18x4xf32>,
    %c0_56 = arith.constant 0 : index
    %c0_57 = arith.constant 0 : index
    %c0_58 = arith.constant 0 : index
    %c0_59 = arith.constant 0 : index
    %42 = vector.load %arg1[%c0_56, %c0_57, %c0_58, %c0_59] : memref<1x16x16x4xf32, #tpu.memory_space<vmem>>, vector<1x16x16x4xf32>
    %43 = vector.shape_cast %42 : vector<1x16x16x4xf32> to vector<16x16x4xf32>
    %c1_60 = arith.constant 1 : index
    %c1_61 = arith.constant 1 : index
    %c0_62 = arith.constant 0 : index
    %44 = vector.load %arg9[%c1_60, %c1_61, %c0_62] : memref<18x18x4xf32, #tpu.memory_space<vmem>>, vector<16x16x4xf32>
    tpu.vector_store %arg9[%c1_60, %c1_61, %c0_62], %43 {strides = array<i32>} : memref<18x18x4xf32, #tpu.memory_space<vmem>>, vector<16x16x4xf32>,
    %cst_63 = arith.constant 0.000000e+00 : f32
    %45 = vector.broadcast %cst_63 : f32 to vector<18x18x4xf32>
    %c0_64 = arith.constant 0 : index
    %c0_65 = arith.constant 0 : index
    %c0_66 = arith.constant 0 : index
    %46 = vector.load %arg10[%c0_64, %c0_65, %c0_66] : memref<18x18x4xf32, #tpu.memory_space<vmem>>, vector<18x18x4xf32>
    tpu.vector_store %arg10[%c0_64, %c0_65, %c0_66], %45 {strides = array<i32>} : memref<18x18x4xf32, #tpu.memory_space<vmem>>, vector<18x18x4xf32>,
    %cst_67 = arith.constant 0.000000e+00 : f32
    %47 = vector.broadcast %cst_67 : f32 to vector<8x16x4xf32>
    %c0_68 = arith.constant 0 : index
    %c0_69 = arith.constant 0 : index
    %c0_70 = arith.constant 0 : index
    %48 = vector.load %arg9[%c0_68, %c0_69, %c0_70] : memref<18x18x4xf32, #tpu.memory_space<vmem>>, vector<8x16x4xf32>
    %49 = arith.truncf %48 : vector<8x16x4xf32> to vector<8x16x4xbf16>
    %cst_71 = arith.constant dense<0.000000e+00> : vector<8x16x4xf32>
    %50 = tpu.matmul %49, %1, %cst_71 {dimension_numbers = #tpu.dot_dimension_numbers<[2], [0], [0, 1], [1], [0, 0, 0, 1, 1, 1], [], []>} : vector<8x16x4xbf16>, vector<4x4xbf16>, vector<8x16x4xf32> -> vector<8x16x4xf32>
    %51 = arith.addf %47, %50 : vector<8x16x4xf32>
    %c0_72 = arith.constant 0 : index
    %c1_73 = arith.constant 1 : index
    %c0_74 = arith.constant 0 : index
    %52 = vector.load %arg9[%c0_72, %c1_73, %c0_74] : memref<18x18x4xf32, #tpu.memory_space<vmem>>, vector<8x16x4xf32>
    %53 = arith.truncf %52 : vector<8x16x4xf32> to vector<8x16x4xbf16>
    %cst_75 = arith.constant dense<0.000000e+00> : vector<8x16x4xf32>
    %54 = tpu.matmul %53, %3, %cst_75 {dimension_numbers = #tpu.dot_dimension_numbers<[2], [0], [0, 1], [1], [0, 0, 0, 1, 1, 1], [], []>} : vector<8x16x4xbf16>, vector<4x4xbf16>, vector<8x16x4xf32> -> vector<8x16x4xf32>
    %55 = arith.addf %51, %54 : vector<8x16x4xf32>
    %c0_76 = arith.constant 0 : index
    %c2_77 = arith.constant 2 : index
    %c0_78 = arith.constant 0 : index
    %56 = vector.load %arg9[%c0_76, %c2_77, %c0_78] : memref<18x18x4xf32, #tpu.memory_space<vmem>>, vector<8x16x4xf32>
    %57 = arith.truncf %56 : vector<8x16x4xf32> to vector<8x16x4xbf16>
    %cst_79 = arith.constant dense<0.000000e+00> : vector<8x16x4xf32>
    %58 = tpu.matmul %57, %5, %cst_79 {dimension_numbers = #tpu.dot_dimension_numbers<[2], [0], [0, 1], [1], [0, 0, 0, 1, 1, 1], [], []>} : vector<8x16x4xbf16>, vector<4x4xbf16>, vector<8x16x4xf32> -> vector<8x16x4xf32>
    %59 = arith.addf %55, %58 : vector<8x16x4xf32>
    %c1_80 = arith.constant 1 : index
    %c0_81 = arith.constant 0 : index
    %c0_82 = arith.constant 0 : index
    %60 = vector.load %arg9[%c1_80, %c0_81, %c0_82] : memref<18x18x4xf32, #tpu.memory_space<vmem>>, vector<8x16x4xf32>
    %61 = arith.truncf %60 : vector<8x16x4xf32> to vector<8x16x4xbf16>
    %cst_83 = arith.constant dense<0.000000e+00> : vector<8x16x4xf32>
    %62 = tpu.matmul %61, %7, %cst_83 {dimension_numbers = #tpu.dot_dimension_numbers<[2], [0], [0, 1], [1], [0, 0, 0, 1, 1, 1], [], []>} : vector<8x16x4xbf16>, vector<4x4xbf16>, vector<8x16x4xf32> -> vector<8x16x4xf32>
    %63 = arith.addf %59, %62 : vector<8x16x4xf32>
    %c1_84 = arith.constant 1 : index
    %c1_85 = arith.constant 1 : index
    %c0_86 = arith.constant 0 : index
    %64 = vector.load %arg9[%c1_84, %c1_85, %c0_86] : memref<18x18x4xf32, #tpu.memory_space<vmem>>, vector<8x16x4xf32>
    %65 = arith.truncf %64 : vector<8x16x4xf32> to vector<8x16x4xbf16>
    %cst_87 = arith.constant dense<0.000000e+00> : vector<8x16x4xf32>
    %66 = tpu.matmul %65, %9, %cst_87 {dimension_numbers = #tpu.dot_dimension_numbers<[2], [0], [0, 1], [1], [0, 0, 0, 1, 1, 1], [], []>} : vector<8x16x4xbf16>, vector<4x4xbf16>, vector<8x16x4xf32> -> vector<8x16x4xf32>
    %67 = arith.addf %63, %66 : vector<8x16x4xf32>
    %c1_88 = arith.constant 1 : index
    %c2_89 = arith.constant 2 : index
    %c0_90 = arith.constant 0 : index
    %68 = vector.load %arg9[%c1_88, %c2_89, %c0_90] : memref<18x18x4xf32, #tpu.memory_space<vmem>>, vector<8x16x4xf32>
    %69 = arith.truncf %68 : vector<8x16x4xf32> to vector<8x16x4xbf16>
    %cst_91 = arith.constant dense<0.000000e+00> : vector<8x16x4xf32>
    %70 = tpu.matmul %69, %11, %cst_91 {dimension_numbers = #tpu.dot_dimension_numbers<[2], [0], [0, 1], [1], [0, 0, 0, 1, 1, 1], [], []>} : vector<8x16x4xbf16>, vector<4x4xbf16>, vector<8x16x4xf32> -> vector<8x16x4xf32>
    %71 = arith.addf %67, %70 : vector<8x16x4xf32>
    %c2_92 = arith.constant 2 : index
    %c0_93 = arith.constant 0 : index
    %c0_94 = arith.constant 0 : index
    %72 = vector.load %arg9[%c2_92, %c0_93, %c0_94] : memref<18x18x4xf32, #tpu.memory_space<vmem>>, vector<8x16x4xf32>
    %73 = arith.truncf %72 : vector<8x16x4xf32> to vector<8x16x4xbf16>
    %cst_95 = arith.constant dense<0.000000e+00> : vector<8x16x4xf32>
    %74 = tpu.matmul %73, %13, %cst_95 {dimension_numbers = #tpu.dot_dimension_numbers<[2], [0], [0, 1], [1], [0, 0, 0, 1, 1, 1], [], []>} : vector<8x16x4xbf16>, vector<4x4xbf16>, vector<8x16x4xf32> -> vector<8x16x4xf32>
    %75 = arith.addf %71, %74 : vector<8x16x4xf32>
    %c2_96 = arith.constant 2 : index
    %c1_97 = arith.constant 1 : index
    %c0_98 = arith.constant 0 : index
    %76 = vector.load %arg9[%c2_96, %c1_97, %c0_98] : memref<18x18x4xf32, #tpu.memory_space<vmem>>, vector<8x16x4xf32>
    %77 = arith.truncf %76 : vector<8x16x4xf32> to vector<8x16x4xbf16>
    %cst_99 = arith.constant dense<0.000000e+00> : vector<8x16x4xf32>
    %78 = tpu.matmul %77, %15, %cst_99 {dimension_numbers = #tpu.dot_dimension_numbers<[2], [0], [0, 1], [1], [0, 0, 0, 1, 1, 1], [], []>} : vector<8x16x4xbf16>, vector<4x4xbf16>, vector<8x16x4xf32> -> vector<8x16x4xf32>
    %79 = arith.addf %75, %78 : vector<8x16x4xf32>
    %c2_100 = arith.constant 2 : index
    %c2_101 = arith.constant 2 : index
    %c0_102 = arith.constant 0 : index
    %80 = vector.load %arg9[%c2_100, %c2_101, %c0_102] : memref<18x18x4xf32, #tpu.memory_space<vmem>>, vector<8x16x4xf32>
    %81 = arith.truncf %80 : vector<8x16x4xf32> to vector<8x16x4xbf16>
    %cst_103 = arith.constant dense<0.000000e+00> : vector<8x16x4xf32>
    %82 = tpu.matmul %81, %17, %cst_103 {dimension_numbers = #tpu.dot_dimension_numbers<[2], [0], [0, 1], [1], [0, 0, 0, 1, 1, 1], [], []>} : vector<8x16x4xbf16>, vector<4x4xbf16>, vector<8x16x4xf32> -> vector<8x16x4xf32>
    %83 = arith.addf %79, %82 : vector<8x16x4xf32>
    %84 = vector.shape_cast %36 : vector<1x4xf32> to vector<1x1x4xf32>
    %85 = vector.broadcast %84 : vector<1x1x4xf32> to vector<8x16x4xf32>
    %86 = arith.mulf %83, %85 : vector<8x16x4xf32>
    %87 = vector.shape_cast %37 : vector<1x4xf32> to vector<1x1x4xf32>
    %88 = vector.broadcast %87 : vector<1x1x4xf32> to vector<8x16x4xf32>
    %89 = arith.addf %86, %88 : vector<8x16x4xf32>
    %cst_104 = arith.constant 0.000000e+00 : f32
    %90 = vector.broadcast %cst_104 : f32 to vector<8x16x4xf32>
    %91 = arith.maximumf %89, %90 : vector<8x16x4xf32>
    %c1_105 = arith.constant 1 : index
    %c1_106 = arith.constant 1 : index
    %c0_107 = arith.constant 0 : index
    %92 = vector.load %arg10[%c1_105, %c1_106, %c0_107] : memref<18x18x4xf32, #tpu.memory_space<vmem>>, vector<8x16x4xf32>
    tpu.vector_store %arg10[%c1_105, %c1_106, %c0_107], %91 {strides = array<i32>} : memref<18x18x4xf32, #tpu.memory_space<vmem>>, vector<8x16x4xf32>,
    %cst_108 = arith.constant 0.000000e+00 : f32
    %93 = vector.broadcast %cst_108 : f32 to vector<8x16x4xf32>
    %c8_109 = arith.constant 8 : index
    %c0_110 = arith.constant 0 : index
    %c0_111 = arith.constant 0 : index
    %94 = vector.load %arg9[%c8_109, %c0_110, %c0_111] : memref<18x18x4xf32, #tpu.memory_space<vmem>>, vector<8x16x4xf32>
    %95 = arith.truncf %94 : vector<8x16x4xf32> to vector<8x16x4xbf16>
    %cst_112 = arith.constant dense<0.000000e+00> : vector<8x16x4xf32>
    %96 = tpu.matmul %95, %1, %cst_112 {dimension_numbers = #tpu.dot_dimension_numbers<[2], [0], [0, 1], [1], [0, 0, 0, 1, 1, 1], [], []>} : vector<8x16x4xbf16>, vector<4x4xbf16>, vector<8x16x4xf32> -> vector<8x16x4xf32>
    %97 = arith.addf %93, %96 : vector<8x16x4xf32>
    %c8_113 = arith.constant 8 : index
    %c1_114 = arith.constant 1 : index
    %c0_115 = arith.constant 0 : index
    %98 = vector.load %arg9[%c8_113, %c1_114, %c0_115] : memref<18x18x4xf32, #tpu.memory_space<vmem>>, vector<8x16x4xf32>
    %99 = arith.truncf %98 : vector<8x16x4xf32> to vector<8x16x4xbf16>
    %cst_116 = arith.constant dense<0.000000e+00> : vector<8x16x4xf32>
    %100 = tpu.matmul %99, %3, %cst_116 {dimension_numbers = #tpu.dot_dimension_numbers<[2], [0], [0, 1], [1], [0, 0, 0, 1, 1, 1], [], []>} : vector<8x16x4xbf16>, vector<4x4xbf16>, vector<8x16x4xf32> -> vector<8x16x4xf32>
    %101 = arith.addf %97, %100 : vector<8x16x4xf32>
    %c8_117 = arith.constant 8 : index
    %c2_118 = arith.constant 2 : index
    %c0_119 = arith.constant 0 : index
    %102 = vector.load %arg9[%c8_117, %c2_118, %c0_119] : memref<18x18x4xf32, #tpu.memory_space<vmem>>, vector<8x16x4xf32>
    %103 = arith.truncf %102 : vector<8x16x4xf32> to vector<8x16x4xbf16>
    %cst_120 = arith.constant dense<0.000000e+00> : vector<8x16x4xf32>
    %104 = tpu.matmul %103, %5, %cst_120 {dimension_numbers = #tpu.dot_dimension_numbers<[2], [0], [0, 1], [1], [0, 0, 0, 1, 1, 1], [], []>} : vector<8x16x4xbf16>, vector<4x4xbf16>, vector<8x16x4xf32> -> vector<8x16x4xf32>
    %105 = arith.addf %101, %104 : vector<8x16x4xf32>
    %c9 = arith.constant 9 : index
    %c0_121 = arith.constant 0 : index
    %c0_122 = arith.constant 0 : index
    %106 = vector.load %arg9[%c9, %c0_121, %c0_122] : memref<18x18x4xf32, #tpu.memory_space<vmem>>, vector<8x16x4xf32>
    %107 = arith.truncf %106 : vector<8x16x4xf32> to vector<8x16x4xbf16>
    %cst_123 = arith.constant dense<0.000000e+00> : vector<8x16x4xf32>
    %108 = tpu.matmul %107, %7, %cst_123 {dimension_numbers = #tpu.dot_dimension_numbers<[2], [0], [0, 1], [1], [0, 0, 0, 1, 1, 1], [], []>} : vector<8x16x4xbf16>, vector<4x4xbf16>, vector<8x16x4xf32> -> vector<8x16x4xf32>
    %109 = arith.addf %105, %108 : vector<8x16x4xf32>
    %c9_124 = arith.constant 9 : index
    %c1_125 = arith.constant 1 : index
    %c0_126 = arith.constant 0 : index
    %110 = vector.load %arg9[%c9_124, %c1_125, %c0_126] : memref<18x18x4xf32, #tpu.memory_space<vmem>>, vector<8x16x4xf32>
    %111 = arith.truncf %110 : vector<8x16x4xf32> to vector<8x16x4xbf16>
    %cst_127 = arith.constant dense<0.000000e+00> : vector<8x16x4xf32>
    %112 = tpu.matmul %111, %9, %cst_127 {dimension_numbers = #tpu.dot_dimension_numbers<[2], [0], [0, 1], [1], [0, 0, 0, 1, 1, 1], [], []>} : vector<8x16x4xbf16>, vector<4x4xbf16>, vector<8x16x4xf32> -> vector<8x16x4xf32>
    %113 = arith.addf %109, %112 : vector<8x16x4xf32>
    %c9_128 = arith.constant 9 : index
    %c2_129 = arith.constant 2 : index
    %c0_130 = arith.constant 0 : index
    %114 = vector.load %arg9[%c9_128, %c2_129, %c0_130] : memref<18x18x4xf32, #tpu.memory_space<vmem>>, vector<8x16x4xf32>
    %115 = arith.truncf %114 : vector<8x16x4xf32> to vector<8x16x4xbf16>
    %cst_131 = arith.constant dense<0.000000e+00> : vector<8x16x4xf32>
    %116 = tpu.matmul %115, %11, %cst_131 {dimension_numbers = #tpu.dot_dimension_numbers<[2], [0], [0, 1], [1], [0, 0, 0, 1, 1, 1], [], []>} : vector<8x16x4xbf16>, vector<4x4xbf16>, vector<8x16x4xf32> -> vector<8x16x4xf32>
    %117 = arith.addf %113, %116 : vector<8x16x4xf32>
    %c10 = arith.constant 10 : index
    %c0_132 = arith.constant 0 : index
    %c0_133 = arith.constant 0 : index
    %118 = vector.load %arg9[%c10, %c0_132, %c0_133] : memref<18x18x4xf32, #tpu.memory_space<vmem>>, vector<8x16x4xf32>
    %119 = arith.truncf %118 : vector<8x16x4xf32> to vector<8x16x4xbf16>
    %cst_134 = arith.constant dense<0.000000e+00> : vector<8x16x4xf32>
    %120 = tpu.matmul %119, %13, %cst_134 {dimension_numbers = #tpu.dot_dimension_numbers<[2], [0], [0, 1], [1], [0, 0, 0, 1, 1, 1], [], []>} : vector<8x16x4xbf16>, vector<4x4xbf16>, vector<8x16x4xf32> -> vector<8x16x4xf32>
    %121 = arith.addf %117, %120 : vector<8x16x4xf32>
    %c10_135 = arith.constant 10 : index
    %c1_136 = arith.constant 1 : index
    %c0_137 = arith.constant 0 : index
    %122 = vector.load %arg9[%c10_135, %c1_136, %c0_137] : memref<18x18x4xf32, #tpu.memory_space<vmem>>, vector<8x16x4xf32>
    %123 = arith.truncf %122 : vector<8x16x4xf32> to vector<8x16x4xbf16>
    %cst_138 = arith.constant dense<0.000000e+00> : vector<8x16x4xf32>
    %124 = tpu.matmul %123, %15, %cst_138 {dimension_numbers = #tpu.dot_dimension_numbers<[2], [0], [0, 1], [1], [0, 0, 0, 1, 1, 1], [], []>} : vector<8x16x4xbf16>, vector<4x4xbf16>, vector<8x16x4xf32> -> vector<8x16x4xf32>
    %125 = arith.addf %121, %124 : vector<8x16x4xf32>
    %c10_139 = arith.constant 10 : index
    %c2_140 = arith.constant 2 : index
    %c0_141 = arith.constant 0 : index
    %126 = vector.load %arg9[%c10_139, %c2_140, %c0_141] : memref<18x18x4xf32, #tpu.memory_space<vmem>>, vector<8x16x4xf32>
    %127 = arith.truncf %126 : vector<8x16x4xf32> to vector<8x16x4xbf16>
    %cst_142 = arith.constant dense<0.000000e+00> : vector<8x16x4xf32>
    %128 = tpu.matmul %127, %17, %cst_142 {dimension_numbers = #tpu.dot_dimension_numbers<[2], [0], [0, 1], [1], [0, 0, 0, 1, 1, 1], [], []>} : vector<8x16x4xbf16>, vector<4x4xbf16>, vector<8x16x4xf32> -> vector<8x16x4xf32>
    %129 = arith.addf %125, %128 : vector<8x16x4xf32>
    %130 = vector.shape_cast %36 : vector<1x4xf32> to vector<1x1x4xf32>
    %131 = vector.broadcast %130 : vector<1x1x4xf32> to vector<8x16x4xf32>
    %132 = arith.mulf %129, %131 : vector<8x16x4xf32>
    %133 = vector.shape_cast %37 : vector<1x4xf32> to vector<1x1x4xf32>
    %134 = vector.broadcast %133 : vector<1x1x4xf32> to vector<8x16x4xf32>
    %135 = arith.addf %132, %134 : vector<8x16x4xf32>
    %cst_143 = arith.constant 0.000000e+00 : f32
    %136 = vector.broadcast %cst_143 : f32 to vector<8x16x4xf32>
    %137 = arith.maximumf %135, %136 : vector<8x16x4xf32>
    %c9_144 = arith.constant 9 : index
    %c1_145 = arith.constant 1 : index
    %c0_146 = arith.constant 0 : index
    %138 = vector.load %arg10[%c9_144, %c1_145, %c0_146] : memref<18x18x4xf32, #tpu.memory_space<vmem>>, vector<8x16x4xf32>
    tpu.vector_store %arg10[%c9_144, %c1_145, %c0_146], %137 {strides = array<i32>} : memref<18x18x4xf32, #tpu.memory_space<vmem>>, vector<8x16x4xf32>,
    %cst_147 = arith.constant 0.000000e+00 : f32
    %139 = vector.broadcast %cst_147 : f32 to vector<8x16x4xf32>
    %c0_148 = arith.constant 0 : index
    %c0_149 = arith.constant 0 : index
    %c0_150 = arith.constant 0 : index
    %140 = vector.load %arg10[%c0_148, %c0_149, %c0_150] : memref<18x18x4xf32, #tpu.memory_space<vmem>>, vector<8x16x4xf32>
    %141 = arith.truncf %140 : vector<8x16x4xf32> to vector<8x16x4xbf16>
    %cst_151 = arith.constant dense<0.000000e+00> : vector<8x16x4xf32>
    %142 = tpu.matmul %141, %19, %cst_151 {dimension_numbers = #tpu.dot_dimension_numbers<[2], [0], [0, 1], [1], [0, 0, 0, 1, 1, 1], [], []>} : vector<8x16x4xbf16>, vector<4x4xbf16>, vector<8x16x4xf32> -> vector<8x16x4xf32>
    %143 = arith.addf %139, %142 : vector<8x16x4xf32>
    %c0_152 = arith.constant 0 : index
    %c1_153 = arith.constant 1 : index
    %c0_154 = arith.constant 0 : index
    %144 = vector.load %arg10[%c0_152, %c1_153, %c0_154] : memref<18x18x4xf32, #tpu.memory_space<vmem>>, vector<8x16x4xf32>
    %145 = arith.truncf %144 : vector<8x16x4xf32> to vector<8x16x4xbf16>
    %cst_155 = arith.constant dense<0.000000e+00> : vector<8x16x4xf32>
    %146 = tpu.matmul %145, %21, %cst_155 {dimension_numbers = #tpu.dot_dimension_numbers<[2], [0], [0, 1], [1], [0, 0, 0, 1, 1, 1], [], []>} : vector<8x16x4xbf16>, vector<4x4xbf16>, vector<8x16x4xf32> -> vector<8x16x4xf32>
    %147 = arith.addf %143, %146 : vector<8x16x4xf32>
    %c0_156 = arith.constant 0 : index
    %c2_157 = arith.constant 2 : index
    %c0_158 = arith.constant 0 : index
    %148 = vector.load %arg10[%c0_156, %c2_157, %c0_158] : memref<18x18x4xf32, #tpu.memory_space<vmem>>, vector<8x16x4xf32>
    %149 = arith.truncf %148 : vector<8x16x4xf32> to vector<8x16x4xbf16>
    %cst_159 = arith.constant dense<0.000000e+00> : vector<8x16x4xf32>
    %150 = tpu.matmul %149, %23, %cst_159 {dimension_numbers = #tpu.dot_dimension_numbers<[2], [0], [0, 1], [1], [0, 0, 0, 1, 1, 1], [], []>} : vector<8x16x4xbf16>, vector<4x4xbf16>, vector<8x16x4xf32> -> vector<8x16x4xf32>
    %151 = arith.addf %147, %150 : vector<8x16x4xf32>
    %c1_160 = arith.constant 1 : index
    %c0_161 = arith.constant 0 : index
    %c0_162 = arith.constant 0 : index
    %152 = vector.load %arg10[%c1_160, %c0_161, %c0_162] : memref<18x18x4xf32, #tpu.memory_space<vmem>>, vector<8x16x4xf32>
    %153 = arith.truncf %152 : vector<8x16x4xf32> to vector<8x16x4xbf16>
    %cst_163 = arith.constant dense<0.000000e+00> : vector<8x16x4xf32>
    %154 = tpu.matmul %153, %25, %cst_163 {dimension_numbers = #tpu.dot_dimension_numbers<[2], [0], [0, 1], [1], [0, 0, 0, 1, 1, 1], [], []>} : vector<8x16x4xbf16>, vector<4x4xbf16>, vector<8x16x4xf32> -> vector<8x16x4xf32>
    %155 = arith.addf %151, %154 : vector<8x16x4xf32>
    %c1_164 = arith.constant 1 : index
    %c1_165 = arith.constant 1 : index
    %c0_166 = arith.constant 0 : index
    %156 = vector.load %arg10[%c1_164, %c1_165, %c0_166] : memref<18x18x4xf32, #tpu.memory_space<vmem>>, vector<8x16x4xf32>
    %157 = arith.truncf %156 : vector<8x16x4xf32> to vector<8x16x4xbf16>
    %cst_167 = arith.constant dense<0.000000e+00> : vector<8x16x4xf32>
    %158 = tpu.matmul %157, %27, %cst_167 {dimension_numbers = #tpu.dot_dimension_numbers<[2], [0], [0, 1], [1], [0, 0, 0, 1, 1, 1], [], []>} : vector<8x16x4xbf16>, vector<4x4xbf16>, vector<8x16x4xf32> -> vector<8x16x4xf32>
    %159 = arith.addf %155, %158 : vector<8x16x4xf32>
    %c1_168 = arith.constant 1 : index
    %c2_169 = arith.constant 2 : index
    %c0_170 = arith.constant 0 : index
    %160 = vector.load %arg10[%c1_168, %c2_169, %c0_170] : memref<18x18x4xf32, #tpu.memory_space<vmem>>, vector<8x16x4xf32>
    %161 = arith.truncf %160 : vector<8x16x4xf32> to vector<8x16x4xbf16>
    %cst_171 = arith.constant dense<0.000000e+00> : vector<8x16x4xf32>
    %162 = tpu.matmul %161, %29, %cst_171 {dimension_numbers = #tpu.dot_dimension_numbers<[2], [0], [0, 1], [1], [0, 0, 0, 1, 1, 1], [], []>} : vector<8x16x4xbf16>, vector<4x4xbf16>, vector<8x16x4xf32> -> vector<8x16x4xf32>
    %163 = arith.addf %159, %162 : vector<8x16x4xf32>
    %c2_172 = arith.constant 2 : index
    %c0_173 = arith.constant 0 : index
    %c0_174 = arith.constant 0 : index
    %164 = vector.load %arg10[%c2_172, %c0_173, %c0_174] : memref<18x18x4xf32, #tpu.memory_space<vmem>>, vector<8x16x4xf32>
    %165 = arith.truncf %164 : vector<8x16x4xf32> to vector<8x16x4xbf16>
    %cst_175 = arith.constant dense<0.000000e+00> : vector<8x16x4xf32>
    %166 = tpu.matmul %165, %31, %cst_175 {dimension_numbers = #tpu.dot_dimension_numbers<[2], [0], [0, 1], [1], [0, 0, 0, 1, 1, 1], [], []>} : vector<8x16x4xbf16>, vector<4x4xbf16>, vector<8x16x4xf32> -> vector<8x16x4xf32>
    %167 = arith.addf %163, %166 : vector<8x16x4xf32>
    %c2_176 = arith.constant 2 : index
    %c1_177 = arith.constant 1 : index
    %c0_178 = arith.constant 0 : index
    %168 = vector.load %arg10[%c2_176, %c1_177, %c0_178] : memref<18x18x4xf32, #tpu.memory_space<vmem>>, vector<8x16x4xf32>
    %169 = arith.truncf %168 : vector<8x16x4xf32> to vector<8x16x4xbf16>
    %cst_179 = arith.constant dense<0.000000e+00> : vector<8x16x4xf32>
    %170 = tpu.matmul %169, %33, %cst_179 {dimension_numbers = #tpu.dot_dimension_numbers<[2], [0], [0, 1], [1], [0, 0, 0, 1, 1, 1], [], []>} : vector<8x16x4xbf16>, vector<4x4xbf16>, vector<8x16x4xf32> -> vector<8x16x4xf32>
    %171 = arith.addf %167, %170 : vector<8x16x4xf32>
    %c2_180 = arith.constant 2 : index
    %c2_181 = arith.constant 2 : index
    %c0_182 = arith.constant 0 : index
    %172 = vector.load %arg10[%c2_180, %c2_181, %c0_182] : memref<18x18x4xf32, #tpu.memory_space<vmem>>, vector<8x16x4xf32>
    %173 = arith.truncf %172 : vector<8x16x4xf32> to vector<8x16x4xbf16>
    %cst_183 = arith.constant dense<0.000000e+00> : vector<8x16x4xf32>
    %174 = tpu.matmul %173, %35, %cst_183 {dimension_numbers = #tpu.dot_dimension_numbers<[2], [0], [0, 1], [1], [0, 0, 0, 1, 1, 1], [], []>} : vector<8x16x4xbf16>, vector<4x4xbf16>, vector<8x16x4xf32> -> vector<8x16x4xf32>
    %175 = arith.addf %171, %174 : vector<8x16x4xf32>
    %c0_184 = arith.constant 0 : index
    %c0_185 = arith.constant 0 : index
    %c0_186 = arith.constant 0 : index
    %c0_187 = arith.constant 0 : index
    %176 = vector.load %arg1[%c0_184, %c0_185, %c0_186, %c0_187] : memref<1x16x16x4xf32, #tpu.memory_space<vmem>>, vector<1x8x16x4xf32>
    %177 = vector.shape_cast %176 : vector<1x8x16x4xf32> to vector<8x16x4xf32>
    %178 = vector.shape_cast %38 : vector<1x4xf32> to vector<1x1x4xf32>
    %179 = vector.broadcast %178 : vector<1x1x4xf32> to vector<8x16x4xf32>
    %180 = arith.mulf %175, %179 : vector<8x16x4xf32>
    %181 = vector.shape_cast %39 : vector<1x4xf32> to vector<1x1x4xf32>
    %182 = vector.broadcast %181 : vector<1x1x4xf32> to vector<8x16x4xf32>
    %183 = arith.addf %180, %182 : vector<8x16x4xf32>
    %184 = arith.addf %183, %177 : vector<8x16x4xf32>
    %cst_188 = arith.constant 0.000000e+00 : f32
    %185 = vector.broadcast %cst_188 : f32 to vector<8x16x4xf32>
    %186 = arith.maximumf %184, %185 : vector<8x16x4xf32>
    %c0_189 = arith.constant 0 : index
    %c0_190 = arith.constant 0 : index
    %c0_191 = arith.constant 0 : index
    %c0_192 = arith.constant 0 : index
    %187 = vector.load %arg8[%c0_189, %c0_190, %c0_191, %c0_192] : memref<1x16x16x4xf32, #tpu.memory_space<vmem>>, vector<1x8x16x4xf32>
    %188 = vector.shape_cast %187 : vector<1x8x16x4xf32> to vector<8x16x4xf32>
    %189 = vector.shape_cast %186 : vector<8x16x4xf32> to vector<1x8x16x4xf32>
    tpu.vector_store %arg8[%c0_189, %c0_190, %c0_191, %c0_192], %189 {strides = array<i32>} : memref<1x16x16x4xf32, #tpu.memory_space<vmem>>, vector<1x8x16x4xf32>,
    %cst_193 = arith.constant 0.000000e+00 : f32
    %190 = vector.broadcast %cst_193 : f32 to vector<8x16x4xf32>
    %c8_194 = arith.constant 8 : index
    %c0_195 = arith.constant 0 : index
    %c0_196 = arith.constant 0 : index
    %191 = vector.load %arg10[%c8_194, %c0_195, %c0_196] : memref<18x18x4xf32, #tpu.memory_space<vmem>>, vector<8x16x4xf32>
    %192 = arith.truncf %191 : vector<8x16x4xf32> to vector<8x16x4xbf16>
    %cst_197 = arith.constant dense<0.000000e+00> : vector<8x16x4xf32>
    %193 = tpu.matmul %192, %19, %cst_197 {dimension_numbers = #tpu.dot_dimension_numbers<[2], [0], [0, 1], [1], [0, 0, 0, 1, 1, 1], [], []>} : vector<8x16x4xbf16>, vector<4x4xbf16>, vector<8x16x4xf32> -> vector<8x16x4xf32>
    %194 = arith.addf %190, %193 : vector<8x16x4xf32>
    %c8_198 = arith.constant 8 : index
    %c1_199 = arith.constant 1 : index
    %c0_200 = arith.constant 0 : index
    %195 = vector.load %arg10[%c8_198, %c1_199, %c0_200] : memref<18x18x4xf32, #tpu.memory_space<vmem>>, vector<8x16x4xf32>
    %196 = arith.truncf %195 : vector<8x16x4xf32> to vector<8x16x4xbf16>
    %cst_201 = arith.constant dense<0.000000e+00> : vector<8x16x4xf32>
    %197 = tpu.matmul %196, %21, %cst_201 {dimension_numbers = #tpu.dot_dimension_numbers<[2], [0], [0, 1], [1], [0, 0, 0, 1, 1, 1], [], []>} : vector<8x16x4xbf16>, vector<4x4xbf16>, vector<8x16x4xf32> -> vector<8x16x4xf32>
    %198 = arith.addf %194, %197 : vector<8x16x4xf32>
    %c8_202 = arith.constant 8 : index
    %c2_203 = arith.constant 2 : index
    %c0_204 = arith.constant 0 : index
    %199 = vector.load %arg10[%c8_202, %c2_203, %c0_204] : memref<18x18x4xf32, #tpu.memory_space<vmem>>, vector<8x16x4xf32>
    %200 = arith.truncf %199 : vector<8x16x4xf32> to vector<8x16x4xbf16>
    %cst_205 = arith.constant dense<0.000000e+00> : vector<8x16x4xf32>
    %201 = tpu.matmul %200, %23, %cst_205 {dimension_numbers = #tpu.dot_dimension_numbers<[2], [0], [0, 1], [1], [0, 0, 0, 1, 1, 1], [], []>} : vector<8x16x4xbf16>, vector<4x4xbf16>, vector<8x16x4xf32> -> vector<8x16x4xf32>
    %202 = arith.addf %198, %201 : vector<8x16x4xf32>
    %c9_206 = arith.constant 9 : index
    %c0_207 = arith.constant 0 : index
    %c0_208 = arith.constant 0 : index
    %203 = vector.load %arg10[%c9_206, %c0_207, %c0_208] : memref<18x18x4xf32, #tpu.memory_space<vmem>>, vector<8x16x4xf32>
    %204 = arith.truncf %203 : vector<8x16x4xf32> to vector<8x16x4xbf16>
    %cst_209 = arith.constant dense<0.000000e+00> : vector<8x16x4xf32>
    %205 = tpu.matmul %204, %25, %cst_209 {dimension_numbers = #tpu.dot_dimension_numbers<[2], [0], [0, 1], [1], [0, 0, 0, 1, 1, 1], [], []>} : vector<8x16x4xbf16>, vector<4x4xbf16>, vector<8x16x4xf32> -> vector<8x16x4xf32>
    %206 = arith.addf %202, %205 : vector<8x16x4xf32>
    %c9_210 = arith.constant 9 : index
    %c1_211 = arith.constant 1 : index
    %c0_212 = arith.constant 0 : index
    %207 = vector.load %arg10[%c9_210, %c1_211, %c0_212] : memref<18x18x4xf32, #tpu.memory_space<vmem>>, vector<8x16x4xf32>
    %208 = arith.truncf %207 : vector<8x16x4xf32> to vector<8x16x4xbf16>
    %cst_213 = arith.constant dense<0.000000e+00> : vector<8x16x4xf32>
    %209 = tpu.matmul %208, %27, %cst_213 {dimension_numbers = #tpu.dot_dimension_numbers<[2], [0], [0, 1], [1], [0, 0, 0, 1, 1, 1], [], []>} : vector<8x16x4xbf16>, vector<4x4xbf16>, vector<8x16x4xf32> -> vector<8x16x4xf32>
    %210 = arith.addf %206, %209 : vector<8x16x4xf32>
    %c9_214 = arith.constant 9 : index
    %c2_215 = arith.constant 2 : index
    %c0_216 = arith.constant 0 : index
    %211 = vector.load %arg10[%c9_214, %c2_215, %c0_216] : memref<18x18x4xf32, #tpu.memory_space<vmem>>, vector<8x16x4xf32>
    %212 = arith.truncf %211 : vector<8x16x4xf32> to vector<8x16x4xbf16>
    %cst_217 = arith.constant dense<0.000000e+00> : vector<8x16x4xf32>
    %213 = tpu.matmul %212, %29, %cst_217 {dimension_numbers = #tpu.dot_dimension_numbers<[2], [0], [0, 1], [1], [0, 0, 0, 1, 1, 1], [], []>} : vector<8x16x4xbf16>, vector<4x4xbf16>, vector<8x16x4xf32> -> vector<8x16x4xf32>
    %214 = arith.addf %210, %213 : vector<8x16x4xf32>
    %c10_218 = arith.constant 10 : index
    %c0_219 = arith.constant 0 : index
    %c0_220 = arith.constant 0 : index
    %215 = vector.load %arg10[%c10_218, %c0_219, %c0_220] : memref<18x18x4xf32, #tpu.memory_space<vmem>>, vector<8x16x4xf32>
    %216 = arith.truncf %215 : vector<8x16x4xf32> to vector<8x16x4xbf16>
    %cst_221 = arith.constant dense<0.000000e+00> : vector<8x16x4xf32>
    %217 = tpu.matmul %216, %31, %cst_221 {dimension_numbers = #tpu.dot_dimension_numbers<[2], [0], [0, 1], [1], [0, 0, 0, 1, 1, 1], [], []>} : vector<8x16x4xbf16>, vector<4x4xbf16>, vector<8x16x4xf32> -> vector<8x16x4xf32>
    %218 = arith.addf %214, %217 : vector<8x16x4xf32>
    %c10_222 = arith.constant 10 : index
    %c1_223 = arith.constant 1 : index
    %c0_224 = arith.constant 0 : index
    %219 = vector.load %arg10[%c10_222, %c1_223, %c0_224] : memref<18x18x4xf32, #tpu.memory_space<vmem>>, vector<8x16x4xf32>
    %220 = arith.truncf %219 : vector<8x16x4xf32> to vector<8x16x4xbf16>
    %cst_225 = arith.constant dense<0.000000e+00> : vector<8x16x4xf32>
    %221 = tpu.matmul %220, %33, %cst_225 {dimension_numbers = #tpu.dot_dimension_numbers<[2], [0], [0, 1], [1], [0, 0, 0, 1, 1, 1], [], []>} : vector<8x16x4xbf16>, vector<4x4xbf16>, vector<8x16x4xf32> -> vector<8x16x4xf32>
    %222 = arith.addf %218, %221 : vector<8x16x4xf32>
    %c10_226 = arith.constant 10 : index
    %c2_227 = arith.constant 2 : index
    %c0_228 = arith.constant 0 : index
    %223 = vector.load %arg10[%c10_226, %c2_227, %c0_228] : memref<18x18x4xf32, #tpu.memory_space<vmem>>, vector<8x16x4xf32>
    %224 = arith.truncf %223 : vector<8x16x4xf32> to vector<8x16x4xbf16>
    %cst_229 = arith.constant dense<0.000000e+00> : vector<8x16x4xf32>
    %225 = tpu.matmul %224, %35, %cst_229 {dimension_numbers = #tpu.dot_dimension_numbers<[2], [0], [0, 1], [1], [0, 0, 0, 1, 1, 1], [], []>} : vector<8x16x4xbf16>, vector<4x4xbf16>, vector<8x16x4xf32> -> vector<8x16x4xf32>
    %226 = arith.addf %222, %225 : vector<8x16x4xf32>
    %c0_230 = arith.constant 0 : index
    %c8_231 = arith.constant 8 : index
    %c0_232 = arith.constant 0 : index
    %c0_233 = arith.constant 0 : index
    %227 = vector.load %arg1[%c0_230, %c8_231, %c0_232, %c0_233] : memref<1x16x16x4xf32, #tpu.memory_space<vmem>>, vector<1x8x16x4xf32>
    %228 = vector.shape_cast %227 : vector<1x8x16x4xf32> to vector<8x16x4xf32>
    %229 = vector.shape_cast %38 : vector<1x4xf32> to vector<1x1x4xf32>
    %230 = vector.broadcast %229 : vector<1x1x4xf32> to vector<8x16x4xf32>
    %231 = arith.mulf %226, %230 : vector<8x16x4xf32>
    %232 = vector.shape_cast %39 : vector<1x4xf32> to vector<1x1x4xf32>
    %233 = vector.broadcast %232 : vector<1x1x4xf32> to vector<8x16x4xf32>
    %234 = arith.addf %231, %233 : vector<8x16x4xf32>
    %235 = arith.addf %234, %228 : vector<8x16x4xf32>
    %cst_234 = arith.constant 0.000000e+00 : f32
    %236 = vector.broadcast %cst_234 : f32 to vector<8x16x4xf32>
    %237 = arith.maximumf %235, %236 : vector<8x16x4xf32>
    %c0_235 = arith.constant 0 : index
    %c8_236 = arith.constant 8 : index
    %c0_237 = arith.constant 0 : index
    %c0_238 = arith.constant 0 : index
    %238 = vector.load %arg8[%c0_235, %c8_236, %c0_237, %c0_238] : memref<1x16x16x4xf32, #tpu.memory_space<vmem>>, vector<1x8x16x4xf32>
    %239 = vector.shape_cast %238 : vector<1x8x16x4xf32> to vector<8x16x4xf32>
    %240 = vector.shape_cast %237 : vector<8x16x4xf32> to vector<1x8x16x4xf32>
    tpu.vector_store %arg8[%c0_235, %c8_236, %c0_237, %c0_238], %240 {strides = array<i32>} : memref<1x16x16x4xf32, #tpu.memory_space<vmem>>, vector<1x8x16x4xf32>,
    return
  }
  func.func @transform_0(%arg0: i32) -> (i32, i32, i32, i32) {
    %c0_i32 = arith.constant 0 : i32
    %c0_i32_0 = arith.constant 0 : i32
    %c0_i32_1 = arith.constant 0 : i32
    %c0_i32_2 = arith.constant 0 : i32
    return %arg0, %c0_i32, %c0_i32_0, %c0_i32_1 : i32, i32, i32, i32
  }
  func.func @transform_1(%arg0: i32) -> (i32, i32, i32) {
    %c0_i32 = arith.constant 0 : i32
    %c0_i32_0 = arith.constant 0 : i32
    %c0_i32_1 = arith.constant 0 : i32
    %c0_i32_2 = arith.constant 0 : i32
    return %c0_i32, %c0_i32_0, %c0_i32_1 : i32, i32, i32
  }
  func.func @transform_2(%arg0: i32) -> (i32, i32) {
    %c0_i32 = arith.constant 0 : i32
    %c0_i32_0 = arith.constant 0 : i32
    %c0_i32_1 = arith.constant 0 : i32
    return %c0_i32, %c0_i32_0 : i32, i32
  }
  func.func @transform_3(%arg0: i32) -> (i32, i32) {
    %c0_i32 = arith.constant 0 : i32
    %c0_i32_0 = arith.constant 0 : i32
    %c0_i32_1 = arith.constant 0 : i32
    return %c0_i32, %c0_i32_0 : i32, i32
  }
  func.func @transform_4(%arg0: i32) -> (i32, i32, i32) {
    %c0_i32 = arith.constant 0 : i32
    %c0_i32_0 = arith.constant 0 : i32
    %c0_i32_1 = arith.constant 0 : i32
    %c0_i32_2 = arith.constant 0 : i32
    return %c0_i32, %c0_i32_0, %c0_i32_1 : i32, i32, i32
  }
  func.func @transform_5(%arg0: i32) -> (i32, i32) {
    %c0_i32 = arith.constant 0 : i32
    %c0_i32_0 = arith.constant 0 : i32
    %c0_i32_1 = arith.constant 0 : i32
    return %c0_i32, %c0_i32_0 : i32, i32
  }
  func.func @transform_6(%arg0: i32) -> (i32, i32) {
    %c0_i32 = arith.constant 0 : i32
    %c0_i32_0 = arith.constant 0 : i32
    %c0_i32_1 = arith.constant 0 : i32
    return %c0_i32, %c0_i32_0 : i32, i32
  }
  func.func @transform_7(%arg0: i32) -> (i32, i32, i32, i32) {
    %c0_i32 = arith.constant 0 : i32
    %c0_i32_0 = arith.constant 0 : i32
    %c0_i32_1 = arith.constant 0 : i32
    %c0_i32_2 = arith.constant 0 : i32
    return %arg0, %c0_i32, %c0_i32_0, %c0_i32_1 : i32, i32, i32, i32
  }
}

</mosaic_0001>

<bundles_post_ra>
// kernel: basic_block_forward.1
= control target key start
LH: loop header
LB: loop body
LE: loop exit
PB: predicated region body
PF: predicated region fallthrough
CT: control target
= control target key end

     0   :  { %s7029_s24 = smov 0   ;;  %s8879_s0 = inlined_call_operand.vmem [shape: f32[2,16,16,4], index: 0, kind: input, shape index: {}]   ;;  %s8880_s1 = inlined_call_operand.vmem [shape: bf16[9,4,4], index: 1, kind: input, shape index: {}]   ;;  %s8881_s2 = inlined_call_operand.vmem [shape: f32[1,4], index: 2, kind: input, shape index: {}]   ;;  %s8882_s3 = inlined_call_operand.vmem [shape: f32[1,4], index: 3, kind: input, shape index: {}]   ;;  %s8883_s4 = inlined_call_operand.vmem [shape: bf16[9,4,4], index: 4, kind: input, shape index: {}]   ;;  %s8884_s5 = inlined_call_operand.vmem [shape: f32[1,4], index: 5, kind: input, shape index: {}]   ;;  %s8885_s6 = inlined_call_operand.vmem [shape: f32[1,4], index: 6, kind: input, shape index: {}]   ;;  %s8886_s7 = inlined_call_operand.vmem [shape: f32[2,16,16,4], index: 7, kind: output, shape index: {}]  }
   0x1 LB: > { %s6614_s25 = sadd.s32 4294967295, %s6986_s24   ;;  %p6618_p0 = scmp.ge.s32.totalorder %s6986_s24, 1  ;;  %s6986_s24 = sphi %s7029_s24, %s17_s24  }
   0x2   : > { %p237_p1 = scmp.lt.s32.totalorder %s6986_s24, 3 }
   0x4   : > { %p238_p2 = pnand %p6618_p0, %p237_p1 }
   0x5   : > { %p7262_p3 = scmp.lt.s32.totalorder (!%p238_p2), %s6614_s25, 1 }
   0x6   : > { %241 = sbr.rel (%p238_p2) target bundleno = 1424 (0x590), region = 48 }
   0xb   : > { %v6623_v0 = vld [vmem:[%s8880_s1 + $0x2] sm:$0x3]  ;;  %vm621_vm0 = vcmask 1041408   ;;  %v280_v1 = vld [vmem:[%s8880_s1] sm:$0x3]  ;;  %vm318_vm1 = vcmask 31744  }
   0xc   : > { %v7044_v2 = vsel %vm621_vm0, %v6623_v0, 0  ;;  %v7047_v3 = vsel %vm621_vm0, %v280_v1, 0  ;;  %v6624_v4 = vld [vmem:[%s8880_s1 + $0x4] sm:$0x3]  ;;  %vm321_vm2 = vcmask 25600   ;;  %v6988_v6 = vmov 0.0  }
   0xd   : > { %632 = vmatpush.bf16.msra.mxu0 %v7044_v2  ;;  %748 = vmatpush.bf16.msra.mxu1 %v7047_v3  ;;  %v7055_v5 = vsel %vm621_vm0, %v6624_v4, 0  ;;  %319 = vst.msk [vmem:[#allocation2] sm:$0xff] %vm318_vm1, %v6988_v6  ;;  %v6625_v7 = vld [vmem:[%s8880_s1 + $0x6] sm:$0x3]  ;;  %v6628_v30 = vld [vmem:[%s8880_s1 + $0xc] sm:$0x3] }
   0xe   : > { %896 = vmatpush.bf16.msra.mxu2 %v7055_v5  ;;  %320 = vst.msk [vmem:[#allocation2 + $0x8] sm:$0xff] %vm318_vm1, %v6988_v6  ;;  %v7066_v8 = vsel %vm621_vm0, %v6625_v7, 0  ;;  %v7226_v31 = vsel %vm621_vm0, %v6628_v30, 0  ;;  %v6626_v32 = vld [vmem:[%s8880_s1 + $0x8] sm:$0x3]  ;;  %s8889_s25 = smov (!%p7262_p3, %s6614_s25), 1 }
   0xf   : > { %322 = vst.msk [vmem:[#allocation2 + $0x10] sm:$0x3] %vm321_vm2, %v6988_v6  ;;  %1060 = vmatpush.bf16.msra.mxu3 %v7066_v8  ;;  %v6629_v33 = vld [vmem:[%s8880_s1 + $0xe] sm:$0x3]  ;;  %v7275_v34 = vsel %vm621_vm0, %v6626_v32, 0  ;;  %s6961_s20 = sshll.u32 %s8889_s25, 8 }
  0x10   : > { %323 = vst.msk [vmem:[#allocation2 + $0x18] sm:$0xff] %vm318_vm1, %v6988_v6  ;;  %v7278_v35 = vsel %vm621_vm0, %v6629_v33, 0  ;;  %v6627_v36 = vld [vmem:[%s8880_s1 + $0xa] sm:$0x3]  ;;  %s7322_s23 = scalar_lea.vmem %s8879_s0, %s6961_s20  ;;  %s8458_s18 = scalar_lea.vmem %s8886_s7, %s6961_s20 }
  0x11   : > { %324 = vst.msk [vmem:[#allocation2 + $0x20] sm:$0xff] %vm318_vm1, %v6988_v6  ;;  %1224 = vmatpush.bf16.msrb.mxu0 %v7275_v34  ;;  %v7288_v37 = vsel %vm621_vm0, %v6627_v36, 0  ;;  %v374_v38 = vld [vmem:[%s7322_s23] sm:$0xff]  ;;  %v375_v39 = vld [vmem:[%s7322_s23 + $0x8] sm:$0xff]  ;;  %v376_v40 = vld [vmem:[%s7322_s23 + $0x10] sm:$0xff] }
  0x12   : > { %325 = vst.msk [vmem:[#allocation2 + $0x28] sm:$0x3] %vm321_vm2, %v6988_v6  ;;  %1553 = vmatpush.bf16.msrb.mxu2 %v7226_v31  ;;  %1388 = vmatpush.bf16.msrb.mxu1 %v7288_v37  ;;  %v377_v41 = vld [vmem:[%s7322_s23 + $0x18] sm:$0xff]  ;;  %v378_v42 = vld [vmem:[%s7322_s23 + $0x20] sm:$0xff]  ;;  %v379_v43 = vld [vmem:[%s7322_s23 + $0x28] sm:$0xff] }
  0x13   : > { %326 = vst.msk [vmem:[#allocation2 + $0x30] sm:$0xff] %vm318_vm1, %v6988_v6  ;;  %1717 = vmatpush.bf16.msrb.mxu3 %v7278_v35  ;;  %v383_v33 = vld [vmem:[%s7322_s23 + $0x48] sm:$0xff] }
  0x14   : > { %327 = vst.msk [vmem:[#allocation2 + $0x38] sm:$0xff] %vm318_vm1, %v6988_v6  ;;  %v493_v9 = vld [vmem:[#allocation2] sm:$0xff] }
  0x15   : > { %v525_v10 = vld [vmem:[#allocation2 + $0x1] sm:$0xff]  ;;  %328 = vst.msk [vmem:[#allocation2 + $0x40] sm:$0x3] %vm321_vm2, %v6988_v6  ;;  %v509_v12 = vpack.c.bf16 %v493_v9, %v493_v9 }
  0x16   : > { %v494_v11 = vld [vmem:[#allocation2 + $0x8] sm:$0xff]  ;;  %v541_v15 = vpack.c.bf16 %v525_v10, %v525_v10  ;;  %329 = vst.msk [vmem:[#allocation2 + $0x48] sm:$0xff] %vm318_vm1, %v6988_v6  ;;  %v381_v10 = vld [vmem:[%s7322_s23 + $0x38] sm:$0xff] }
  0x17   : > { %v790_v13 = vld [vmem:[#allocation2 + $0x2] sm:$0xff]  ;;  %v510_v16 = vpack.c.bf16 %v494_v11, %v494_v11  ;;  %v791_v17 = vld [vmem:[#allocation2 + $0xa] sm:$0xff]  ;;  %330 = vst.msk [vmem:[#allocation2 + $0x50] sm:$0xff] %vm318_vm1, %v6988_v6  ;;  %v690_v20 = vunpack.c.l.b16 %v509_v12 }
  0x18   : > { %v526_v14 = vld [vmem:[#allocation2 + $0x9] sm:$0xff]  ;;  %v806_v18 = vpack.c.bf16 %v790_v13, %v790_v13  ;;  %v807_v21 = vpack.c.bf16 %v791_v17, %v791_v17  ;;  %v573_v22 = vunpack.c.l.b16 %v541_v15  ;;  %331 = vst.msk [vmem:[#allocation2 + $0x58] sm:$0x3] %vm321_vm2, %v6988_v6 }
  0x19   : > { %v542_v19 = vpack.c.bf16 %v526_v14, %v526_v14  ;;  %v691_v23 = vunpack.c.l.b16 %v510_v16  ;;  %332 = vst.msk [vmem:[#allocation2 + $0x60] sm:$0xff] %vm318_vm1, %v6988_v6 }
  0x1a   : > { %v838_v24 = vunpack.c.l.b16 %v806_v18  ;;  %v839_v26 = vunpack.c.l.b16 %v807_v21  ;;  %333 = vst.msk [vmem:[#allocation2 + $0x68] sm:$0xff] %vm318_vm1, %v6988_v6 }
  0x1b   : > { %v574_v25 = vunpack.c.l.b16 %v542_v19  ;;  %v706_v27 = vpack.c.b16 %v691_v23, %v690_v20  ;;  %334 = vst.msk [vmem:[#allocation2 + $0x70] sm:$0x3] %vm321_vm2, %v6988_v6 }
  0x1c   : > { %v854_v29 = vpack.c.b16 %v839_v26, %v838_v24  ;;  %335 = vst.msk [vmem:[#allocation2 + $0x78] sm:$0xff] %vm318_vm1, %v6988_v6 }
  0x1d   : > { %v589_v28 = vpack.c.b16 %v574_v25, %v573_v22  ;;  %6647 = vmatmul.msk.bf16.vlgmr.msra.gmra.mxu1 %vm318_vm1, %v706_v27  ;;  %336 = vst.msk [vmem:[#allocation2 + $0x80] sm:$0xff] %vm318_vm1, %v6988_v6 }
  0x1e   : > { %6655 = vmatmul.msk.bf16.vlgmr.msra.gmra.mxu2 %vm318_vm1, %v854_v29  ;;  %337 = vst.msk [vmem:[#allocation2 + $0x88] sm:$0x3] %vm321_vm2, %v6988_v6  ;;  %2146 = vmatpush.bf16.msra.mxu1 %v7044_v2  ;;  %v382_v29 = vld [vmem:[%s7322_s23 + $0x40] sm:$0xff] }
  0x1f   : > { %6639 = vmatmul.msk.bf16.vlgmr.msra.gmra.mxu0 %vm318_vm1, %v589_v28  ;;  %338 = vst.msk [vmem:[#allocation2 + $0x90] sm:$0xff] %vm318_vm1, %v6988_v6  ;;  %2259 = vmatpush.bf16.msra.mxu2 %v7047_v3 }
  0x20   : > { %339 = vst.msk [vmem:[#allocation2 + $0x98] sm:$0xff] %vm318_vm1, %v6988_v6 }
  0x21   : > { %340 = vst.msk [vmem:[#allocation2 + $0xa0] sm:$0x3] %vm321_vm2, %v6988_v6 }
  0x22   : > { %341 = vst.msk [vmem:[#allocation2 + $0xa8] sm:$0xff] %vm318_vm1, %v6988_v6 }
  0x23   : > { %342 = vst.msk [vmem:[#allocation2 + $0xb0] sm:$0xff] %vm318_vm1, %v6988_v6 }
  0x24   : > { %343 = vst.msk [vmem:[#allocation2 + $0xb8] sm:$0x3] %vm321_vm2, %v6988_v6 }
  0x25   : > { %344 = vst.msk [vmem:[#allocation2 + $0xc0] sm:$0xff] %vm318_vm1, %v6988_v6 }
  0x26   : > { %345 = vst.msk [vmem:[#allocation2 + $0xc8] sm:$0xff] %vm318_vm1, %v6988_v6 }
  0x27   : > { %346 = vst.msk [vmem:[#allocation2 + $0xd0] sm:$0x3] %vm321_vm2, %v6988_v6 }
  0x28   : > { %347 = vst.msk [vmem:[#allocation2 + $0xd8] sm:$0xff] %vm318_vm1, %v6988_v6 }
  0x29   : > { %348 = vst.msk [vmem:[#allocation2 + $0xe0] sm:$0xff] %vm318_vm1, %v6988_v6 }
  0x2a   : > { %349 = vst.msk [vmem:[#allocation2 + $0xe8] sm:$0x3] %vm321_vm2, %v6988_v6 }
  0x2b   : > { %350 = vst.msk [vmem:[#allocation2 + $0xf0] sm:$0xff] %vm318_vm1, %v6988_v6 }
  0x2c   : > { %351 = vst.msk [vmem:[#allocation2 + $0xf8] sm:$0xff] %vm318_vm1, %v6988_v6 }
  0x2d   : > { %352 = vst.msk [vmem:[#allocation2 + $0x100] sm:$0x3] %vm321_vm2, %v6988_v6 }
  0x2e   : > { %353 = vst.msk [vmem:[#allocation2 + $0x108] sm:$0xff] %vm318_vm1, %v6988_v6 }
  0x2f   : > { %354 = vst.msk [vmem:[#allocation2 + $0x110] sm:$0xff] %vm318_vm1, %v6988_v6 }
  0x30   : > { %355 = vst.msk [vmem:[#allocation2 + $0x118] sm:$0x3] %vm321_vm2, %v6988_v6 }
  0x31   : > { %356 = vst.msk [vmem:[#allocation2 + $0x120] sm:$0xff] %vm318_vm1, %v6988_v6 }
  0x32   : > { %357 = vst.msk [vmem:[#allocation2 + $0x128] sm:$0xff] %vm318_vm1, %v6988_v6 }
  0x33   : > { %358 = vst.msk [vmem:[#allocation2 + $0x130] sm:$0x3] %vm321_vm2, %v6988_v6 }
  0x34   : > { %359 = vst.msk [vmem:[#allocation2 + $0x138] sm:$0xff] %vm318_vm1, %v6988_v6 }
  0x35   : > { %360 = vst.msk [vmem:[#allocation2 + $0x140] sm:$0xff] %vm318_vm1, %v6988_v6 }
  0x36   : > { %361 = vst.msk [vmem:[#allocation2 + $0x148] sm:$0x3] %vm321_vm2, %v6988_v6 }
  0x37   : > { %362 = vst.msk [vmem:[#allocation2 + $0x150] sm:$0xff] %vm318_vm1, %v6988_v6 }
  0x38   : > { %363 = vst.msk [vmem:[#allocation2 + $0x158] sm:$0xff] %vm318_vm1, %v6988_v6 }
  0x39   : > { %364 = vst.msk [vmem:[#allocation2 + $0x160] sm:$0x3] %vm321_vm2, %v6988_v6 }
  0x3a   : > { %365 = vst.msk [vmem:[#allocation2 + $0x168] sm:$0xff] %vm318_vm1, %v6988_v6 }
  0x3b   : > { %366 = vst.msk [vmem:[#allocation2 + $0x170] sm:$0xff] %vm318_vm1, %v6988_v6 }
  0x3c   : > { %367 = vst.msk [vmem:[#allocation2 + $0x178] sm:$0x3] %vm321_vm2, %v6988_v6 }
  0x3d   : > { %368 = vst.msk [vmem:[#allocation2 + $0x180] sm:$0xff] %vm318_vm1, %v6988_v6 }
  0x3e   : > { %369 = vst.msk [vmem:[#allocation2 + $0x188] sm:$0xff] %vm318_vm1, %v6988_v6 }
  0x3f   : > { %370 = vst.msk [vmem:[#allocation2 + $0x190] sm:$0x3] %vm321_vm2, %v6988_v6 }
  0x40   : > { %371 = vst.msk [vmem:[#allocation2 + $0x198] sm:$0xff] %vm318_vm1, %v6988_v6 }
  0x41   : > { %372 = vst.msk [vmem:[#allocation2 + $0x1a0] sm:$0xff] %vm318_vm1, %v6988_v6 }
  0x42   : > { %373 = vst.msk [vmem:[#allocation2 + $0x1a8] sm:$0x3] %vm321_vm2, %v6988_v6 }
  0x43   : > { %439 = vst.msk [vmem:[#allocation3] sm:$0xff] %vm318_vm1, %v6988_v6 }
  0x44   : > { %440 = vst.msk [vmem:[#allocation3 + $0x8] sm:$0xff] %vm318_vm1, %v6988_v6 }
  0x45   : > { %441 = vst.msk [vmem:[#allocation3 + $0x10] sm:$0x3] %vm321_vm2, %v6988_v6 }
  0x46   : > { %442 = vst.msk [vmem:[#allocation3 + $0x18] sm:$0xff] %vm318_vm1, %v6988_v6 }
  0x47   : > { %443 = vst.msk [vmem:[#allocation3 + $0x20] sm:$0xff] %vm318_vm1, %v6988_v6 }
  0x48   : > { %444 = vst.msk [vmem:[#allocation3 + $0x28] sm:$0x3] %vm321_vm2, %v6988_v6 }
  0x49   : > { %445 = vst.msk [vmem:[#allocation3 + $0x30] sm:$0xff] %vm318_vm1, %v6988_v6 }
  0x4a   : > { %446 = vst.msk [vmem:[#allocation3 + $0x38] sm:$0xff] %vm318_vm1, %v6988_v6 }
  0x4b   : > { %447 = vst.msk [vmem:[#allocation3 + $0x40] sm:$0x3] %vm321_vm2, %v6988_v6 }
  0x4c   : > { %448 = vst.msk [vmem:[#allocation3 + $0x48] sm:$0xff] %vm318_vm1, %v6988_v6 }
  0x4d   : > { %449 = vst.msk [vmem:[#allocation3 + $0x50] sm:$0xff] %vm318_vm1, %v6988_v6 }
  0x4e   : > { %450 = vst.msk [vmem:[#allocation3 + $0x58] sm:$0x3] %vm321_vm2, %v6988_v6 }
  0x4f   : > { %451 = vst.msk [vmem:[#allocation3 + $0x60] sm:$0xff] %vm318_vm1, %v6988_v6 }
  0x50   : > { %452 = vst.msk [vmem:[#allocation3 + $0x68] sm:$0xff] %vm318_vm1, %v6988_v6 }
  0x51   : > { %453 = vst.msk [vmem:[#allocation3 + $0x70] sm:$0x3] %vm321_vm2, %v6988_v6 }
  0x52   : > { %454 = vst.msk [vmem:[#allocation3 + $0x78] sm:$0xff] %vm318_vm1, %v6988_v6 }
  0x53   : > { %455 = vst.msk [vmem:[#allocation3 + $0x80] sm:$0xff] %vm318_vm1, %v6988_v6 }
  0x54   : > { %456 = vst.msk [vmem:[#allocation3 + $0x88] sm:$0x3] %vm321_vm2, %v6988_v6 }
  0x55   : > { %457 = vst.msk [vmem:[#allocation3 + $0x90] sm:$0xff] %vm318_vm1, %v6988_v6 }
  0x56   : > { %458 = vst.msk [vmem:[#allocation3 + $0x98] sm:$0xff] %vm318_vm1, %v6988_v6 }
  0x57   : > { %459 = vst.msk [vmem:[#allocation3 + $0xa0] sm:$0x3] %vm321_vm2, %v6988_v6 }
  0x58   : > { %460 = vst.msk [vmem:[#allocation3 + $0xa8] sm:$0xff] %vm318_vm1, %v6988_v6 }
  0x59   : > { %461 = vst.msk [vmem:[#allocation3 + $0xb0] sm:$0xff] %vm318_vm1, %v6988_v6 }
  0x5a   : > { %462 = vst.msk [vmem:[#allocation3 + $0xb8] sm:$0x3] %vm321_vm2, %v6988_v6 }
  0x5b   : > { %463 = vst.msk [vmem:[#allocation3 + $0xc0] sm:$0xff] %vm318_vm1, %v6988_v6 }
  0x5c   : > { %464 = vst.msk [vmem:[#allocation3 + $0xc8] sm:$0xff] %vm318_vm1, %v6988_v6 }
  0x5d   : > { %465 = vst.msk [vmem:[#allocation3 + $0xd0] sm:$0x3] %vm321_vm2, %v6988_v6 }
  0x5e   : > { %466 = vst.msk [vmem:[#allocation3 + $0xd8] sm:$0xff] %vm318_vm1, %v6988_v6 }
  0x5f   : > { %467 = vst.msk [vmem:[#allocation3 + $0xe0] sm:$0xff] %vm318_vm1, %v6988_v6 }
  0x60   : > { %468 = vst.msk [vmem:[#allocation3 + $0xe8] sm:$0x3] %vm321_vm2, %v6988_v6 }
  0x61   : > { %469 = vst.msk [vmem:[#allocation3 + $0xf0] sm:$0xff] %vm318_vm1, %v6988_v6 }
  0x62   : > { %470 = vst.msk [vmem:[#allocation3 + $0xf8] sm:$0xff] %vm318_vm1, %v6988_v6 }
  0x63   : > { %471 = vst.msk [vmem:[#allocation3 + $0x100] sm:$0x3] %vm321_vm2, %v6988_v6 }
  0x64   : > { %472 = vst.msk [vmem:[#allocation3 + $0x108] sm:$0xff] %vm318_vm1, %v6988_v6 }
  0x65   : > { %473 = vst.msk [vmem:[#allocation3 + $0x110] sm:$0xff] %vm318_vm1, %v6988_v6 }
  0x66   : > { %474 = vst.msk [vmem:[#allocation3 + $0x118] sm:$0x3] %vm321_vm2, %v6988_v6 }
  0x67   : > { %475 = vst.msk [vmem:[#allocation3 + $0x120] sm:$0xff] %vm318_vm1, %v6988_v6 }
  0x68   : > { %476 = vst.msk [vmem:[#allocation3 + $0x128] sm:$0xff] %vm318_vm1, %v6988_v6 }
  0x69   : > { %477 = vst.msk [vmem:[#allocation3 + $0x130] sm:$0x3] %vm321_vm2, %v6988_v6 }
  0x6a   : > { %478 = vst.msk [vmem:[#allocation3 + $0x138] sm:$0xff] %vm318_vm1, %v6988_v6 }
  0x6b   : > { %479 = vst.msk [vmem:[#allocation3 + $0x140] sm:$0xff] %vm318_vm1, %v6988_v6 }
  0x6c   : > { %480 = vst.msk [vmem:[#allocation3 + $0x148] sm:$0x3] %vm321_vm2, %v6988_v6 }
  0x6d   : > { %481 = vst.msk [vmem:[#allocation3 + $0x150] sm:$0xff] %vm318_vm1, %v6988_v6 }
  0x6e   : > { %482 = vst.msk [vmem:[#allocation3 + $0x158] sm:$0xff] %vm318_vm1, %v6988_v6 }
  0x6f   : > { %483 = vst.msk [vmem:[#allocation3 + $0x160] sm:$0x3] %vm321_vm2, %v6988_v6 }
  0x70   : > { %484 = vst.msk [vmem:[#allocation3 + $0x168] sm:$0xff] %vm318_vm1, %v6988_v6 }
  0x71   : > { %485 = vst.msk [vmem:[#allocation3 + $0x170] sm:$0xff] %vm318_vm1, %v6988_v6 }
  0x72   : > { %486 = vst.msk [vmem:[#allocation3 + $0x178] sm:$0x3] %vm321_vm2, %v6988_v6 }
  0x73   : > { %487 = vst.msk [vmem:[#allocation3 + $0x180] sm:$0xff] %vm318_vm1, %v6988_v6 }
  0x74   : > { %488 = vst.msk [vmem:[#allocation3 + $0x188] sm:$0xff] %vm318_vm1, %v6988_v6 }
  0x75   : > { %489 = vst.msk [vmem:[#allocation3 + $0x190] sm:$0x3] %vm321_vm2, %v6988_v6 }
  0x76   : > { %490 = vst.msk [vmem:[#allocation3 + $0x198] sm:$0xff] %vm318_vm1, %v6988_v6 }
  0x77   : > { %491 = vst.msk [vmem:[#allocation3 + $0x1a0] sm:$0xff] %vm318_vm1, %v6988_v6 }
  0x78   : > { %492 = vst.msk [vmem:[#allocation3 + $0x1a8] sm:$0x3] %vm321_vm2, %v6988_v6  ;;  %v380_v6 = vld [vmem:[%s7322_s23 + $0x30] sm:$0xff] }
  0x79   : > { %407 = vst.msk [vmem:[#allocation2 + $0x19] sm:$0xff] %vm318_vm1, %v374_v38 }
  0x7a   : > { %408 = vst.msk [vmem:[#allocation2 + $0x21] sm:$0xff] %vm318_vm1, %v375_v39 }
  0x7b   : > { %409 = vst.msk [vmem:[#allocation2 + $0x31] sm:$0xff] %vm318_vm1, %v376_v40 }
  0x7c   : > { %410 = vst.msk [vmem:[#allocation2 + $0x39] sm:$0xff] %vm318_vm1, %v377_v41 }
  0x7d   : > { %411 = vst.msk [vmem:[#allocation2 + $0x49] sm:$0xff] %vm318_vm1, %v378_v42 }
  0x7e   : > { %412 = vst.msk [vmem:[#allocation2 + $0x51] sm:$0xff] %vm318_vm1, %v379_v43 }
  0x7f   : > { %413 = vst.msk [vmem:[#allocation2 + $0x61] sm:$0xff] %vm318_vm1, %v380_v6 }
  0x80   : > { %v954_v44 = vld [vmem:[#allocation2 + $0x18] sm:$0xff]  ;;  %414 = vst.msk [vmem:[#allocation2 + $0x69] sm:$0xff] %vm318_vm1, %v381_v10 }
  0x81   : > { %v527_v45 = vld [vmem:[#allocation2 + $0x19] sm:$0xff]  ;;  %v970_v47 = vpack.c.bf16 %v954_v44, %v954_v44  ;;  %v528_v48 = vld [vmem:[#allocation2 + $0x21] sm:$0xff]  ;;  %415 = vst.msk [vmem:[#allocation2 + $0x79] sm:$0xff] %vm318_vm1, %v382_v29 }
  0x82   : > { %v955_v46 = vld [vmem:[#allocation2 + $0x20] sm:$0xff]  ;;  %v543_v49 = vpack.c.bf16 %v527_v45, %v527_v45  ;;  %v544_v52 = vpack.c.bf16 %v528_v48, %v528_v48  ;;  %v956_v1 = vld [vmem:[#allocation2 + $0x30] sm:$0xff]  ;;  %416 = vst.msk [vmem:[#allocation2 + $0x81] sm:$0xff] %vm318_vm1, %v383_v33 }
  0x83   : > { %v792_v50 = vld [vmem:[#allocation2 + $0x1a] sm:$0xff]  ;;  %v971_v51 = vpack.c.bf16 %v955_v46, %v955_v46  ;;  %v793_v53 = vld [vmem:[#allocation2 + $0x22] sm:$0xff]  ;;  %v1002_v55 = vunpack.c.l.b16 %v970_v47  ;;  %v529_v2 = vld [vmem:[#allocation2 + $0x31] sm:$0xff]  ;;  %v972_v11 = vpack.c.bf16 %v956_v1, %v956_v1 }
  0x84   : > { %v808_v54 = vpack.c.bf16 %v792_v50, %v792_v50  ;;  %v575_v56 = vunpack.c.l.b16 %v543_v49  ;;  %v809_v57 = vpack.c.bf16 %v793_v53, %v793_v53  ;;  %v576_v59 = vunpack.c.l.b16 %v544_v52  ;;  %v957_v3 = vld [vmem:[#allocation2 + $0x38] sm:$0xff]  ;;  %v958_v25 = vld [vmem:[#allocation2 + $0x48] sm:$0xff] }
  0x85   : > { %v1003_v58 = vunpack.c.l.b16 %v971_v51  ;;  %v530_v4 = vld [vmem:[#allocation2 + $0x39] sm:$0xff]  ;;  %v973_v12 = vpack.c.bf16 %v957_v3, %v957_v3  ;;  %v545_v13 = vpack.c.bf16 %v529_v2, %v529_v2  ;;  %v1004_v17 = vunpack.c.l.b16 %v972_v11  ;;  %v959_v26 = vld [vmem:[#allocation2 + $0x50] sm:$0xff] }
  0x86   : > { %v840_v60 = vunpack.c.l.b16 %v808_v54  ;;  %v841_v61 = vunpack.c.l.b16 %v809_v57  ;;  %v7346_v63 = vpack.c.b16 %v576_v59, %v575_v56  ;;  %v794_v7 = vld [vmem:[#allocation2 + $0x32] sm:$0xff]  ;;  %v795_v9 = vld [vmem:[#allocation2 + $0x3a] sm:$0xff]  ;;  %v546_v14 = vpack.c.bf16 %v530_v4, %v530_v4  ;;  %v531_v27 = vld [vmem:[#allocation2 + $0x49] sm:$0xff] }
  0x87   : > { %v1018_v62 = vpack.c.b16 %v1003_v58, %v1002_v55  ;;  %v810_v15 = vpack.c.bf16 %v794_v7, %v794_v7  ;;  %v811_v16 = vpack.c.bf16 %v795_v9, %v795_v9  ;;  %v1005_v18 = vunpack.c.l.b16 %v973_v12  ;;  %v532_v28 = vld [vmem:[#allocation2 + $0x51] sm:$0xff]  ;;  %v960_v52 = vld [vmem:[#allocation2 + $0x60] sm:$0xff]  ;;  %v961_v53 = vld [vmem:[#allocation2 + $0x68] sm:$0xff] }
  0x88   : > { %v7348_v0 = vpack.c.b16 %v841_v61, %v840_v60  ;;  %6640 = vmatmul.msk.bf16.gmra.mxu0 %vm318_vm1, %v7346_v63  ;;  %v577_v19 = vunpack.c.l.b16 %v545_v13  ;;  %v578_v20 = vunpack.c.l.b16 %v546_v14  ;;  %v796_v30 = vld [vmem:[#allocation2 + $0x4a] sm:$0xff]  ;;  %v797_v32 = vld [vmem:[#allocation2 + $0x52] sm:$0xff]  ;;  %v974_v36 = vpack.c.bf16 %v958_v25, %v958_v25  ;;  %v533_v54 = vld [vmem:[#allocation2 + $0x61] sm:$0xff] }
  0x89   : > { %6663 = vmatmul.msk.bf16.vlgmr.msra.gmra.mxu3 %vm318_vm1, %v1018_v62  ;;  %6648 = vmatmul.msk.bf16.gmra.mxu1 %vm318_vm1, %v1018_v62  ;;  %v842_v21 = vunpack.c.l.b16 %v810_v15  ;;  %v843_v22 = vunpack.c.l.b16 %v811_v16  ;;  %v7361_v23 = vpack.c.b16 %v1005_v18, %v1004_v17  ;;  %v975_v38 = vpack.c.bf16 %v959_v26, %v959_v26  ;;  %v534_v55 = vld [vmem:[#allocation2 + $0x69] sm:$0xff]  ;;  %v385_v59 = vld [vmem:[%s7322_s23 + $0x58] sm:$0xff]  ;;  %v963_v16 = vld [vmem:[#allocation2 + $0x80] sm:$0xff] }
  0x8a   : > { %6656 = vmatmul.msk.bf16.gmra.mxu2 %vm318_vm1, %v7348_v0  ;;  %2404 = vmatpush.bf16.msra.mxu3 %v7055_v5  ;;  %v7363_v24 = vpack.c.b16 %v578_v20, %v577_v19  ;;  %v547_v39 = vpack.c.bf16 %v531_v27, %v531_v27  ;;  %v548_v40 = vpack.c.bf16 %v532_v28, %v532_v28  ;;  %v1006_v43 = vunpack.c.l.b16 %v974_v36  ;;  %v384_v56 = vld [vmem:[%s7322_s23 + $0x50] sm:$0xff]  ;;  %v798_v57 = vld [vmem:[#allocation2 + $0x62] sm:$0xff]  ;;  %v962_v15 = vld [vmem:[#allocation2 + $0x78] sm:$0xff] }
  0x8b   : > { %v7365_v5 = vpack.c.b16 %v843_v22, %v842_v21  ;;  %v812_v41 = vpack.c.bf16 %v796_v30, %v796_v30  ;;  %v813_v42 = vpack.c.bf16 %v797_v32, %v797_v32  ;;  %v1007_v44 = vunpack.c.l.b16 %v975_v38  ;;  %v799_v58 = vld [vmem:[#allocation2 + $0x6a] sm:$0xff]  ;;  %417 = vst.msk [vmem:[#allocation2 + $0x91] sm:$0xff] %vm318_vm1, %v384_v56  ;;  %v535_v17 = vld [vmem:[#allocation2 + $0x79] sm:$0xff]  ;;  %v536_v18 = vld [vmem:[#allocation2 + $0x81] sm:$0xff] }
  0x8c   : > { %v579_v45 = vunpack.c.l.b16 %v547_v39  ;;  %v580_v46 = vunpack.c.l.b16 %v548_v40  ;;  %418 = vst.msk [vmem:[#allocation2 + $0x99] sm:$0xff] %vm318_vm1, %v385_v59  ;;  %v976_v60 = vpack.c.bf16 %v960_v52, %v960_v52  ;;  %v977_v61 = vpack.c.bf16 %v961_v53, %v961_v53  ;;  %v386_v19 = vld [vmem:[%s7322_s23 + $0x60] sm:$0xff]  ;;  %v387_v22 = vld [vmem:[%s7322_s23 + $0x68] sm:$0xff] }
  0x8d   : > { %v844_v47 = vunpack.c.l.b16 %v812_v41  ;;  %v845_v48 = vunpack.c.l.b16 %v813_v42  ;;  %v7379_v49 = vpack.c.b16 %v1007_v44, %v1006_v43  ;;  %v549_v62 = vpack.c.bf16 %v533_v54, %v533_v54  ;;  %v800_v20 = vld [vmem:[#allocation2 + $0x7a] sm:$0xff]  ;;  %v801_v21 = vld [vmem:[#allocation2 + $0x82] sm:$0xff]  ;;  %419 = vst.msk [vmem:[#allocation2 + $0xa9] sm:$0xff] %vm318_vm1, %v386_v19 }
  0x8e   : > { %v7381_v50 = vpack.c.b16 %v580_v46, %v579_v45  ;;  %v550_v1 = vpack.c.bf16 %v534_v55, %v534_v55  ;;  %v814_v2 = vpack.c.bf16 %v798_v57, %v798_v57  ;;  %v815_v3 = vpack.c.bf16 %v799_v58, %v799_v58  ;;  %420 = vst.msk [vmem:[#allocation2 + $0xb1] sm:$0xff] %vm318_vm1, %v387_v22  ;;  %v389_v54 = vld [vmem:[%s7322_s23 + $0x78] sm:$0xff] }
  0x8f   : > { %v7383_v51 = vpack.c.b16 %v845_v48, %v844_v47  ;;  %v1008_v4 = vunpack.c.l.b16 %v976_v60  ;;  %v1009_v6 = vunpack.c.l.b16 %v977_v61  ;;  %v581_v7 = vunpack.c.l.b16 %v549_v62  ;;  %v388_v48 = vld [vmem:[%s7322_s23 + $0x70] sm:$0xff]  ;;  %422 = vst.msk [vmem:[#allocation2 + $0xc9] sm:$0xff] %vm318_vm1, %v389_v54 }
  0x90   : > { %v582_v9 = vunpack.c.l.b16 %v550_v1  ;;  %v846_v10 = vunpack.c.l.b16 %v814_v2  ;;  %v847_v11 = vunpack.c.l.b16 %v815_v3  ;;  %v978_v25 = vpack.c.bf16 %v962_v15, %v962_v15  ;;  %421 = vst.msk [vmem:[#allocation2 + $0xc1] sm:$0xff] %vm318_vm1, %v388_v48  ;;  %v6630_v48 = vld [vmem:[%s8880_s1 + $0x10] sm:$0x3] }
  0x91   : > { %v7397_v12 = vpack.c.b16 %v1009_v6, %v1008_v4  ;;  %v979_v26 = vpack.c.bf16 %v963_v16, %v963_v16  ;;  %v551_v27 = vpack.c.bf16 %v535_v17, %v535_v17  ;;  %v552_v28 = vpack.c.bf16 %v536_v18, %v536_v18 }
  0x92   : > { %v7399_v13 = vpack.c.b16 %v582_v9, %v581_v7  ;;  %v7401_v14 = vpack.c.b16 %v847_v11, %v846_v10  ;;  %v816_v29 = vpack.c.bf16 %v800_v20, %v800_v20  ;;  %v817_v30 = vpack.c.bf16 %v801_v21, %v801_v21  ;;  %v964_v44 = vld [vmem:[#allocation2 + $0x90] sm:$0xff] }
  0x93   : > { %v1010_v32 = vunpack.c.l.b16 %v978_v25  ;;  %v1011_v33 = vunpack.c.l.b16 %v979_v26  ;;  %v583_v36 = vunpack.c.l.b16 %v551_v27  ;;  %v584_v38 = vunpack.c.l.b16 %v552_v28  ;;  %v965_v45 = vld [vmem:[#allocation2 + $0x98] sm:$0xff] }
  0x94   : > { %v848_v39 = vunpack.c.l.b16 %v816_v29  ;;  %v849_v40 = vunpack.c.l.b16 %v817_v30  ;;  %v537_v46 = vld [vmem:[#allocation2 + $0x91] sm:$0xff]  ;;  %v538_v47 = vld [vmem:[#allocation2 + $0x99] sm:$0xff]  ;;  %v980_v55 = vpack.c.bf16 %v964_v44, %v964_v44  ;;  %v981_v56 = vpack.c.bf16 %v965_v45, %v965_v45  ;;  %v966_v10 = vld [vmem:[#allocation2 + $0xa8] sm:$0xff] }
  0x95   : > { %v7415_v41 = vpack.c.b16 %v1011_v33, %v1010_v32  ;;  %v7417_v42 = vpack.c.b16 %v584_v38, %v583_v36  ;;  %v802_v52 = vld [vmem:[#allocation2 + $0x92] sm:$0xff]  ;;  %v803_v53 = vld [vmem:[#allocation2 + $0x9a] sm:$0xff]  ;;  %v553_v57 = vpack.c.bf16 %v537_v46, %v537_v46  ;;  %v554_v58 = vpack.c.bf16 %v538_v47, %v538_v47  ;;  %v539_v17 = vld [vmem:[#allocation2 + $0xa9] sm:$0xff] }
  0x96   : > { %v7419_v43 = vpack.c.b16 %v849_v40, %v848_v39  ;;  %v818_v59 = vpack.c.bf16 %v802_v52, %v802_v52  ;;  %v819_v60 = vpack.c.bf16 %v803_v53, %v803_v53  ;;  %v1012_v61 = vunpack.c.l.b16 %v980_v55  ;;  %v967_v16 = vld [vmem:[#allocation2 + $0xb0] sm:$0xff] }
  0x97   : > { %v1013_v62 = vunpack.c.l.b16 %v981_v56  ;;  %v585_v1 = vunpack.c.l.b16 %v553_v57  ;;  %v586_v2 = vunpack.c.l.b16 %v554_v58  ;;  %v540_v18 = vld [vmem:[#allocation2 + $0xb1] sm:$0xff]  ;;  %v982_v26 = vpack.c.bf16 %v966_v10, %v966_v10  ;;  %v968_v52 = vld [vmem:[#allocation2 + $0xc0] sm:$0xff]  ;;  %v969_v53 = vld [vmem:[#allocation2 + $0xc8] sm:$0xff] }
  0x98   : > { %6641 = vmatmul.msk.bf16.gmra.mxu0 %vm318_vm1, %v7363_v24  ;;  %v850_v3 = vunpack.c.l.b16 %v818_v59  ;;  %v851_v4 = vunpack.c.l.b16 %v819_v60  ;;  %v804_v20 = vld [vmem:[#allocation2 + $0xaa] sm:$0xff]  ;;  %v805_v21 = vld [vmem:[#allocation2 + $0xb2] sm:$0xff]  ;;  %v983_v27 = vpack.c.bf16 %v967_v16, %v967_v16  ;;  %v555_v28 = vpack.c.bf16 %v539_v17, %v539_v17 }
  0x99   : > { %6664 = vmatmul.msk.bf16.gmra.mxu3 %vm318_vm1, %v7361_v23  ;;  %6649 = vmatmul.msk.bf16.gmra.mxu1 %vm318_vm1, %v7361_v23  ;;  %v7433_v6 = vpack.c.b16 %v1013_v62, %v1012_v61  ;;  %v7435_v7 = vpack.c.b16 %v586_v2, %v585_v1  ;;  %v556_v29 = vpack.c.bf16 %v540_v18, %v540_v18  ;;  %v1014_v33 = vunpack.c.l.b16 %v982_v26 }
  0x9a   : > { %6657 = vmatmul.msk.bf16.gmra.mxu2 %vm318_vm1, %v7365_v5  ;;  %v7437_v9 = vpack.c.b16 %v851_v4, %v850_v3  ;;  %v750_v15 = vpop.f32.mrf.mxu1  ;;  %v820_v30 = vpack.c.bf16 %v804_v20, %v804_v20  ;;  %v821_v32 = vpack.c.bf16 %v805_v21, %v805_v21  ;;  %v1015_v36 = vunpack.c.l.b16 %v983_v27 }
  0x9b   : > { %v587_v38 = vunpack.c.l.b16 %v555_v28  ;;  %v588_v39 = vunpack.c.l.b16 %v556_v29  ;;  %v7465_v54 = vsel %vm621_vm0, %v6630_v48, 0  ;;  %v984_v55 = vpack.c.bf16 %v968_v52, %v968_v52 }
  0x9c   : > { %v634_v11 = vpop.f32.mrf.mxu0  ;;  %v852_v40 = vunpack.c.l.b16 %v820_v30  ;;  %v853_v44 = vunpack.c.l.b16 %v821_v32  ;;  %v7447_v45 = vpack.c.b16 %v1015_v36, %v1014_v33  ;;  %1881 = vmatpush.bf16.msra.mxu0 %v7465_v54  ;;  %v985_v56 = vpack.c.bf16 %v969_v53, %v969_v53 }
  0x9d   : > { %v751_v19 = vadd.f32 %v750_v15, %v634_v11  ;;  %v7449_v46 = vpack.c.b16 %v588_v39, %v587_v38  ;;  %v1016_v57 = vunpack.c.l.b16 %v984_v55 }
  0x9e   : > { %v7451_v47 = vpack.c.b16 %v853_v44, %v852_v40  ;;  %v1017_v58 = vunpack.c.l.b16 %v985_v56 }
  0xa0   : > { %v7468_v59 = vpack.c.b16 %v1017_v58, %v1016_v57 }
  0xa1   : > { %v898_v22 = vpop.f32.mrf.mxu2 }
  0xa2   : > { %v938_v25 = vadd.f32 %v898_v22, %v751_v19  ;;  %v7483_v61 = vpop.f32.mrf.mxu1 }
  0xa4   : > { %v7480_v60 = vpop.f32.mrf.mxu0 }
  0xa8   : > { %6642 = vmatmul.msk.bf16.gmra.mxu0 %vm318_vm1, %v7381_v50 }
  0xa9   : > { %6665 = vmatmul.msk.bf16.gmra.mxu3 %vm318_vm1, %v7379_v49  ;;  %6650 = vmatmul.msk.bf16.gmra.mxu1 %vm318_vm1, %v7379_v49  ;;  %v7485_v62 = vpop.f32.mrf.mxu2 }
  0xaa   : > { %6658 = vmatmul.msk.bf16.gmra.mxu2 %vm318_vm1, %v7383_v51 }
  0xb8   : > { %6643 = vmatmul.msk.bf16.gmra.mxu0 %vm318_vm1, %v7399_v13 }
  0xb9   : > { %6666 = vmatmul.msk.bf16.gmra.mxu3 %vm318_vm1, %v7397_v12  ;;  %6651 = vmatmul.msk.bf16.gmra.mxu1 %vm318_vm1, %v7397_v12 }
  0xba   : > { %6659 = vmatmul.msk.bf16.gmra.mxu2 %vm318_vm1, %v7401_v14 }
  0xc8   : > { %6644 = vmatmul.msk.bf16.gmra.mxu0 %vm318_vm1, %v7417_v42 }
  0xc9   : > { %6667 = vmatmul.msk.bf16.gmra.mxu3 %vm318_vm1, %v7415_v41  ;;  %6652 = vmatmul.msk.bf16.gmra.mxu1 %vm318_vm1, %v7415_v41 }
  0xca   : > { %6660 = vmatmul.msk.bf16.gmra.mxu2 %vm318_vm1, %v7419_v43 }
  0xd8   : > { %6645 = vmatmul.msk.bf16.gmra.mxu0 %vm318_vm1, %v7435_v7 }
  0xd9   : > { %6668 = vmatmul.msk.bf16.gmra.mxu3 %vm318_vm1, %v7433_v6  ;;  %6653 = vmatmul.msk.bf16.gmra.mxu1 %vm318_vm1, %v7433_v6 }
  0xda   : > { %6661 = vmatmul.msk.bf16.gmra.mxu2 %vm318_vm1, %v7437_v9 }
  0xe8   : > { %6646 = vmatmul.msk.bf16.gmra.mxu0 %vm318_vm1, %v7449_v46 }
  0xe9   : > { %6669 = vmatmul.msk.bf16.gmra.mxu3 %vm318_vm1, %v7447_v45  ;;  %6654 = vmatmul.msk.bf16.gmra.mxu1 %vm318_vm1, %v7447_v45 }
  0xea   : > { %6662 = vmatmul.msk.bf16.gmra.mxu2 %vm318_vm1, %v7451_v47 }
  0xf8   : > { %6671 = vmatmul.msk.bf16.vlgmr.msrb.gmra.mxu0 %vm318_vm1, %v7346_v63 }
  0xf9   : > { %6670 = vmatmul.msk.bf16.gmra.mxu3 %vm318_vm1, %v7468_v59  ;;  %6679 = vmatmul.msk.bf16.vlgmr.msrb.gmra.mxu1 %vm318_vm1, %v7348_v0 }
  0xfa   : > { %6687 = vmatmul.msk.bf16.vlgmr.msrb.gmra.mxu2 %vm318_vm1, %v7361_v23  ;;  %2566 = vmatpush.bf16.msrb.mxu0 %v7066_v8 }
  0xfb   : > { %2888 = vmatpush.bf16.msrb.mxu2 %v7288_v37  ;;  %2727 = vmatpush.bf16.msrb.mxu1 %v7275_v34 }
 0x105   : > { %v639_v1 = vpop.f32.mrf.mxu0 }
 0x106   : > { %v755_v63 = vpop.f32.mrf.mxu1 }
 0x107   : > { %v756_v2 = vadd.f32 %v755_v63, %v639_v1 }
 0x108   : > { %6672 = vmatmul.msk.bf16.gmra.mxu0 %vm318_vm1, %v7363_v24 }
 0x109   : > { %6695 = vmatmul.msk.bf16.vlgmr.msrb.gmra.mxu3 %vm318_vm1, %v7363_v24  ;;  %6680 = vmatmul.msk.bf16.gmra.mxu1 %vm318_vm1, %v7365_v5 }
 0x10a   : > { %6688 = vmatmul.msk.bf16.gmra.mxu2 %vm318_vm1, %v7379_v49  ;;  %3050 = vmatpush.bf16.msrb.mxu3 %v7226_v31 }
 0x10c   : > { %v1062_v8 = vpop.f32.mrf.mxu3 }
 0x10d   : > { %v7496_v34 = vadd.f32 %v1062_v8, %v938_v25  ;;  %v903_v37 = vpop.f32.mrf.mxu2  ;;  %v641_v23 = vpop.f32.mrf.mxu0  ;;  %v391_v8 = vld [vmem:[%s7322_s23 + $0x88] sm:$0xff] }
 0x10e   : > { %v940_v0 = vadd.f32 %v903_v37, %v756_v2  ;;  %v757_v3 = vpop.f32.mrf.mxu1  ;;  %v390_v2 = vld [vmem:[%s7322_s23 + $0x80] sm:$0xff]  ;;  %424 = vst.msk [vmem:[#allocation2 + $0xe1] sm:$0xff] %vm318_vm1, %v391_v8 }
 0x10f   : > { %v758_v4 = vadd.f32 %v757_v3, %v641_v23  ;;  %423 = vst.msk [vmem:[#allocation2 + $0xd9] sm:$0xff] %vm318_vm1, %v390_v2 }
 0x114   : > { %v7498_v10 = vpop.f32.mrf.mxu3 }
 0x115   : > { %v905_v11 = vpop.f32.mrf.mxu2  ;;  %v644_v15 = vpop.f32.mrf.mxu0 }
 0x116   : > { %v941_v24 = vadd.f32 %v905_v11, %v758_v4  ;;  %v760_v16 = vpop.f32.mrf.mxu1 }
 0x117   : > { %v761_v5 = vadd.f32 %v760_v16, %v644_v15 }
 0x118   : > { %6673 = vmatmul.msk.bf16.gmra.mxu0 %vm318_vm1, %v7381_v50 }
 0x119   : > { %6696 = vmatmul.msk.bf16.gmra.mxu3 %vm318_vm1, %v7381_v50  ;;  %6681 = vmatmul.msk.bf16.gmra.mxu1 %vm318_vm1, %v7383_v51 }
 0x11a   : > { %6689 = vmatmul.msk.bf16.gmra.mxu2 %vm318_vm1, %v7397_v12 }
 0x11c   : > { %v1067_v31 = vpop.f32.mrf.mxu3 }
 0x11d   : > { %v7508_v49 = vadd.f32 %v1067_v31, %v940_v0  ;;  %v908_v17 = vpop.f32.mrf.mxu2  ;;  %v646_v19 = vpop.f32.mrf.mxu0 }
 0x11e   : > { %v942_v18 = vadd.f32 %v908_v17, %v761_v5  ;;  %v762_v20 = vpop.f32.mrf.mxu1 }
 0x11f   : > { %v763_v21 = vadd.f32 %v762_v20, %v646_v19 }
 0x124   : > { %v1069_v22 = vpop.f32.mrf.mxu3 }
 0x125   : > { %v7510_v25 = vadd.f32 %v1069_v22, %v941_v24  ;;  %v910_v26 = vpop.f32.mrf.mxu2  ;;  %v649_v50 = vpop.f32.mrf.mxu0  ;;  %v1296_v22 = vld [vmem:[#allocation2 + $0xc2] sm:$0xff] }
 0x126   : > { %v943_v27 = vadd.f32 %v910_v26, %v763_v21  ;;  %v765_v28 = vpop.f32.mrf.mxu1  ;;  %v1297_v26 = vld [vmem:[#allocation2 + $0xca] sm:$0xff] }
 0x127   : > { %v766_v29 = vadd.f32 %v765_v28, %v649_v50  ;;  %v1462_v50 = vld [vmem:[#allocation2 + $0xe0] sm:$0xff] }
 0x128   : > { %6674 = vmatmul.msk.bf16.gmra.mxu0 %vm318_vm1, %v7399_v13 }
 0x129   : > { %6697 = vmatmul.msk.bf16.gmra.mxu3 %vm318_vm1, %v7399_v13  ;;  %6682 = vmatmul.msk.bf16.gmra.mxu1 %vm318_vm1, %v7401_v14 }
 0x12a   : > { %6690 = vmatmul.msk.bf16.gmra.mxu2 %vm318_vm1, %v7415_v41 }
 0x12c   : > { %v1072_v51 = vpop.f32.mrf.mxu3 }
 0x12d   : > { %v7520_v12 = vadd.f32 %v1072_v51, %v942_v18  ;;  %v913_v30 = vpop.f32.mrf.mxu2  ;;  %v651_v33 = vpop.f32.mrf.mxu0 }
 0x12e   : > { %v944_v32 = vadd.f32 %v913_v30, %v766_v29  ;;  %v767_v36 = vpop.f32.mrf.mxu1 }
 0x12f   : > { %v768_v38 = vadd.f32 %v767_v36, %v651_v33  ;;  %v1312_v33 = vpack.c.bf16 %v1296_v22, %v1296_v22 }
 0x134   : > { %v1074_v39 = vpop.f32.mrf.mxu3 }
 0x135   : > { %v7522_v40 = vadd.f32 %v1074_v39, %v943_v27  ;;  %v915_v44 = vpop.f32.mrf.mxu2  ;;  %v654_v13 = vpop.f32.mrf.mxu0  ;;  %v1461_v27 = vld [vmem:[#allocation2 + $0xd8] sm:$0xff]  ;;  %v1478_v39 = vpack.c.bf16 %v1462_v50, %v1462_v50 }
 0x136   : > { %v945_v48 = vadd.f32 %v915_v44, %v768_v38  ;;  %v770_v14 = vpop.f32.mrf.mxu1  ;;  %v1313_v38 = vpack.c.bf16 %v1297_v26, %v1297_v26 }
 0x137   : > { %v771_v52 = vadd.f32 %v770_v14, %v654_v13 }
 0x138   : > { %6675 = vmatmul.msk.bf16.gmra.mxu0 %vm318_vm1, %v7417_v42 }
 0x139   : > { %6698 = vmatmul.msk.bf16.gmra.mxu3 %vm318_vm1, %v7417_v42  ;;  %6683 = vmatmul.msk.bf16.gmra.mxu1 %vm318_vm1, %v7419_v43 }
 0x13a   : > { %6691 = vmatmul.msk.bf16.gmra.mxu2 %vm318_vm1, %v7433_v6 }
 0x13c   : > { %v1077_v41 = vpop.f32.mrf.mxu3 }
 0x13d   : > { %v7532_v53 = vadd.f32 %v1077_v41, %v944_v32  ;;  %v918_v55 = vpop.f32.mrf.mxu2  ;;  %v656_v57 = vpop.f32.mrf.mxu0  ;;  %v1345_v41 = vunpack.c.l.b16 %v1313_v38 }
 0x13e   : > { %v946_v56 = vadd.f32 %v918_v55, %v771_v52  ;;  %v772_v58 = vpop.f32.mrf.mxu1  ;;  %v1344_v52 = vunpack.c.l.b16 %v1312_v33 }
 0x13f   : > { %v773_v1 = vadd.f32 %v772_v58, %v656_v57 }
 0x144   : > { %v1079_v63 = vpop.f32.mrf.mxu3 }
 0x145   : > { %v7536_v37 = vadd.f32 %v1079_v63, %v945_v48  ;;  %v920_v42 = vpop.f32.mrf.mxu2  ;;  %v659_v0 = vpop.f32.mrf.mxu0 }
 0x146   : > { %v947_v43 = vadd.f32 %v920_v42, %v773_v1  ;;  %v775_v6 = vpop.f32.mrf.mxu1  ;;  %v7564_v42 = vpack.c.b16 %v1345_v41, %v1344_v52  ;;  %v1778_v52 = vld [vmem:[#allocation2 + $0x52] sm:$0xff] }
 0x147   : > { %v776_v23 = vadd.f32 %v775_v6, %v659_v0 }
 0x148   : > { %6676 = vmatmul.msk.bf16.gmra.mxu0 %vm318_vm1, %v7435_v7 }
 0x149   : > { %6699 = vmatmul.msk.bf16.gmra.mxu3 %vm318_vm1, %v7435_v7  ;;  %6684 = vmatmul.msk.bf16.gmra.mxu1 %vm318_vm1, %v7437_v9  ;;  %v1623_v9 = vld [vmem:[#allocation2 + $0xc1] sm:$0xff] }
 0x14a   : > { %6692 = vmatmul.msk.bf16.gmra.mxu2 %vm318_vm1, %v7447_v45  ;;  %v1624_v45 = vld [vmem:[#allocation2 + $0xc9] sm:$0xff]  ;;  %v1639_v30 = vpack.c.bf16 %v1623_v9, %v1623_v9 }
 0x14b   : > { %v1640_v32 = vpack.c.bf16 %v1624_v45, %v1624_v45 }
 0x14c   : > { %v1082_v3 = vpop.f32.mrf.mxu3  ;;  %v1671_v13 = vunpack.c.l.b16 %v1639_v30  ;;  %v393_v30 = vld [vmem:[%s7322_s23 + $0x98] sm:$0xff] }
 0x14d   : > { %v7548_v4 = vadd.f32 %v1082_v3, %v946_v56  ;;  %v923_v11 = vpop.f32.mrf.mxu2  ;;  %v661_v15 = vpop.f32.mrf.mxu0  ;;  %v1672_v14 = vunpack.c.l.b16 %v1640_v32  ;;  %v1510_v56 = vunpack.c.l.b16 %v1478_v39  ;;  %v1626_v3 = vld [vmem:[#allocation2 + $0xe1] sm:$0xff]  ;;  %426 = vst.msk [vmem:[#allocation2 + $0xf9] sm:$0xff] %vm318_vm1, %v393_v30 }
 0x14e   : > { %v948_v24 = vadd.f32 %v923_v11, %v776_v23  ;;  %v777_v16 = vpop.f32.mrf.mxu1  ;;  %v1625_v23 = vld [vmem:[#allocation2 + $0xd9] sm:$0xff] }
 0x14f   : > { %v778_v5 = vadd.f32 %v777_v16, %v661_v15  ;;  %v1681_v1 = vpack.c.b16 %v1672_v14, %v1671_v13  ;;  %v1775_v11 = vld [vmem:[#allocation2 + $0x32] sm:$0xff]  ;;  %v1641_v16 = vpack.c.bf16 %v1625_v23, %v1625_v23  ;;  %v1777_v14 = vld [vmem:[#allocation2 + $0x4a] sm:$0xff] }
 0x150   : > { %v395_v23 = vld [vmem:[%s7322_s23 + $0xa8] sm:$0xff] }
 0x151   : > { %v1673_v22 = vunpack.c.l.b16 %v1641_v16  ;;  %428 = vst.msk [vmem:[#allocation2 + $0x111] sm:$0xff] %vm318_vm1, %v395_v23 }
 0x154   : > { %v1084_v31 = vpop.f32.mrf.mxu3 }
 0x155   : > { %v7550_v17 = vadd.f32 %v1084_v31, %v947_v43  ;;  %v925_v18 = vpop.f32.mrf.mxu2  ;;  %v664_v7 = vpop.f32.mrf.mxu0 }
 0x156   : > { %v949_v19 = vadd.f32 %v925_v18, %v778_v5  ;;  %v780_v20 = vpop.f32.mrf.mxu1  ;;  %v1642_v18 = vpack.c.bf16 %v1626_v3, %v1626_v3 }
 0x157   : > { %v781_v21 = vadd.f32 %v780_v20, %v664_v7 }
 0x158   : > { %6677 = vmatmul.msk.bf16.gmra.mxu0 %vm318_vm1, %v7449_v46  ;;  %v1674_v26 = vunpack.c.l.b16 %v1642_v18  ;;  %v2303_v18 = vld [vmem:[#allocation2 + $0xda] sm:$0xff] }
 0x159   : > { %6700 = vmatmul.msk.bf16.gmra.mxu3 %vm318_vm1, %v7449_v46  ;;  %6685 = vmatmul.msk.bf16.gmra.mxu1 %vm318_vm1, %v7451_v47  ;;  %v1477_v47 = vpack.c.bf16 %v1461_v27, %v1461_v27 }
 0x15a   : > { %6693 = vmatmul.msk.bf16.gmra.mxu2 %vm318_vm1, %v7468_v59  ;;  %v7580_v33 = vpack.c.b16 %v1674_v26, %v1673_v22  ;;  %v2319_v26 = vpack.c.bf16 %v2303_v18, %v2303_v18  ;;  %v1782_v18 = vld [vmem:[#allocation2 + $0x82] sm:$0xff] }
 0x15b   : > { %v1509_v55 = vunpack.c.l.b16 %v1477_v47 }
 0x15c   : > { %v1087_v28 = vpop.f32.mrf.mxu3 }
 0x15d   : > { %v7560_v29 = vadd.f32 %v1087_v28, %v948_v24  ;;  %v928_v51 = vpop.f32.mrf.mxu2  ;;  %v666_v36 = vpop.f32.mrf.mxu0  ;;  %v7566_v43 = vpack.c.b16 %v1510_v56, %v1509_v55  ;;  %v1776_v24 = vld [vmem:[#allocation2 + $0x3a] sm:$0xff]  ;;  %v1793_v56 = vpack.c.bf16 %v1777_v14, %v1777_v14  ;;  %v2351_v14 = vunpack.c.l.b16 %v2319_v26 }
 0x15e   : > { %v950_v46 = vadd.f32 %v928_v51, %v781_v21  ;;  %v782_v44 = vpop.f32.mrf.mxu1  ;;  %v1792_v7 = vpack.c.bf16 %v1776_v24, %v1776_v24  ;;  %v392_v51 = vld [vmem:[%s7322_s23 + $0x90] sm:$0xff] }
 0x15f   : > { %v783_v48 = vadd.f32 %v782_v44, %v666_v36  ;;  %425 = vst.msk [vmem:[#allocation2 + $0xf1] sm:$0xff] %vm318_vm1, %v392_v51 }
 0x160   : > { %v1824_v50 = vunpack.c.l.b16 %v1792_v7  ;;  %v1779_v7 = vld [vmem:[#allocation2 + $0x62] sm:$0xff] }
 0x161   : > { %v1795_v51 = vpack.c.bf16 %v1779_v7, %v1779_v7  ;;  %v2050_v7 = vld [vmem:[#allocation2 + $0x111] sm:$0xff] }
 0x164   : > { %v1089_v57 = vpop.f32.mrf.mxu3 }
 0x165   : > { %v7562_v58 = vadd.f32 %v1089_v57, %v949_v19  ;;  %v930_v63 = vpop.f32.mrf.mxu2  ;;  %v669_v8 = vpop.f32.mrf.mxu0  ;;  %v1791_v19 = vpack.c.bf16 %v1775_v11, %v1775_v11  ;;  %v1794_v57 = vpack.c.bf16 %v1778_v52, %v1778_v52 }
 0x166   : > { %v951_v2 = vadd.f32 %v930_v63, %v783_v48  ;;  %v785_v0 = vpop.f32.mrf.mxu1  ;;  %v753_v48 = vadd.f32 %v7483_v61, %v7480_v60 }
 0x167   : > { %v786_v6 = vadd.f32 %v785_v0, %v669_v8  ;;  %v1823_v27 = vunpack.c.l.b16 %v1791_v19  ;;  %v1826_v0 = vunpack.c.l.b16 %v1794_v57  ;;  %v2304_v19 = vld [vmem:[#allocation2 + $0xe2] sm:$0xff] }
 0x168   : > { %6678 = vmatmul.msk.bf16.gmra.mxu0 %vm318_vm1, %v1681_v1  ;;  %v939_v41 = vadd.f32 %v7485_v62, %v753_v48  ;;  %v1825_v62 = vunpack.c.l.b16 %v1793_v56 }
 0x169   : > { %6701 = vmatmul.msk.bf16.gmra.mxu3 %vm318_vm1, %v1681_v1  ;;  %6686 = vmatmul.msk.bf16.gmra.mxu1 %vm318_vm1, %v7564_v42  ;;  %v1839_v36 = vpack.c.b16 %v1824_v50, %v1823_v27  ;;  %v2320_v27 = vpack.c.bf16 %v2304_v19, %v2304_v19 }
 0x16a   : > { %6694 = vmatmul.msk.bf16.gmra.mxu2 %vm318_vm1, %v7566_v43  ;;  %v1103_v61 = vadd.f32 %v7498_v10, %v939_v41  ;;  %v1840_v11 = vpack.c.b16 %v1826_v0, %v1825_v62 }
 0x16b   : > { %v2352_v41 = vunpack.c.l.b16 %v2320_v27  ;;  %v1798_v27 = vpack.c.bf16 %v1782_v18, %v1782_v18  ;;  %v1784_v18 = vld [vmem:[#allocation2 + $0x9a] sm:$0xff] }
 0x16c   : > { %v1092_v15 = vpop.f32.mrf.mxu3 }
 0x16d   : > { %v7574_v5 = vadd.f32 %v1092_v15, %v950_v46  ;;  %v933_v31 = vpop.f32.mrf.mxu2  ;;  %v671_v21 = vpop.f32.mrf.mxu0  ;;  %v7620_v62 = vpack.c.b16 %v2352_v41, %v2351_v14 }
 0x16e   : > { %v952_v20 = vadd.f32 %v933_v31, %v786_v6  ;;  %v787_v9 = vpop.f32.mrf.mxu1  ;;  %v394_v6 = vld [vmem:[%s7322_s23 + $0xa0] sm:$0xff] }
 0x16f   : > { %v788_v45 = vadd.f32 %v787_v9, %v671_v21  ;;  %427 = vst.msk [vmem:[#allocation2 + $0x109] sm:$0xff] %vm318_vm1, %v394_v6  ;;  %v2047_v21 = vld [vmem:[#allocation2 + $0xf1] sm:$0xff]  ;;  %v2048_v9 = vld [vmem:[#allocation2 + $0xf9] sm:$0xff] }
 0x174   : > { %v1094_v28 = vpop.f32.mrf.mxu3 }
 0x175   : > { %v7578_v32 = vadd.f32 %v1094_v28, %v951_v2  ;;  %v935_v46 = vpop.f32.mrf.mxu2  ;;  %v1226_v47 = vpop.f32.mrf.mxu0 }
 0x176   : > { %v953_v38 = vadd.f32 %v935_v46, %v788_v45  ;;  %v1266_v39 = vadd.f32 %v1226_v47, %v7496_v34  ;;  %v1390_v44 = vpop.f32.mrf.mxu1  ;;  %v2016_v45 = vld [vmem:[#allocation2 + $0xf8] sm:$0xff]  ;;  %v2063_v46 = vpack.c.bf16 %v2047_v21, %v2047_v21  ;;  %v2064_v47 = vpack.c.bf16 %v2048_v9, %v2048_v9  ;;  %v2049_v19 = vld [vmem:[#allocation2 + $0x109] sm:$0xff] }
 0x178   : > { %v1430_v13 = vadd.f32 %v1390_v44, %v1266_v39  ;;  %6703 = vmatmul.msk.bf16.vlgmr.msra.gmra.mxu0 %vm318_vm1, %v1839_v36  ;;  %v2032_v44 = vpack.c.bf16 %v2016_v45, %v2016_v45  ;;  %v2096_v56 = vunpack.c.l.b16 %v2064_v47 }
 0x179   : > { %6702 = vmatmul.msk.bf16.gmra.mxu3 %vm318_vm1, %v7580_v33  ;;  %6711 = vmatmul.msk.bf16.vlgmr.msra.gmra.mxu1 %vm318_vm1, %v1681_v1 }
 0x17a   : > { %6719 = vmatmul.msk.bf16.vlgmr.msra.gmra.mxu2 %vm318_vm1, %v7468_v59  ;;  %3211 = vmatpush.bf16.msra.mxu0 %v7278_v35 }
 0x17b   : > { %3372 = vmatpush.bf16.msra.mxu1 %v7465_v54 }
 0x17c   : > { %v1097_v60 = vpop.f32.mrf.mxu3 }
 0x17d   : > { %v7597_v34 = vadd.f32 %v1097_v60, %v952_v20  ;;  %v1555_v55 = vpop.f32.mrf.mxu2  ;;  %v1228_v59 = vpop.f32.mrf.mxu0  ;;  %v1780_v20 = vld [vmem:[#allocation2 + $0x6a] sm:$0xff]  ;;  %v1827_v60 = vunpack.c.l.b16 %v1795_v51 }
 0x17e   : > { %v1595_v1 = vadd.f32 %v1555_v55, %v1430_v13  ;;  %v1267_v63 = vadd.f32 %v1228_v59, %v1103_v61  ;;  %v1392_v2 = vpop.f32.mrf.mxu1  ;;  %v1796_v30 = vpack.c.bf16 %v1780_v20, %v1780_v20  ;;  %v2095_v55 = vunpack.c.l.b16 %v2063_v46  ;;  %v2018_v20 = vld [vmem:[#allocation2 + $0x110] sm:$0xff] }
 0x17f   : > { %v2066_v46 = vpack.c.bf16 %v2050_v7, %v2050_v7  ;;  %v2034_v47 = vpack.c.bf16 %v2018_v20, %v2018_v20 }
 0x180   : > { %v1431_v8 = vadd.f32 %v1392_v2, %v1267_v63  ;;  %v1828_v61 = vunpack.c.l.b16 %v1796_v30  ;;  %v396_v63 = vld [vmem:[%s7322_s23 + $0xb0] sm:$0xff]  ;;  %v397_v2 = vld [vmem:[%s7322_s23 + $0xb8] sm:$0xff]  ;;  %v7623_v23 = vpack.c.b16 %v2096_v56, %v2095_v55 }
 0x181   : > { %429 = vst.msk [vmem:[#allocation2 + $0x121] sm:$0xff] %vm318_vm1, %v396_v63  ;;  %v2211_v55 = vunpack.c.l.b16 %v2034_v47 }
 0x182   : > { %430 = vst.msk [vmem:[#allocation2 + $0x129] sm:$0xff] %vm318_vm1, %v397_v2 }
 0x184   : > { %v1099_v35 = vpop.f32.mrf.mxu3 }
 0x185   : > { %v7601_v54 = vadd.f32 %v1099_v35, %v953_v38  ;;  %v1557_v3 = vpop.f32.mrf.mxu2  ;;  %v1231_v24 = vpop.f32.mrf.mxu0  ;;  %v1841_v35 = vpack.c.b16 %v1828_v61, %v1827_v60  ;;  %v2098_v60 = vunpack.c.l.b16 %v2066_v46 }
 0x186   : > { %v1596_v10 = vadd.f32 %v1557_v3, %v1431_v8  ;;  %v1268_v15 = vadd.f32 %v1231_v24, %v7508_v49  ;;  %v1395_v16 = vpop.f32.mrf.mxu1  ;;  %v2015_v49 = vld [vmem:[#allocation2 + $0xf0] sm:$0xff] }
 0x187   : > { %v2031_v39 = vpack.c.bf16 %v2015_v49, %v2015_v49 }
 0x188   : > { %v1432_v31 = vadd.f32 %v1395_v16, %v1268_v15  ;;  %6704 = vmatmul.msk.bf16.gmra.mxu0 %vm318_vm1, %v1840_v11  ;;  %v2305_v15 = vld [vmem:[#allocation2 + $0xf2] sm:$0xff]  ;;  %v2306_v16 = vld [vmem:[#allocation2 + $0xfa] sm:$0xff] }
 0x189   : > { %6727 = vmatmul.msk.bf16.vlgmr.msra.gmra.mxu3 %vm318_vm1, %v7564_v42  ;;  %6712 = vmatmul.msk.bf16.gmra.mxu1 %vm318_vm1, %v7580_v33  ;;  %v2208_v57 = vunpack.c.l.b16 %v2031_v39  ;;  %v2321_v9 = vpack.c.bf16 %v2305_v15, %v2305_v15  ;;  %v2322_v49 = vpack.c.bf16 %v2306_v16, %v2306_v16  ;;  %v2307_v15 = vld [vmem:[#allocation2 + $0x10a] sm:$0xff]  ;;  %v2308_v16 = vld [vmem:[#allocation2 + $0x112] sm:$0xff] }
 0x18a   : > { %6720 = vmatmul.msk.bf16.gmra.mxu2 %vm318_vm1, %v7566_v43  ;;  %v2052_v7 = vld [vmem:[#allocation2 + $0x129] sm:$0xff] }
 0x18b   : > { %v2354_v14 = vunpack.c.l.b16 %v2322_v49 }
 0x18c   : > { %v1719_v22 = vpop.f32.mrf.mxu3 }
 0x18d   : > { %v7613_v50 = vadd.f32 %v1719_v22, %v1595_v1  ;;  %v1560_v28 = vpop.f32.mrf.mxu2  ;;  %v1233_v38 = vpop.f32.mrf.mxu0  ;;  %v2209_v1 = vunpack.c.l.b16 %v2032_v44 }
 0x18e   : > { %v1597_v36 = vadd.f32 %v1560_v28, %v1432_v31  ;;  %v1269_v48 = vadd.f32 %v1233_v38, %v7510_v25  ;;  %v1397_v13 = vpop.f32.mrf.mxu1  ;;  %v1781_v31 = vld [vmem:[#allocation2 + $0x7a] sm:$0xff]  ;;  %v2065_v28 = vpack.c.bf16 %v2049_v19, %v2049_v19 }
 0x18f   : > { %v7625_v3 = vpack.c.b16 %v2209_v1, %v2208_v57  ;;  %v1797_v26 = vpack.c.bf16 %v1781_v31, %v1781_v31  ;;  %v398_v57 = vld [vmem:[%s7322_s23 + $0xc0] sm:$0xff]  ;;  %v399_v1 = vld [vmem:[%s7322_s23 + $0xc8] sm:$0xff]  ;;  %v1783_v31 = vld [vmem:[#allocation2 + $0x92] sm:$0xff] }
 0x190   : > { %v1433_v52 = vadd.f32 %v1397_v13, %v1269_v48  ;;  %v2353_v48 = vunpack.c.l.b16 %v2321_v9  ;;  %v2097_v41 = vunpack.c.l.b16 %v2065_v28  ;;  %431 = vst.msk [vmem:[#allocation2 + $0x139] sm:$0xff] %vm318_vm1, %v398_v57  ;;  %v2051_v19 = vld [vmem:[#allocation2 + $0x121] sm:$0xff]  ;;  %v2324_v9 = vpack.c.bf16 %v2308_v16, %v2308_v16  ;;  %v400_v57 = vld [vmem:[%s7322_s23 + $0xd0] sm:$0xff] }
 0x191   : > { %432 = vst.msk [vmem:[#allocation2 + $0x141] sm:$0xff] %vm318_vm1, %v399_v1  ;;  %v2067_v28 = vpack.c.bf16 %v2051_v19, %v2051_v19  ;;  %v401_v1 = vld [vmem:[%s7322_s23 + $0xd8] sm:$0xff]  ;;  %v2310_v19 = vld [vmem:[#allocation2 + $0x12a] sm:$0xff] }
 0x192   : > { %v7643_v63 = vpack.c.b16 %v2354_v14, %v2353_v48  ;;  %433 = vst.msk [vmem:[#allocation2 + $0x151] sm:$0xff] %vm318_vm1, %v400_v57 }
 0x193   : > { %434 = vst.msk [vmem:[#allocation2 + $0x159] sm:$0xff] %vm318_vm1, %v401_v1 }
 0x194   : > { %v1721_v59 = vpop.f32.mrf.mxu3 }
 0x195   : > { %v7618_v8 = vadd.f32 %v1721_v59, %v1596_v10  ;;  %v1562_v0 = vpop.f32.mrf.mxu2  ;;  %v1236_v6 = vpop.f32.mrf.mxu0 }
 0x196   : > { %v1598_v25 = vadd.f32 %v1562_v0, %v1433_v52  ;;  %v1270_v11 = vadd.f32 %v1236_v6, %v7520_v12  ;;  %v1400_v24 = vpop.f32.mrf.mxu1  ;;  %v2017_v12 = vld [vmem:[#allocation2 + $0x108] sm:$0xff]  ;;  %v1829_v52 = vunpack.c.l.b16 %v1797_v26  ;;  %v7646_v6 = vpack.c.b16 %v2098_v60, %v2097_v41 }
 0x197   : > { %v2033_v38 = vpack.c.bf16 %v2017_v12, %v2017_v12  ;;  %v2020_v12 = vld [vmem:[#allocation2 + $0x128] sm:$0xff]  ;;  %v1799_v26 = vpack.c.bf16 %v1783_v31, %v1783_v31  ;;  %v2099_v41 = vunpack.c.l.b16 %v2067_v28 }
 0x198   : > { %v1434_v10 = vadd.f32 %v1400_v24, %v1270_v11  ;;  %6705 = vmatmul.msk.bf16.gmra.mxu0 %vm318_vm1, %v1841_v35 }
 0x199   : > { %6728 = vmatmul.msk.bf16.gmra.mxu3 %vm318_vm1, %v7620_v62  ;;  %6713 = vmatmul.msk.bf16.gmra.mxu1 %vm318_vm1, %v7623_v23  ;;  %v2210_v61 = vunpack.c.l.b16 %v2033_v38  ;;  %v2068_v38 = vpack.c.bf16 %v2052_v7, %v2052_v7  ;;  %v1785_v7 = vld [vmem:[#allocation2 + $0xaa] sm:$0xff] }
 0x19a   : > { %6721 = vmatmul.msk.bf16.gmra.mxu2 %vm318_vm1, %v7625_v3 }
 0x19b   : > { %v7648_v11 = vpack.c.b16 %v2211_v55, %v2210_v61  ;;  %v2100_v60 = vunpack.c.l.b16 %v2068_v38 }
 0x19c   : > { %v1724_v21 = vpop.f32.mrf.mxu3 }
 0x19d   : > { %v7636_v45 = vadd.f32 %v1724_v21, %v1597_v36  ;;  %v1565_v22 = vpop.f32.mrf.mxu2  ;;  %v1238_v30 = vpop.f32.mrf.mxu0  ;;  %v1830_v36 = vunpack.c.l.b16 %v1798_v27  ;;  %v2323_v21 = vpack.c.bf16 %v2307_v15, %v2307_v15  ;;  %v1800_v27 = vpack.c.bf16 %v1784_v18, %v1784_v18  ;;  %v2309_v18 = vld [vmem:[#allocation2 + $0x122] sm:$0xff] }
 0x19e   : > { %v1599_v51 = vadd.f32 %v1565_v22, %v1434_v10  ;;  %v1271_v39 = vadd.f32 %v1238_v30, %v7522_v40  ;;  %v1402_v44 = vpop.f32.mrf.mxu1 }
 0x19f   : > { %v1842_v0 = vpack.c.b16 %v1830_v36, %v1829_v52  ;;  %v2356_v52 = vunpack.c.l.b16 %v2324_v9  ;;  %v1831_v36 = vunpack.c.l.b16 %v1799_v26  ;;  %v2326_v26 = vpack.c.bf16 %v2310_v19, %v2310_v19 }
 0x1a0   : > { %v1435_v13 = vadd.f32 %v1402_v44, %v1271_v39  ;;  %v2036_v39 = vpack.c.bf16 %v2020_v12, %v2020_v12  ;;  %v2053_v12 = vld [vmem:[#allocation2 + $0x139] sm:$0xff] }
 0x1a2   : > { %v2213_v55 = vunpack.c.l.b16 %v2036_v39 }
 0x1a4   : > { %v1726_v56 = vpop.f32.mrf.mxu3 }
 0x1a5   : > { %v7641_v59 = vadd.f32 %v1726_v56, %v1598_v25  ;;  %v1567_v2 = vpop.f32.mrf.mxu2  ;;  %v1241_v35 = vpop.f32.mrf.mxu0 }
 0x1a6   : > { %v1600_v40 = vadd.f32 %v1567_v2, %v1435_v13  ;;  %v1272_v24 = vadd.f32 %v1241_v35, %v7532_v53  ;;  %v1405_v10 = vpop.f32.mrf.mxu1  ;;  %v2019_v53 = vld [vmem:[#allocation2 + $0x120] sm:$0xff]  ;;  %v2355_v13 = vunpack.c.l.b16 %v2323_v21 }
 0x1a7   : > { %v2035_v47 = vpack.c.bf16 %v2019_v53, %v2019_v53  ;;  %v1786_v53 = vld [vmem:[#allocation2 + $0xb2] sm:$0xff]  ;;  %v2022_v21 = vld [vmem:[#allocation2 + $0x140] sm:$0xff] }
 0x1a8   : > { %v1436_v25 = vadd.f32 %v1405_v10, %v1272_v24  ;;  %6706 = vmatmul.msk.bf16.gmra.mxu0 %vm318_vm1, %v1842_v0  ;;  %v7666_v0 = vpack.c.b16 %v2356_v52, %v2355_v13  ;;  %v1802_v38 = vpack.c.bf16 %v1786_v53, %v1786_v53 }
 0x1a9   : > { %6729 = vmatmul.msk.bf16.gmra.mxu3 %vm318_vm1, %v7643_v63  ;;  %6714 = vmatmul.msk.bf16.gmra.mxu1 %vm318_vm1, %v7646_v6  ;;  %v2212_v61 = vunpack.c.l.b16 %v2035_v47  ;;  %v2069_v47 = vpack.c.bf16 %v2053_v12, %v2053_v12 }
 0x1aa   : > { %6722 = vmatmul.msk.bf16.gmra.mxu2 %vm318_vm1, %v7648_v11 }
 0x1ab   : > { %v7671_v15 = vpack.c.b16 %v2213_v55, %v2212_v61  ;;  %v2101_v55 = vunpack.c.l.b16 %v2069_v47 }
 0x1ac   : > { %v1729_v20 = vpop.f32.mrf.mxu3 }
 0x1ad   : > { %v7659_v49 = vadd.f32 %v1729_v20, %v1599_v51  ;;  %v1570_v22 = vpop.f32.mrf.mxu2  ;;  %v1243_v46 = vpop.f32.mrf.mxu0  ;;  %v1832_v51 = vunpack.c.l.b16 %v1800_v27  ;;  %v2054_v20 = vld [vmem:[#allocation2 + $0x141] sm:$0xff] }
 0x1ae   : > { %v1601_v30 = vadd.f32 %v1570_v22, %v1436_v25  ;;  %v1273_v44 = vadd.f32 %v1243_v46, %v7536_v37  ;;  %v1407_v48 = vpop.f32.mrf.mxu1  ;;  %v7669_v25 = vpack.c.b16 %v2100_v60, %v2099_v41  ;;  %v2325_v22 = vpack.c.bf16 %v2309_v18, %v2309_v18 }
 0x1af   : > { %v1843_v24 = vpack.c.b16 %v1832_v51, %v1831_v36  ;;  %v1801_v46 = vpack.c.bf16 %v1785_v7, %v1785_v7  ;;  %v2358_v60 = vunpack.c.l.b16 %v2326_v26  ;;  %v2023_v26 = vld [vmem:[#allocation2 + $0x150] sm:$0xff] }
 0x1b0   : > { %v1437_v14 = vadd.f32 %v1407_v48, %v1273_v44  ;;  %v2070_v48 = vpack.c.bf16 %v2054_v20, %v2054_v20  ;;  %v2357_v51 = vunpack.c.l.b16 %v2325_v22  ;;  %v2056_v22 = vld [vmem:[#allocation2 + $0x159] sm:$0xff] }
 0x1b1   : > { %v1833_v61 = vunpack.c.l.b16 %v1801_v46 }
 0x1b4   : > { %v1731_v56 = vpop.f32.mrf.mxu3 }
 0x1b5   : > { %v7664_v2 = vadd.f32 %v1731_v56, %v1600_v40  ;;  %v1572_v35 = vpop.f32.mrf.mxu2  ;;  %v1246_v10 = vpop.f32.mrf.mxu0  ;;  %v2102_v56 = vunpack.c.l.b16 %v2070_v48 }
 0x1b6   : > { %v1602_v37 = vadd.f32 %v1572_v35, %v1437_v14  ;;  %v1274_v16 = vadd.f32 %v1246_v10, %v7548_v4  ;;  %v1410_v31 = vpop.f32.mrf.mxu1  ;;  %v2021_v4 = vld [vmem:[#allocation2 + $0x138] sm:$0xff]  ;;  %v2038_v14 = vpack.c.bf16 %v2022_v21, %v2022_v21  ;;  %v403_v10 = vld [vmem:[%s7322_s23 + $0xe8] sm:$0xff] }
 0x1b7   : > { %v2037_v13 = vpack.c.bf16 %v2021_v4, %v2021_v4  ;;  %v7692_v7 = vpack.c.b16 %v2102_v56, %v2101_v55  ;;  %436 = vst.msk [vmem:[#allocation2 + $0x171] sm:$0xff] %vm318_vm1, %v403_v10  ;;  %v2311_v4 = vld [vmem:[#allocation2 + $0x13a] sm:$0xff]  ;;  %v2312_v21 = vld [vmem:[#allocation2 + $0x142] sm:$0xff] }
 0x1b8   : > { %v1438_v40 = vadd.f32 %v1410_v31, %v1274_v16  ;;  %6707 = vmatmul.msk.bf16.gmra.mxu0 %vm318_vm1, %v1843_v24  ;;  %v2215_v1 = vunpack.c.l.b16 %v2038_v14  ;;  %v402_v24 = vld [vmem:[%s7322_s23 + $0xe0] sm:$0xff]  ;;  %v7689_v31 = vpack.c.b16 %v2358_v60, %v2357_v51  ;;  %v2327_v47 = vpack.c.bf16 %v2311_v4, %v2311_v4 }
 0x1b9   : > { %6730 = vmatmul.msk.bf16.gmra.mxu3 %vm318_vm1, %v7666_v0  ;;  %6715 = vmatmul.msk.bf16.gmra.mxu1 %vm318_vm1, %v7669_v25  ;;  %v2214_v57 = vunpack.c.l.b16 %v2037_v13  ;;  %435 = vst.msk [vmem:[#allocation2 + $0x169] sm:$0xff] %vm318_vm1, %v402_v24 }
 0x1ba   : > { %6723 = vmatmul.msk.bf16.gmra.mxu2 %vm318_vm1, %v7671_v15 }
 0x1bb   : > { %v7694_v53 = vpack.c.b16 %v2215_v1, %v2214_v57 }
 0x1bc   : > { %v1734_v9 = vpop.f32.mrf.mxu3 }
 0x1bd   : > { %v7682_v27 = vadd.f32 %v1734_v9, %v1601_v30  ;;  %v1575_v28 = vpop.f32.mrf.mxu2  ;;  %v1248_v44 = vpop.f32.mrf.mxu0  ;;  %v1834_v30 = vunpack.c.l.b16 %v1802_v38  ;;  %v2055_v9 = vld [vmem:[#allocation2 + $0x151] sm:$0xff] }
 0x1be   : > { %v1603_v39 = vadd.f32 %v1575_v28, %v1438_v40  ;;  %v1275_v52 = vadd.f32 %v1248_v44, %v7550_v17  ;;  %v1412_v36 = vpop.f32.mrf.mxu1  ;;  %v2024_v28 = vld [vmem:[#allocation2 + $0x158] sm:$0xff]  ;;  %v2328_v44 = vpack.c.bf16 %v2312_v21, %v2312_v21  ;;  %v2071_v48 = vpack.c.bf16 %v2055_v9, %v2055_v9 }
 0x1bf   : > { %v1844_v18 = vpack.c.b16 %v1834_v30, %v1833_v61  ;;  %v2040_v51 = vpack.c.bf16 %v2024_v28, %v2024_v28  ;;  %v2359_v30 = vunpack.c.l.b16 %v2327_v47  ;;  %v2314_v21 = vld [vmem:[#allocation2 + $0x15a] sm:$0xff] }
 0x1c0   : > { %v1439_v41 = vadd.f32 %v1412_v36, %v1275_v52  ;;  %v2072_v52 = vpack.c.bf16 %v2056_v22, %v2056_v22  ;;  %v2039_v36 = vpack.c.bf16 %v2023_v26, %v2023_v26  ;;  %v2360_v55 = vunpack.c.l.b16 %v2328_v44  ;;  %v2057_v9 = vld [vmem:[#allocation2 + $0x169] sm:$0xff]  ;;  %v2058_v22 = vld [vmem:[#allocation2 + $0x171] sm:$0xff] }
 0x1c1   : > { %v2103_v56 = vunpack.c.l.b16 %v2071_v48  ;;  %v2025_v26 = vld [vmem:[#allocation2 + $0x168] sm:$0xff]  ;;  %v2330_v44 = vpack.c.bf16 %v2314_v21, %v2314_v21  ;;  %v2073_v48 = vpack.c.bf16 %v2057_v9, %v2057_v9 }
 0x1c2   : > { %v2104_v57 = vunpack.c.l.b16 %v2072_v52  ;;  %v2216_v1 = vunpack.c.l.b16 %v2039_v36  ;;  %v7710_v10 = vpack.c.b16 %v2360_v55, %v2359_v30  ;;  %v2074_v52 = vpack.c.bf16 %v2058_v22, %v2058_v22 }
 0x1c3   : > { %v2041_v36 = vpack.c.bf16 %v2025_v26, %v2025_v26  ;;  %v2362_v55 = vunpack.c.l.b16 %v2330_v44  ;;  %v297_v26 = vld [vmem:[%s8883_s4] sm:$0x3] }
 0x1c4   : > { %v1736_v35 = vpop.f32.mrf.mxu3 }
 0x1c5   : > { %v7687_v16 = vadd.f32 %v1736_v35, %v1602_v37  ;;  %v1577_v40 = vpop.f32.mrf.mxu2  ;;  %v1251_v19 = vpop.f32.mrf.mxu0 }
 0x1c6   : > { %v1604_v17 = vadd.f32 %v1577_v40, %v1439_v41  ;;  %v1276_v12 = vadd.f32 %v1251_v19, %v7560_v29  ;;  %v1415_v20 = vpop.f32.mrf.mxu1 }
 0x1c8   : > { %v1440_v37 = vadd.f32 %v1415_v20, %v1276_v12  ;;  %6708 = vmatmul.msk.bf16.gmra.mxu0 %vm318_vm1, %v1844_v18  ;;  %v7712_v12 = vpack.c.b16 %v2104_v57, %v2103_v56  ;;  %v2105_v56 = vunpack.c.l.b16 %v2073_v48  ;;  %v2106_v57 = vunpack.c.l.b16 %v2074_v52 }
 0x1c9   : > { %6731 = vmatmul.msk.bf16.gmra.mxu3 %vm318_vm1, %v7689_v31  ;;  %6716 = vmatmul.msk.bf16.gmra.mxu1 %vm318_vm1, %v7692_v7 }
 0x1ca   : > { %6724 = vmatmul.msk.bf16.gmra.mxu2 %vm318_vm1, %v7694_v53 }
 0x1cc   : > { %v1739_v29 = vpop.f32.mrf.mxu3 }
 0x1cd   : > { %v7705_v46 = vadd.f32 %v1739_v29, %v1603_v39  ;;  %v1580_v38 = vpop.f32.mrf.mxu2  ;;  %v1253_v14 = vpop.f32.mrf.mxu0  ;;  %v2217_v39 = vunpack.c.l.b16 %v2040_v51 }
 0x1ce   : > { %v1605_v13 = vadd.f32 %v1580_v38, %v1440_v37  ;;  %v1277_v41 = vadd.f32 %v1253_v14, %v7562_v58  ;;  %v1417_v60 = vpop.f32.mrf.mxu1 }
 0x1cf   : > { %v7714_v20 = vpack.c.b16 %v2217_v39, %v2216_v1  ;;  %v2218_v1 = vunpack.c.l.b16 %v2041_v36 }
 0x1d0   : > { %v1441_v61 = vadd.f32 %v1417_v60, %v1277_v41 }
 0x1d4   : > { %v1741_v35 = vpop.f32.mrf.mxu3 }
 0x1d5   : > { %v7708_v24 = vadd.f32 %v1741_v35, %v1604_v17  ;;  %v1582_v40 = vpop.f32.mrf.mxu2  ;;  %v1256_v19 = vpop.f32.mrf.mxu0  ;;  %v2313_v17 = vld [vmem:[#allocation2 + $0x152] sm:$0xff] }
 0x1d6   : > { %v1606_v18 = vadd.f32 %v1582_v40, %v1441_v61  ;;  %v1278_v58 = vadd.f32 %v1256_v19, %v7574_v5  ;;  %v1420_v37 = vpop.f32.mrf.mxu1  ;;  %v2026_v5 = vld [vmem:[#allocation2 + $0x170] sm:$0xff]  ;;  %v2329_v47 = vpack.c.bf16 %v2313_v17, %v2313_v17 }
 0x1d7   : > { %v2042_v51 = vpack.c.bf16 %v2026_v5, %v2026_v5  ;;  %v2316_v5 = vld [vmem:[#allocation2 + $0x172] sm:$0xff] }
 0x1d8   : > { %v1442_v4 = vadd.f32 %v1420_v37, %v1278_v58  ;;  %6709 = vmatmul.msk.bf16.gmra.mxu0 %vm318_vm1, %v7564_v42  ;;  %v2361_v30 = vunpack.c.l.b16 %v2329_v47  ;;  %v6631_v58 = vld [vmem:[%s8883_s4 + $0x2] sm:$0x3] }
 0x1d9   : > { %6732 = vmatmul.msk.bf16.gmra.mxu3 %vm318_vm1, %v7710_v10  ;;  %6717 = vmatmul.msk.bf16.gmra.mxu1 %vm318_vm1, %v7712_v12  ;;  %v7740_v21 = vsel %vm621_vm0, %v6631_v58, 0 }
 0x1da   : > { %6725 = vmatmul.msk.bf16.gmra.mxu2 %vm318_vm1, %v7714_v20  ;;  %v7730_v40 = vpack.c.b16 %v2362_v55, %v2361_v30 }
 0x1db   : > { %3633 = vmatpush.bf16.msra.mxu2 %v7740_v21 }
 0x1dc   : > { %v1744_v28 = vpop.f32.mrf.mxu3 }
 0x1dd   : > { %v7725_v29 = vadd.f32 %v1744_v28, %v1605_v13  ;;  %v1585_v38 = vpop.f32.mrf.mxu2  ;;  %v1258_v14 = vpop.f32.mrf.mxu0  ;;  %v2219_v13 = vunpack.c.l.b16 %v2042_v51  ;;  %v7756_v28 = vsel %vm621_vm0, %v297_v26, 0 }
 0x1de   : > { %v1607_v42 = vadd.f32 %v1585_v38, %v1442_v4  ;;  %v1279_v41 = vadd.f32 %v1258_v14, %v7578_v32  ;;  %v1422_v60 = vpop.f32.mrf.mxu1  ;;  %v7735_v4 = vpack.c.b16 %v2106_v57, %v2105_v56  ;;  %3749 = vmatpush.bf16.msra.mxu3 %v7756_v28  ;;  %v2332_v14 = vpack.c.bf16 %v2316_v5, %v2316_v5 }
 0x1df   : > { %v7737_v17 = vpack.c.b16 %v2219_v13, %v2218_v1 }
 0x1e0   : > { %v1443_v61 = vadd.f32 %v1422_v60, %v1279_v41  ;;  %v2364_v30 = vunpack.c.l.b16 %v2332_v14 }
 0x1e4   : > { %v1746_v39 = vpop.f32.mrf.mxu3 }
 0x1e5   : > { %v7728_v35 = vadd.f32 %v1746_v39, %v1606_v18  ;;  %v1587_v19 = vpop.f32.mrf.mxu2  ;;  %v1261_v32 = vpop.f32.mrf.mxu0 }
 0x1e6   : > { %v1608_v37 = vadd.f32 %v1587_v19, %v1443_v61  ;;  %v1280_v9 = vadd.f32 %v1261_v32, %v7597_v34  ;;  %v1425_v18 = vpop.f32.mrf.mxu1  ;;  %v2315_v34 = vld [vmem:[#allocation2 + $0x16a] sm:$0xff] }
 0x1e7   : > { %v2331_v48 = vpack.c.bf16 %v2315_v34, %v2315_v34 }
 0x1e8   : > { %v1444_v22 = vadd.f32 %v1425_v18, %v1280_v9  ;;  %6710 = vmatmul.msk.bf16.gmra.mxu0 %vm318_vm1, %v7620_v62 }
 0x1e9   : > { %6733 = vmatmul.msk.bf16.gmra.mxu3 %vm318_vm1, %v7730_v40  ;;  %6718 = vmatmul.msk.bf16.gmra.mxu1 %vm318_vm1, %v7735_v4  ;;  %v2363_v61 = vunpack.c.l.b16 %v2331_v48 }
 0x1ea   : > { %6726 = vmatmul.msk.bf16.gmra.mxu2 %vm318_vm1, %v7737_v17 }
 0x1eb   : > { %v7764_v57 = vpack.c.b16 %v2364_v30, %v2363_v61 }
 0x1ec   : > { %v1749_v38 = vpop.f32.mrf.mxu3 }
 0x1ed   : > { %v7759_v47 = vadd.f32 %v1749_v38, %v1607_v42  ;;  %v1590_v44 = vpop.f32.mrf.mxu2  ;;  %v1263_v36 = vpop.f32.mrf.mxu0  ;;  %v7769_v42 = vld [vmem:[%s8881_s2] ss:$0 sm:$0xff] }
 0x1ee   : > { %v1609_v52 = vadd.f32 %v1590_v44, %v1444_v22  ;;  %v1281_v51 = vadd.f32 %v1263_v36, %v7601_v54  ;;  %v1427_v41 = vpop.f32.mrf.mxu1  ;;  %v7775_v54 = vld [vmem:[%s8882_s3] ss:$0 sm:$0xff] }
 0x1f0   : > { %v1445_v60 = vadd.f32 %v1427_v41, %v1281_v51 }
 0x1f4   : > { %v1751_v55 = vpop.f32.mrf.mxu3 }
 0x1f5   : > { %v7762_v56 = vadd.f32 %v1751_v55, %v1608_v37  ;;  %v1592_v1 = vpop.f32.mrf.mxu2  ;;  %v1883_v39 = vpop.f32.mrf.mxu0 }
 0x1f6   : > { %v1610_v13 = vadd.f32 %v1592_v1, %v1445_v60  ;;  %v1923_v19 = vadd.f32 %v1883_v39, %v7613_v50  ;;  %v2148_v58 = vpop.f32.mrf.mxu1 }
 0x1f8   : > { %v1942_v37 = vmul.f32 %v7769_v42, %v1923_v19  ;;  %6735 = vmatmul.msk.bf16.vlgmr.msrb.gmra.mxu0 %vm318_vm1, %v7566_v43 }
 0x1f9   : > { %6734 = vmatmul.msk.bf16.gmra.mxu3 %vm318_vm1, %v7764_v57  ;;  %6743 = vmatmul.msk.bf16.vlgmr.msrb.gmra.mxu1 %vm318_vm1, %v7580_v33 }
 0x1fa   : > { %6751 = vmatmul.msk.bf16.vlgmr.msrb.gmra.mxu2 %vm318_vm1, %v7620_v62  ;;  %v1961_v50 = vadd.f32 %v7775_v54, %v1942_v37 }
 0x1fc   : > { %v1754_v32 = vpop.f32.mrf.mxu3  ;;  %v1977_v18 = vmax.f32 %v1961_v50, 0.0 }
 0x1fd   : > { %v7787_v9 = vadd.f32 %v1754_v32, %v1609_v52  ;;  %v2261_v22 = vpop.f32.mrf.mxu2  ;;  %v1885_v34 = vpop.f32.mrf.mxu0 }
 0x1fe   : > { %v2262_v26 = vadd.f32 %v2261_v22, %v2148_v58  ;;  %1994 = vst.msk [vmem:[#allocation3 + $0x19] sm:$0xff] %vm318_vm1, %v1977_v18  ;;  %v1924_v5 = vadd.f32 %v1885_v34, %v7618_v8  ;;  %v2150_v43 = vpop.f32.mrf.mxu1 }
 0x200   : > { %v1943_v38 = vmul.f32 %v7769_v42, %v1924_v5 }
 0x202   : > { %v1962_v33 = vadd.f32 %v7775_v54, %v1943_v38 }
 0x204   : > { %v1756_v44 = vpop.f32.mrf.mxu3  ;;  %v1978_v48 = vmax.f32 %v1962_v33, 0.0 }
 0x205   : > { %v7793_v62 = vadd.f32 %v1756_v44, %v1610_v13  ;;  %v2263_v14 = vpop.f32.mrf.mxu2  ;;  %v1888_v36 = vpop.f32.mrf.mxu0 }
 0x206   : > { %v2264_v52 = vadd.f32 %v2263_v14, %v2150_v43  ;;  %1995 = vst.msk [vmem:[#allocation3 + $0x21] sm:$0xff] %vm318_vm1, %v1978_v48  ;;  %v1925_v51 = vadd.f32 %v1888_v36, %v7636_v45  ;;  %v2153_v41 = vpop.f32.mrf.mxu1 }
 0x208   : > { %v1944_v8 = vmul.f32 %v7769_v42, %v1925_v51  ;;  %6736 = vmatmul.msk.bf16.gmra.mxu0 %vm318_vm1, %v7625_v3 }
 0x209   : > { %6759 = vmatmul.msk.bf16.vlgmr.msrb.gmra.mxu3 %vm318_vm1, %v7625_v3  ;;  %6744 = vmatmul.msk.bf16.gmra.mxu1 %vm318_vm1, %v7623_v23 }
 0x20a   : > { %6752 = vmatmul.msk.bf16.gmra.mxu2 %vm318_vm1, %v7643_v63  ;;  %v1963_v60 = vadd.f32 %v7775_v54, %v1944_v8 }
 0x20c   : > { %v2406_v61 = vpop.f32.mrf.mxu3  ;;  %v1979_v45 = vmax.f32 %v1963_v60, 0.0 }
 0x20d   : > { %v7807_v30 = vadd.f32 %v2406_v61, %v2262_v26  ;;  %v2266_v55 = vpop.f32.mrf.mxu2  ;;  %v1890_v13 = vpop.f32.mrf.mxu0 }
 0x20e   : > { %v2267_v1 = vadd.f32 %v2266_v55, %v2153_v41  ;;  %1996 = vst.msk [vmem:[#allocation3 + $0x31] sm:$0xff] %vm318_vm1, %v1979_v45  ;;  %v1926_v39 = vadd.f32 %v1890_v13, %v7641_v59  ;;  %v2155_v3 = vpop.f32.mrf.mxu1 }
 0x210   : > { %v1945_v19 = vmul.f32 %v7769_v42, %v1926_v39 }
 0x212   : > { %v1964_v23 = vadd.f32 %v7775_v54, %v1945_v19 }
 0x214   : > { %v2408_v58 = vpop.f32.mrf.mxu3  ;;  %v1980_v37 = vmax.f32 %v1964_v23, 0.0 }
 0x215   : > { %v7813_v63 = vadd.f32 %v2408_v58, %v2264_v52  ;;  %v2268_v50 = vpop.f32.mrf.mxu2  ;;  %v1893_v18 = vpop.f32.mrf.mxu0 }
 0x216   : > { %v2269_v32 = vadd.f32 %v2268_v50, %v2155_v3  ;;  %1997 = vst.msk [vmem:[#allocation3 + $0x39] sm:$0xff] %vm318_vm1, %v1980_v37  ;;  %v1927_v22 = vadd.f32 %v1893_v18, %v7659_v49  ;;  %v2158_v26 = vpop.f32.mrf.mxu1 }
 0x218   : > { %v1946_v59 = vmul.f32 %v7769_v42, %v1927_v22  ;;  %6737 = vmatmul.msk.bf16.gmra.mxu0 %vm318_vm1, %v7648_v11 }
 0x219   : > { %6760 = vmatmul.msk.bf16.gmra.mxu3 %vm318_vm1, %v7648_v11  ;;  %6745 = vmatmul.msk.bf16.gmra.mxu1 %vm318_vm1, %v7646_v6 }
 0x21a   : > { %6753 = vmatmul.msk.bf16.gmra.mxu2 %vm318_vm1, %v7666_v0  ;;  %v1965_v34 = vadd.f32 %v7775_v54, %v1946_v59  ;;  %v404_v59 = vld [vmem:[%s7322_s23 + $0xf0] sm:$0xff] }
 0x21b   : > { %437 = vst.msk [vmem:[#allocation2 + $0x181] sm:$0xff] %vm318_vm1, %v404_v59 }
 0x21c   : > { %v2411_v5 = vpop.f32.mrf.mxu3  ;;  %v1981_v49 = vmax.f32 %v1965_v34, 0.0  ;;  %v405_v34 = vld [vmem:[%s7322_s23 + $0xf8] sm:$0xff] }
 0x21d   : > { %v7827_v43 = vadd.f32 %v2411_v5, %v2267_v1  ;;  %v2271_v38 = vpop.f32.mrf.mxu2  ;;  %v1895_v44 = vpop.f32.mrf.mxu0  ;;  %438 = vst.msk [vmem:[#allocation2 + $0x189] sm:$0xff] %vm318_vm1, %v405_v34 }
 0x21e   : > { %v2272_v33 = vadd.f32 %v2271_v38, %v2158_v26  ;;  %1998 = vst.msk [vmem:[#allocation3 + $0x49] sm:$0xff] %vm318_vm1, %v1981_v49  ;;  %v1928_v48 = vadd.f32 %v1895_v44, %v7664_v2  ;;  %v2160_v11 = vpop.f32.mrf.mxu1 }
 0x220   : > { %v1947_v14 = vmul.f32 %v7769_v42, %v1928_v48 }
 0x222   : > { %v1966_v6 = vadd.f32 %v7775_v54, %v1947_v14 }
 0x224   : > { %v2413_v52 = vpop.f32.mrf.mxu3  ;;  %v1982_v36 = vmax.f32 %v1966_v6, 0.0  ;;  %v2800_v59 = vld [vmem:[#allocation2 + $0x18a] sm:$0xff] }
 0x225   : > { %v7833_v0 = vadd.f32 %v2413_v52, %v2269_v32  ;;  %v2273_v51 = vpop.f32.mrf.mxu2  ;;  %v1898_v8 = vpop.f32.mrf.mxu0 }
 0x226   : > { %v2274_v41 = vadd.f32 %v2273_v51, %v2160_v11  ;;  %1999 = vst.msk [vmem:[#allocation3 + $0x51] sm:$0xff] %vm318_vm1, %v1982_v36  ;;  %v1929_v60 = vadd.f32 %v1898_v8, %v7682_v27  ;;  %v2163_v61 = vpop.f32.mrf.mxu1 }
 0x228   : > { %v1948_v2 = vmul.f32 %v7769_v42, %v1929_v60  ;;  %6738 = vmatmul.msk.bf16.gmra.mxu0 %vm318_vm1, %v7671_v15 }
 0x229   : > { %6761 = vmatmul.msk.bf16.gmra.mxu3 %vm318_vm1, %v7671_v15  ;;  %6746 = vmatmul.msk.bf16.gmra.mxu1 %vm318_vm1, %v7669_v25 }
 0x22a   : > { %6754 = vmatmul.msk.bf16.gmra.mxu2 %vm318_vm1, %v7689_v31  ;;  %v1967_v45 = vadd.f32 %v7775_v54, %v1948_v2 }
 0x22c   : > { %v2416_v55 = vpop.f32.mrf.mxu3  ;;  %v1983_v27 = vmax.f32 %v1967_v45, 0.0 }
 0x22d   : > { %v7847_v1 = vadd.f32 %v2416_v55, %v2272_v33  ;;  %v2276_v13 = vpop.f32.mrf.mxu2  ;;  %v1900_v3 = vpop.f32.mrf.mxu0 }
 0x22e   : > { %v2277_v39 = vadd.f32 %v2276_v13, %v2163_v61  ;;  %2000 = vst.msk [vmem:[#allocation3 + $0x61] sm:$0xff] %vm318_vm1, %v1983_v27  ;;  %v1930_v19 = vadd.f32 %v1900_v3, %v7687_v16  ;;  %v2165_v15 = vpop.f32.mrf.mxu1 }
 0x230   : > { %v1949_v23 = vmul.f32 %v7769_v42, %v1930_v19 }
 0x232   : > { %v1968_v25 = vadd.f32 %v7775_v54, %v1949_v23 }
 0x234   : > { %v2418_v31 = vpop.f32.mrf.mxu3  ;;  %v1984_v37 = vmax.f32 %v1968_v25, 0.0 }
 0x235   : > { %v7853_v58 = vadd.f32 %v2418_v31, %v2274_v41  ;;  %v2278_v50 = vpop.f32.mrf.mxu2  ;;  %v1903_v18 = vpop.f32.mrf.mxu0 }
 0x236   : > { %v2279_v32 = vadd.f32 %v2278_v50, %v2165_v15  ;;  %2001 = vst.msk [vmem:[#allocation3 + $0x69] sm:$0xff] %vm318_vm1, %v1984_v37  ;;  %v1931_v22 = vadd.f32 %v1903_v18, %v7705_v46  ;;  %v2168_v26 = vpop.f32.mrf.mxu1  ;;  %v2960_v18 = vld [vmem:[#allocation2 + $0x188] sm:$0xff] }
 0x238   : > { %v1950_v16 = vmul.f32 %v7769_v42, %v1931_v22  ;;  %6739 = vmatmul.msk.bf16.gmra.mxu0 %vm318_vm1, %v7694_v53  ;;  %v2638_v22 = vld [vmem:[#allocation2 + $0x181] sm:$0xff] }
 0x239   : > { %6762 = vmatmul.msk.bf16.gmra.mxu3 %vm318_vm1, %v7694_v53  ;;  %6747 = vmatmul.msk.bf16.gmra.mxu1 %vm318_vm1, %v7692_v7 }
 0x23a   : > { %6755 = vmatmul.msk.bf16.gmra.mxu2 %vm318_vm1, %v7710_v10  ;;  %v1969_v5 = vadd.f32 %v7775_v54, %v1950_v16  ;;  %v2799_v16 = vld [vmem:[#allocation2 + $0x182] sm:$0xff] }
 0x23c   : > { %v2421_v46 = vpop.f32.mrf.mxu3  ;;  %v1985_v38 = vmax.f32 %v1969_v5, 0.0 }
 0x23d   : > { %v7871_v49 = vadd.f32 %v2421_v46, %v2277_v39  ;;  %v2281_v33 = vpop.f32.mrf.mxu2  ;;  %v1905_v44 = vpop.f32.mrf.mxu0 }
 0x23e   : > { %v2282_v53 = vadd.f32 %v2281_v33, %v2168_v26  ;;  %2002 = vst.msk [vmem:[#allocation3 + $0x79] sm:$0xff] %vm318_vm1, %v1985_v38  ;;  %v1932_v7 = vadd.f32 %v1905_v44, %v7708_v24  ;;  %v2170_v10 = vpop.f32.mrf.mxu1  ;;  %v2639_v26 = vld [vmem:[#allocation2 + $0x189] sm:$0xff]  ;;  %v2976_v33 = vpack.c.bf16 %v2960_v18, %v2960_v18  ;;  %v3269_v18 = vld [vmem:[#allocation2 + $0xf2] sm:$0xff] }
 0x240   : > { %v1951_v48 = vmul.f32 %v7769_v42, %v1932_v7  ;;  %v2655_v7 = vpack.c.bf16 %v2639_v26, %v2639_v26 }
 0x242   : > { %v1970_v11 = vadd.f32 %v7775_v54, %v1951_v48 }
 0x244   : > { %v2423_v14 = vpop.f32.mrf.mxu3  ;;  %v1986_v52 = vmax.f32 %v1970_v11, 0.0 }
 0x245   : > { %v7877_v6 = vadd.f32 %v2423_v14, %v2279_v32  ;;  %v2283_v36 = vpop.f32.mrf.mxu2  ;;  %v1908_v41 = vpop.f32.mrf.mxu0  ;;  %v2959_v32 = vld [vmem:[#allocation2 + $0x180] sm:$0xff] }
 0x246   : > { %v2284_v51 = vadd.f32 %v2283_v36, %v2170_v10  ;;  %2003 = vst.msk [vmem:[#allocation3 + $0x81] sm:$0xff] %vm318_vm1, %v1986_v52  ;;  %v1933_v8 = vadd.f32 %v1908_v41, %v7725_v29  ;;  %v2173_v60 = vpop.f32.mrf.mxu1  ;;  %v2975_v5 = vpack.c.bf16 %v2959_v32, %v2959_v32  ;;  %v2815_v10 = vpack.c.bf16 %v2799_v16, %v2799_v16  ;;  %v3109_v32 = vld [vmem:[#allocation2 + $0xf9] sm:$0xff] }
 0x247   : > { %v3008_v36 = vunpack.c.l.b16 %v2976_v33  ;;  %v2687_v41 = vunpack.c.l.b16 %v2655_v7 }
 0x248   : > { %v1952_v24 = vmul.f32 %v7769_v42, %v1933_v8  ;;  %6740 = vmatmul.msk.bf16.gmra.mxu0 %vm318_vm1, %v7714_v20  ;;  %v3007_v52 = vunpack.c.l.b16 %v2975_v5  ;;  %v2847_v8 = vunpack.c.l.b16 %v2815_v10  ;;  %v3528_v5 = vld [vmem:[#allocation3 + $0x9] sm:$0xff] }
 0x249   : > { %6763 = vmatmul.msk.bf16.gmra.mxu3 %vm318_vm1, %v7714_v20  ;;  %6748 = vmatmul.msk.bf16.gmra.mxu1 %vm318_vm1, %v7712_v12 }
 0x24a   : > { %6756 = vmatmul.msk.bf16.gmra.mxu2 %vm318_vm1, %v7730_v40  ;;  %v1971_v61 = vadd.f32 %v7775_v54, %v1952_v24 }
 0x24c   : > { %v2426_v2 = vpop.f32.mrf.mxu3  ;;  %v1987_v29 = vmax.f32 %v1971_v61, 0.0 }
 0x24d   : > { %v7891_v45 = vadd.f32 %v2426_v2, %v2282_v53  ;;  %v2286_v55 = vpop.f32.mrf.mxu2  ;;  %v1910_v13 = vpop.f32.mrf.mxu0  ;;  %v2654_v53 = vpack.c.bf16 %v2638_v22, %v2638_v22 }
 0x24e   : > { %v2287_v27 = vadd.f32 %v2286_v55, %v2173_v60  ;;  %2004 = vst.msk [vmem:[#allocation3 + $0x91] sm:$0xff] %vm318_vm1, %v1987_v29  ;;  %v1934_v39 = vadd.f32 %v1910_v13, %v7728_v35  ;;  %v2175_v20 = vpop.f32.mrf.mxu1  ;;  %v3017_v55 = vpack.c.b16 %v3008_v36, %v3007_v52 }
 0x250   : > { %v1953_v3 = vmul.f32 %v7769_v42, %v1934_v39 }
 0x252   : > { %v1972_v12 = vadd.f32 %v7775_v54, %v1953_v3 }
 0x254   : > { %v2428_v19 = vpop.f32.mrf.mxu3  ;;  %v1988_v15 = vmax.f32 %v1972_v12, 0.0 }
 0x255   : > { %v7897_v40 = vadd.f32 %v2428_v19, %v2284_v51  ;;  %v2288_v23 = vpop.f32.mrf.mxu2  ;;  %v1913_v31 = vpop.f32.mrf.mxu0  ;;  %v2686_v51 = vunpack.c.l.b16 %v2654_v53 }
 0x256   : > { %v2289_v25 = vadd.f32 %v2288_v23, %v2175_v20  ;;  %2005 = vst.msk [vmem:[#allocation3 + $0x99] sm:$0xff] %vm318_vm1, %v1988_v15  ;;  %v1935_v37 = vadd.f32 %v1913_v31, %v7759_v47  ;;  %v2178_v50 = vpop.f32.mrf.mxu1  ;;  %v2961_v23 = vld [vmem:[#allocation2 + $0x198] sm:$0xff] }
 0x257   : > { %v7922_v20 = vpack.c.b16 %v2687_v41, %v2686_v51  ;;  %v3108_v31 = vld [vmem:[#allocation2 + $0xf1] sm:$0xff]  ;;  %v3544_v51 = vpack.c.bf16 %v3528_v5, %v3528_v5 }
 0x258   : > { %v1954_v35 = vmul.f32 %v7769_v42, %v1935_v37  ;;  %6741 = vmatmul.msk.bf16.gmra.mxu0 %vm318_vm1, %v7737_v17  ;;  %v3124_v53 = vpack.c.bf16 %v3108_v31, %v3108_v31  ;;  %v3271_v5 = vld [vmem:[#allocation2 + $0x10a] sm:$0xff] }
 0x259   : > { %6764 = vmatmul.msk.bf16.gmra.mxu3 %vm318_vm1, %v7737_v17  ;;  %6749 = vmatmul.msk.bf16.gmra.mxu1 %vm318_vm1, %v7735_v4 }
 0x25a   : > { %6757 = vmatmul.msk.bf16.gmra.mxu2 %vm318_vm1, %v7764_v57  ;;  %v1973_v47 = vadd.f32 %v7775_v54, %v1954_v35  ;;  %v2816_v57 = vpack.c.bf16 %v2800_v59, %v2800_v59  ;;  %v6633_v35 = vld [vmem:[%s8883_s4 + $0x6] sm:$0x3]  ;;  %v3270_v59 = vld [vmem:[#allocation2 + $0xfa] sm:$0xff] }
 0x25b   : > { %v7955_v26 = vsel %vm621_vm0, %v6633_v35, 0  ;;  %v3286_v52 = vpack.c.bf16 %v3270_v59, %v3270_v59  ;;  %v3110_v59 = vld [vmem:[#allocation2 + $0x109] sm:$0xff] }
 0x25c   : > { %v2431_v34 = vpop.f32.mrf.mxu3  ;;  %v1989_v38 = vmax.f32 %v1973_v47, 0.0  ;;  %v2848_v60 = vunpack.c.l.b16 %v2816_v57  ;;  %4061 = vmatpush.bf16.msrb.mxu1 %v7955_v26  ;;  %v3125_v57 = vpack.c.bf16 %v3109_v32, %v3109_v32 }
 0x25d   : > { %v7911_v46 = vadd.f32 %v2431_v34, %v2287_v27  ;;  %v2291_v17 = vpop.f32.mrf.mxu2  ;;  %v1915_v4 = vpop.f32.mrf.mxu0  ;;  %v3527_v34 = vld [vmem:[#allocation3 + $0x1] sm:$0xff] }
 0x25e   : > { %v2292_v44 = vadd.f32 %v2291_v17, %v2178_v50  ;;  %2006 = vst.msk [vmem:[#allocation3 + $0xa9] sm:$0xff] %vm318_vm1, %v1989_v38  ;;  %v1936_v48 = vadd.f32 %v1915_v4, %v7762_v56  ;;  %v2180_v11 = vpop.f32.mrf.mxu1  ;;  %v6634_v56 = vld [vmem:[%s8883_s4 + $0x8] sm:$0x3]  ;;  %v7924_v3 = vpack.c.b16 %v2848_v60, %v2847_v8  ;;  %v6632_v50 = vld [vmem:[%s8883_s4 + $0x4] sm:$0x3]  ;;  %v2977_v17 = vpack.c.bf16 %v2961_v23, %v2961_v23 }
 0x25f   : > { %v7927_v12 = vsel %vm621_vm0, %v6634_v56, 0  ;;  %v7949_v22 = vsel %vm621_vm0, %v6632_v50, 0  ;;  %v3543_v36 = vpack.c.bf16 %v3527_v34, %v3527_v34  ;;  %v3111_v34 = vld [vmem:[#allocation2 + $0x111] sm:$0xff] }
 0x260   : > { %v1955_v14 = vmul.f32 %v7769_v42, %v1936_v48  ;;  %4225 = vmatpush.bf16.msrb.mxu2 %v7927_v12  ;;  %3897 = vmatpush.bf16.msrb.mxu0 %v7949_v22  ;;  %v3285_v48 = vpack.c.bf16 %v3269_v18, %v3269_v18  ;;  %v3009_v60 = vunpack.c.l.b16 %v2977_v17 }
 0x261   : > { %v3575_v56 = vunpack.c.l.b16 %v3543_v36  ;;  %v3287_v36 = vpack.c.bf16 %v3271_v5, %v3271_v5  ;;  %v3498_v5 = vld [vmem:[#allocation3 + $0x20] sm:$0xff] }
 0x262   : > { %v1974_v24 = vadd.f32 %v7775_v54, %v1955_v14 }
 0x264   : > { %v2433_v61 = vpop.f32.mrf.mxu3  ;;  %v1990_v29 = vmax.f32 %v1974_v24, 0.0 }
 0x265   : > { %v7917_v2 = vadd.f32 %v2433_v61, %v2289_v25  ;;  %v2293_v27 = vpop.f32.mrf.mxu2  ;;  %v1918_v39 = vpop.f32.mrf.mxu0  ;;  %v2962_v25 = vld [vmem:[#allocation2 + $0x1a0] sm:$0xff] }
 0x266   : > { %v2294_v13 = vadd.f32 %v2293_v27, %v2180_v11  ;;  %2007 = vst.msk [vmem:[#allocation3 + $0xb1] sm:$0xff] %vm318_vm1, %v1990_v29  ;;  %v1937_v19 = vadd.f32 %v1918_v39, %v7787_v9  ;;  %v2183_v15 = vpop.f32.mrf.mxu1  ;;  %v6635_v9 = vld [vmem:[%s8883_s4 + $0xa] sm:$0x3]  ;;  %v2978_v33 = vpack.c.bf16 %v2962_v25, %v2962_v25  ;;  %v3157_v29 = vunpack.c.l.b16 %v3125_v57 }
 0x267   : > { %v7952_v47 = vsel %vm621_vm0, %v6635_v9, 0  ;;  %v3318_v27 = vunpack.c.l.b16 %v3286_v52  ;;  %v3576_v39 = vunpack.c.l.b16 %v3544_v51  ;;  %v3127_v57 = vpack.c.bf16 %v3111_v34, %v3111_v34  ;;  %v3274_v34 = vld [vmem:[#allocation2 + $0x12a] sm:$0xff] }
 0x268   : > { %v1956_v37 = vmul.f32 %v7769_v42, %v1937_v19  ;;  %6742 = vmatmul.msk.bf16.gmra.mxu0 %vm318_vm1, %v3017_v55  ;;  %4389 = vmatpush.bf16.msrb.mxu3 %v7952_v47  ;;  %v3010_v61 = vunpack.c.l.b16 %v2978_v33 }
 0x269   : > { %6765 = vmatmul.msk.bf16.gmra.mxu3 %vm318_vm1, %v3017_v55  ;;  %6750 = vmatmul.msk.bf16.gmra.mxu1 %vm318_vm1, %v7922_v20  ;;  %v3317_v55 = vunpack.c.l.b16 %v3285_v48  ;;  %v3530_v48 = vld [vmem:[#allocation3 + $0x21] sm:$0xff] }
 0x26a   : > { %6758 = vmatmul.msk.bf16.gmra.mxu2 %vm318_vm1, %v7924_v3  ;;  %v1975_v16 = vadd.f32 %v7775_v54, %v1956_v37  ;;  %v3018_v31 = vpack.c.b16 %v3010_v61, %v3009_v60  ;;  %v3529_v60 = vld [vmem:[#allocation3 + $0x19] sm:$0xff]  ;;  %v3546_v61 = vpack.c.bf16 %v3530_v48, %v3530_v48 }
 0x26b   : > { %v3333_v35 = vpack.c.b16 %v3318_v27, %v3317_v55  ;;  %v3319_v27 = vunpack.c.l.b16 %v3287_v36  ;;  %v3497_v48 = vld [vmem:[#allocation3 + $0x18] sm:$0xff]  ;;  %v3290_v36 = vpack.c.bf16 %v3274_v34, %v3274_v34 }
 0x26c   : > { %v2436_v38 = vpop.f32.mrf.mxu3  ;;  %v1991_v7 = vmax.f32 %v1975_v16, 0.0  ;;  %v3276_v34 = vld [vmem:[#allocation2 + $0x142] sm:$0xff] }
 0x26d   : > { %v7961_v4 = vadd.f32 %v2436_v38, %v2292_v44  ;;  %v2296_v10 = vpop.f32.mrf.mxu2  ;;  %v1920_v14 = vpop.f32.mrf.mxu0  ;;  %v3156_v44 = vunpack.c.l.b16 %v3124_v53  ;;  %v3272_v38 = vld [vmem:[#allocation2 + $0x112] sm:$0xff] }
 0x26e   : > { %v2297_v11 = vadd.f32 %v2296_v10, %v2183_v15  ;;  %2008 = vst.msk [vmem:[#allocation3 + $0xc1] sm:$0xff] %vm318_vm1, %v1991_v7  ;;  %v1938_v41 = vadd.f32 %v1920_v14, %v7793_v62  ;;  %v2185_v8 = vpop.f32.mrf.mxu1  ;;  %v3126_v10 = vpack.c.bf16 %v3110_v59, %v3110_v59  ;;  %v3288_v51 = vpack.c.bf16 %v3272_v38, %v3272_v38  ;;  %v3273_v59 = vld [vmem:[#allocation2 + $0x122] sm:$0xff] }
 0x26f   : > { %v3172_v62 = vpack.c.b16 %v3157_v29, %v3156_v44 }
 0x270   : > { %v1957_v24 = vmul.f32 %v7769_v42, %v1938_v41  ;;  %v3591_v42 = vpack.c.b16 %v3576_v39, %v3575_v56  ;;  %v3158_v55 = vunpack.c.l.b16 %v3126_v10  ;;  %v3320_v56 = vunpack.c.l.b16 %v3288_v51 }
 0x271   : > { %v3545_v39 = vpack.c.bf16 %v3529_v60, %v3529_v60  ;;  %v3531_v60 = vld [vmem:[#allocation3 + $0x31] sm:$0xff] }
 0x272   : > { %v1976_v19 = vadd.f32 %v7775_v54, %v1957_v24  ;;  %v3495_v54 = vld [vmem:[#allocation3] sm:$0xff] }
 0x273   : > { %v3511_v33 = vpack.c.bf16 %v3495_v54, %v3495_v54 }
 0x274   : > { %v2438_v15 = vpop.f32.mrf.mxu3  ;;  %v1992_v25 = vmax.f32 %v1976_v19, 0.0 }
 0x275   : > { %v7967_v23 = vadd.f32 %v2438_v15, %v2294_v13  ;;  %v2298_v37 = vpop.f32.mrf.mxu2  ;;  %v2568_v9 = vpop.f32.mrf.mxu0  ;;  %v3496_v13 = vld [vmem:[#allocation3 + $0x8] sm:$0xff]  ;;  %v3691_v24 = vunpack.c.l.b16 %v3511_v33  ;;  %v3578_v15 = vunpack.c.l.b16 %v3546_v61  ;;  %v3513_v61 = vpack.c.bf16 %v3497_v48, %v3497_v48 }
 0x276   : > { %v2299_v50 = vadd.f32 %v2298_v37, %v2185_v8  ;;  %2009 = vst.msk [vmem:[#allocation3 + $0xc9] sm:$0xff] %vm318_vm1, %v1992_v25  ;;  %v2608_v32 = vadd.f32 %v2568_v9, %v7807_v30  ;;  %v2729_v18 = vpop.f32.mrf.mxu1  ;;  %v3512_v7 = vpack.c.bf16 %v3496_v13, %v3496_v13  ;;  %v3113_v13 = vld [vmem:[#allocation2 + $0x129] sm:$0xff] }
 0x278   : > { %v2769_v16 = vadd.f32 %v2729_v18, %v2608_v32  ;;  %6767 = vmatmul.msk.bf16.vlgmr.msra.gmra.mxu0 %vm318_vm1, %v3172_v62  ;;  %v3692_v29 = vunpack.c.l.b16 %v3512_v7  ;;  %v3532_v7 = vld [vmem:[#allocation3 + $0x39] sm:$0xff] }
 0x279   : > { %6766 = vmatmul.msk.bf16.gmra.mxu3 %vm318_vm1, %v3018_v31  ;;  %6775 = vmatmul.msk.bf16.vlgmr.msra.gmra.mxu1 %vm318_vm1, %v3333_v35  ;;  %v3334_v35 = vpack.c.b16 %v3320_v56, %v3319_v27 }
 0x27a   : > { %6783 = vmatmul.msk.bf16.vlgmr.msra.gmra.mxu2 %vm318_vm1, %v3591_v42  ;;  %v3707_v31 = vpack.c.b16 %v3692_v29, %v3691_v24  ;;  %v3577_v42 = vunpack.c.l.b16 %v3545_v39  ;;  %v3548_v24 = vpack.c.bf16 %v3532_v7, %v3532_v7  ;;  %v3534_v7 = vld [vmem:[#allocation3 + $0x51] sm:$0xff] }
 0x27c   : > { %v2441_v17 = vpop.f32.mrf.mxu3  ;;  %v3580_v39 = vunpack.c.l.b16 %v3548_v24  ;;  %v3533_v24 = vld [vmem:[#allocation3 + $0x49] sm:$0xff] }
 0x27d   : > { %v7975_v53 = vadd.f32 %v2441_v17, %v2297_v11  ;;  %v2890_v30 = vpop.f32.mrf.mxu2  ;;  %v2570_v52 = vpop.f32.mrf.mxu0  ;;  %v3159_v11 = vunpack.c.l.b16 %v3127_v57 }
 0x27e   : > { %v2930_v14 = vadd.f32 %v2890_v30, %v2769_v16  ;;  %v2609_v41 = vadd.f32 %v2570_v52, %v7813_v63  ;;  %v2731_v8 = vpop.f32.mrf.mxu1  ;;  %v7981_v16 = vpack.c.b16 %v3578_v15, %v3577_v42  ;;  %v3129_v30 = vpack.c.bf16 %v3113_v13, %v3113_v13  ;;  %v3115_v13 = vld [vmem:[#allocation2 + $0x141] sm:$0xff] }
 0x27f   : > { %v3173_v62 = vpack.c.b16 %v3159_v11, %v3158_v55  ;;  %v3289_v52 = vpack.c.bf16 %v3273_v59, %v3273_v59  ;;  %v3322_v55 = vunpack.c.l.b16 %v3290_v36  ;;  %v3547_v11 = vpack.c.bf16 %v3531_v60, %v3531_v60  ;;  %v3275_v59 = vld [vmem:[#allocation2 + $0x13a] sm:$0xff] }
 0x280   : > { %v2770_v44 = vadd.f32 %v2731_v8, %v2609_v41  ;;  %v3514_v8 = vpack.c.bf16 %v3498_v5, %v3498_v5  ;;  %v3693_v15 = vunpack.c.l.b16 %v3513_v61  ;;  %v3291_v36 = vpack.c.bf16 %v3275_v59, %v3275_v59 }
 0x281   : > { %v3321_v29 = vunpack.c.l.b16 %v3289_v52  ;;  %v3499_v52 = vld [vmem:[#allocation3 + $0x30] sm:$0xff] }
 0x282   : > { %v3694_v27 = vunpack.c.l.b16 %v3514_v8 }
 0x284   : > { %v2443_v19 = vpop.f32.mrf.mxu3  ;;  %v7994_v42 = vpack.c.b16 %v3694_v27, %v3693_v15 }
 0x285   : > { %v7978_v25 = vadd.f32 %v2443_v19, %v2299_v50  ;;  %v2892_v37 = vpop.f32.mrf.mxu2  ;;  %v2573_v63 = vpop.f32.mrf.mxu0  ;;  %v3112_v50 = vld [vmem:[#allocation2 + $0x121] sm:$0xff] }
 0x286   : > { %v2931_v9 = vadd.f32 %v2892_v37, %v2770_v44  ;;  %v2610_v32 = vadd.f32 %v2573_v63, %v7827_v43  ;;  %v2734_v18 = vpop.f32.mrf.mxu1  ;;  %v3128_v33 = vpack.c.bf16 %v3112_v50, %v3112_v50  ;;  %v3335_v63 = vpack.c.b16 %v3322_v55, %v3321_v29 }
 0x287   : > { %v3323_v29 = vunpack.c.l.b16 %v3291_v36 }
 0x288   : > { %v2771_v54 = vadd.f32 %v2734_v18, %v2610_v32  ;;  %6768 = vmatmul.msk.bf16.gmra.mxu0 %vm318_vm1, %v3173_v62  ;;  %v3160_v44 = vunpack.c.l.b16 %v3128_v33 }
 0x289   : > { %6791 = vmatmul.msk.bf16.vlgmr.msra.gmra.mxu3 %vm318_vm1, %v3707_v31  ;;  %6776 = vmatmul.msk.bf16.gmra.mxu1 %vm318_vm1, %v3334_v35  ;;  %v3579_v35 = vunpack.c.l.b16 %v3547_v11  ;;  %v3549_v11 = vpack.c.bf16 %v3533_v24, %v3533_v24 }
 0x28a   : > { %6784 = vmatmul.msk.bf16.gmra.mxu2 %vm318_vm1, %v7981_v16  ;;  %5178 = vmatpush.bf16.msra.mxu3 %v7740_v21 }
 0x28c   : > { %v3052_v43 = vpop.f32.mrf.mxu3 }
 0x28d   : > { %v7989_v38 = vadd.f32 %v3052_v43, %v2930_v14  ;;  %v2895_v17 = vpop.f32.mrf.mxu2  ;;  %v2575_v57 = vpop.f32.mrf.mxu0  ;;  %v3161_v14 = vunpack.c.l.b16 %v3129_v30  ;;  %v3131_v30 = vpack.c.bf16 %v3115_v13, %v3115_v13 }
 0x28e   : > { %v2932_v10 = vadd.f32 %v2895_v17, %v2771_v54  ;;  %v2611_v51 = vadd.f32 %v2575_v57, %v7833_v0  ;;  %v2736_v41 = vpop.f32.mrf.mxu1  ;;  %v7997_v54 = vpack.c.b16 %v3580_v39, %v3579_v35 }
 0x28f   : > { %v3174_v37 = vpack.c.b16 %v3161_v14, %v3160_v44  ;;  %v3515_v44 = vpack.c.bf16 %v3499_v52, %v3499_v52  ;;  %v3536_v52 = vld [vmem:[#allocation3 + $0x69] sm:$0xff] }
 0x290   : > { %v2772_v21 = vadd.f32 %v2736_v41, %v2611_v51  ;;  %v3292_v51 = vpack.c.bf16 %v3276_v34, %v3276_v34  ;;  %v3117_v34 = vld [vmem:[#allocation2 + $0x159] sm:$0xff] }
 0x292   : > { %v3324_v55 = vunpack.c.l.b16 %v3292_v51 }
 0x294   : > { %v3054_v56 = vpop.f32.mrf.mxu3  ;;  %v3336_v35 = vpack.c.b16 %v3324_v55, %v3323_v29 }
 0x295   : > { %v7992_v19 = vadd.f32 %v3054_v56, %v2931_v9  ;;  %v2897_v31 = vpop.f32.mrf.mxu2  ;;  %v2578_v62 = vpop.f32.mrf.mxu0  ;;  %v3114_v9 = vld [vmem:[#allocation2 + $0x139] sm:$0xff] }
 0x296   : > { %v2933_v0 = vadd.f32 %v2897_v31, %v2772_v21  ;;  %v2612_v32 = vadd.f32 %v2578_v62, %v7847_v1  ;;  %v2739_v18 = vpop.f32.mrf.mxu1  ;;  %v3500_v1 = vld [vmem:[#allocation3 + $0x38] sm:$0xff]  ;;  %v3130_v33 = vpack.c.bf16 %v3114_v9, %v3114_v9  ;;  %v3550_v21 = vpack.c.bf16 %v3534_v7, %v3534_v7 }
 0x297   : > { %v3516_v60 = vpack.c.bf16 %v3500_v1, %v3500_v1  ;;  %v3695_v31 = vunpack.c.l.b16 %v3515_v44  ;;  %v3278_v1 = vld [vmem:[#allocation2 + $0x15a] sm:$0xff]  ;;  %v3535_v44 = vld [vmem:[#allocation3 + $0x61] sm:$0xff] }
 0x298   : > { %v2773_v50 = vadd.f32 %v2739_v18, %v2612_v32  ;;  %6769 = vmatmul.msk.bf16.gmra.mxu0 %vm318_vm1, %v3174_v37  ;;  %v3162_v14 = vunpack.c.l.b16 %v3130_v33  ;;  %v3582_v39 = vunpack.c.l.b16 %v3550_v21  ;;  %v3581_v32 = vunpack.c.l.b16 %v3549_v11 }
 0x299   : > { %6792 = vmatmul.msk.bf16.gmra.mxu3 %vm318_vm1, %v7994_v42  ;;  %6777 = vmatmul.msk.bf16.gmra.mxu1 %vm318_vm1, %v3335_v63  ;;  %v3696_v27 = vunpack.c.l.b16 %v3516_v60  ;;  %v3294_v60 = vpack.c.bf16 %v3278_v1, %v3278_v1 }
 0x29a   : > { %6785 = vmatmul.msk.bf16.gmra.mxu2 %vm318_vm1, %v7997_v54  ;;  %v8013_v13 = vpack.c.b16 %v3582_v39, %v3581_v32 }
 0x29b   : > { %v8010_v18 = vpack.c.b16 %v3696_v27, %v3695_v31  ;;  %v3326_v27 = vunpack.c.l.b16 %v3294_v60  ;;  %v3538_v60 = vld [vmem:[#allocation3 + $0x81] sm:$0xff] }
 0x29c   : > { %v3057_v43 = vpop.f32.mrf.mxu3 }
 0x29d   : > { %v8005_v5 = vadd.f32 %v3057_v43, %v2932_v10  ;;  %v2900_v17 = vpop.f32.mrf.mxu2  ;;  %v2580_v48 = vpop.f32.mrf.mxu0  ;;  %v3163_v10 = vunpack.c.l.b16 %v3131_v30  ;;  %v3277_v43 = vld [vmem:[#allocation2 + $0x152] sm:$0xff] }
 0x29e   : > { %v2934_v57 = vadd.f32 %v2900_v17, %v2773_v50  ;;  %v2613_v41 = vadd.f32 %v2580_v48, %v7853_v58  ;;  %v2741_v8 = vpop.f32.mrf.mxu1  ;;  %v3133_v48 = vpack.c.bf16 %v3117_v34, %v3117_v34 }
 0x29f   : > { %v3175_v62 = vpack.c.b16 %v3163_v10, %v3162_v14  ;;  %v3552_v14 = vpack.c.bf16 %v3536_v52, %v3536_v52 }
 0x2a0   : > { %v2774_v61 = vadd.f32 %v2741_v8, %v2613_v41  ;;  %v3501_v41 = vld [vmem:[#allocation3 + $0x48] sm:$0xff]  ;;  %v3293_v8 = vpack.c.bf16 %v3277_v43, %v3277_v43 }
 0x2a1   : > { %v3517_v29 = vpack.c.bf16 %v3501_v41, %v3501_v41 }
 0x2a2   : > { %v3325_v11 = vunpack.c.l.b16 %v3293_v8 }
 0x2a4   : > { %v3059_v56 = vpop.f32.mrf.mxu3 }
 0x2a5   : > { %v8008_v15 = vadd.f32 %v3059_v56, %v2933_v0  ;;  %v2902_v37 = vpop.f32.mrf.mxu2  ;;  %v2583_v63 = vpop.f32.mrf.mxu0  ;;  %v3116_v0 = vld [vmem:[#allocation2 + $0x151] sm:$0xff]  ;;  %v3551_v56 = vpack.c.bf16 %v3535_v44, %v3535_v44 }
 0x2a6   : > { %v2935_v58 = vadd.f32 %v2902_v37, %v2774_v61  ;;  %v2614_v50 = vadd.f32 %v2583_v63, %v7871_v49  ;;  %v2744_v9 = vpop.f32.mrf.mxu1  ;;  %v3502_v49 = vld [vmem:[#allocation3 + $0x50] sm:$0xff]  ;;  %v3132_v7 = vpack.c.bf16 %v3116_v0, %v3116_v0  ;;  %v3584_v37 = vunpack.c.l.b16 %v3552_v14 }
 0x2a7   : > { %v3518_v61 = vpack.c.bf16 %v3502_v49, %v3502_v49  ;;  %v3697_v63 = vunpack.c.l.b16 %v3517_v29  ;;  %v3119_v49 = vld [vmem:[#allocation2 + $0x171] sm:$0xff] }
 0x2a8   : > { %v2775_v59 = vadd.f32 %v2744_v9, %v2614_v50  ;;  %6770 = vmatmul.msk.bf16.gmra.mxu0 %vm318_vm1, %v3175_v62  ;;  %v3164_v55 = vunpack.c.l.b16 %v3132_v7  ;;  %v3337_v9 = vpack.c.b16 %v3326_v27, %v3325_v11  ;;  %v3280_v7 = vld [vmem:[#allocation2 + $0x172] sm:$0xff]  ;;  %v3135_v8 = vpack.c.bf16 %v3119_v49, %v3119_v49 }
 0x2a9   : > { %6793 = vmatmul.msk.bf16.gmra.mxu3 %vm318_vm1, %v8010_v18  ;;  %6778 = vmatmul.msk.bf16.gmra.mxu1 %vm318_vm1, %v3336_v35  ;;  %v3698_v39 = vunpack.c.l.b16 %v3518_v61  ;;  %v3503_v61 = vld [vmem:[#allocation3 + $0x60] sm:$0xff]  ;;  %v3296_v14 = vpack.c.bf16 %v3280_v7, %v3280_v7  ;;  %v3554_v11 = vpack.c.bf16 %v3538_v60, %v3538_v60 }
 0x2aa   : > { %6786 = vmatmul.msk.bf16.gmra.mxu2 %vm318_vm1, %v8013_v13 }
 0x2ab   : > { %v8026_v0 = vpack.c.b16 %v3698_v39, %v3697_v63 }
 0x2ac   : > { %v3062_v17 = vpop.f32.mrf.mxu3 }
 0x2ad   : > { %v8021_v33 = vadd.f32 %v3062_v17, %v2934_v57  ;;  %v2905_v30 = vpop.f32.mrf.mxu2  ;;  %v2585_v51 = vpop.f32.mrf.mxu0  ;;  %v3165_v57 = vunpack.c.l.b16 %v3133_v48 }
 0x2ae   : > { %v2936_v36 = vadd.f32 %v2905_v30, %v2775_v59  ;;  %v2615_v24 = vadd.f32 %v2585_v51, %v7877_v6  ;;  %v2746_v21 = vpop.f32.mrf.mxu1  ;;  %v3583_v59 = vunpack.c.l.b16 %v3551_v56  ;;  %v3279_v30 = vld [vmem:[#allocation2 + $0x16a] sm:$0xff]  ;;  %v3519_v56 = vpack.c.bf16 %v3503_v61, %v3503_v61 }
 0x2af   : > { %v3176_v32 = vpack.c.b16 %v3165_v57, %v3164_v55  ;;  %v3295_v44 = vpack.c.bf16 %v3279_v30, %v3279_v30  ;;  %v3537_v57 = vld [vmem:[#allocation3 + $0x79] sm:$0xff] }
 0x2b0   : > { %v2776_v10 = vadd.f32 %v2746_v21, %v2615_v24  ;;  %v8029_v1 = vpack.c.b16 %v3584_v37, %v3583_v59  ;;  %v3328_v37 = vunpack.c.l.b16 %v3296_v14  ;;  %v3553_v63 = vpack.c.bf16 %v3537_v57, %v3537_v57 }
 0x2b1   : > { %v3699_v59 = vunpack.c.l.b16 %v3519_v56 }
 0x2b2   : > { %v3585_v49 = vunpack.c.l.b16 %v3553_v63 }
 0x2b4   : > { %v3064_v31 = vpop.f32.mrf.mxu3 }
 0x2b5   : > { %v8024_v62 = vadd.f32 %v3064_v31, %v2935_v58  ;;  %v2907_v35 = vpop.f32.mrf.mxu2  ;;  %v2588_v50 = vpop.f32.mrf.mxu0  ;;  %v3118_v58 = vld [vmem:[#allocation2 + $0x169] sm:$0xff]  ;;  %v3327_v31 = vunpack.c.l.b16 %v3295_v44 }
 0x2b6   : > { %v2937_v6 = vadd.f32 %v2907_v35, %v2776_v10  ;;  %v2616_v34 = vadd.f32 %v2588_v50, %v7891_v45  ;;  %v2749_v43 = vpop.f32.mrf.mxu1  ;;  %v3504_v45 = vld [vmem:[#allocation3 + $0x68] sm:$0xff]  ;;  %v3134_v41 = vpack.c.bf16 %v3118_v58, %v3118_v58  ;;  %v3586_v50 = vunpack.c.l.b16 %v3554_v11  ;;  %v3505_v44 = vld [vmem:[#allocation3 + $0x78] sm:$0xff] }
 0x2b7   : > { %v3520_v55 = vpack.c.bf16 %v3504_v45, %v3504_v45  ;;  %v3338_v58 = vpack.c.b16 %v3328_v37, %v3327_v31 }
 0x2b8   : > { %v2777_v17 = vadd.f32 %v2749_v43, %v2616_v34  ;;  %6771 = vmatmul.msk.bf16.gmra.mxu0 %vm318_vm1, %v3176_v32  ;;  %v3166_v39 = vunpack.c.l.b16 %v3134_v41  ;;  %v8045_v45 = vpack.c.b16 %v3586_v50, %v3585_v49  ;;  %v3506_v41 = vld [vmem:[#allocation3 + $0x80] sm:$0xff]  ;;  %v3283_v49 = vld [vmem:[#allocation2 + $0x19a] sm:$0xff] }
 0x2b9   : > { %6794 = vmatmul.msk.bf16.gmra.mxu3 %vm318_vm1, %v8026_v0  ;;  %6779 = vmatmul.msk.bf16.gmra.mxu1 %vm318_vm1, %v3337_v9  ;;  %v3700_v35 = vunpack.c.l.b16 %v3520_v55  ;;  %v3539_v55 = vld [vmem:[#allocation3 + $0x91] sm:$0xff] }
 0x2ba   : > { %6787 = vmatmul.msk.bf16.gmra.mxu2 %vm318_vm1, %v8029_v1  ;;  %v3555_v56 = vpack.c.bf16 %v3539_v55, %v3539_v55 }
 0x2bb   : > { %v8042_v30 = vpack.c.b16 %v3700_v35, %v3699_v59 }
 0x2bc   : > { %v3067_v48 = vpop.f32.mrf.mxu3  ;;  %v3587_v50 = vunpack.c.l.b16 %v3555_v56 }
 0x2bd   : > { %v8037_v52 = vadd.f32 %v3067_v48, %v2936_v36  ;;  %v2910_v51 = vpop.f32.mrf.mxu2  ;;  %v2590_v21 = vpop.f32.mrf.mxu0  ;;  %v3167_v36 = vunpack.c.l.b16 %v3135_v8 }
 0x2be   : > { %v2938_v24 = vadd.f32 %v2910_v51, %v2777_v17  ;;  %v2617_v10 = vadd.f32 %v2590_v21, %v7897_v40  ;;  %v2751_v29 = vpop.f32.mrf.mxu1 }
 0x2bf   : > { %v3177_v43 = vpack.c.b16 %v3167_v36, %v3166_v39 }
 0x2c0   : > { %v2778_v27 = vadd.f32 %v2751_v29, %v2617_v10  ;;  %v3522_v29 = vpack.c.bf16 %v3506_v41, %v3506_v41 }
 0x2c2   : > { %v3702_v39 = vunpack.c.l.b16 %v3522_v29 }
 0x2c4   : > { %v3069_v32 = vpop.f32.mrf.mxu3 }
 0x2c5   : > { %v8040_v9 = vadd.f32 %v3069_v32, %v2937_v6  ;;  %v2912_v34 = vpop.f32.mrf.mxu2  ;;  %v2593_v17 = vpop.f32.mrf.mxu0 }
 0x2c6   : > { %v2939_v40 = vadd.f32 %v2912_v34, %v2778_v27  ;;  %v2618_v7 = vadd.f32 %v2593_v17, %v7911_v46  ;;  %v2754_v48 = vpop.f32.mrf.mxu1  ;;  %v3540_v46 = vld [vmem:[#allocation3 + $0x99] sm:$0xff]  ;;  %v3521_v27 = vpack.c.bf16 %v3505_v44, %v3505_v44  ;;  %v3507_v44 = vld [vmem:[#allocation3 + $0x90] sm:$0xff] }
 0x2c7   : > { %v3556_v57 = vpack.c.bf16 %v3540_v46, %v3540_v46  ;;  %v3542_v46 = vld [vmem:[#allocation3 + $0xb1] sm:$0xff]  ;;  %v3523_v56 = vpack.c.bf16 %v3507_v44, %v3507_v44  ;;  %v6637_v44 = vld [vmem:[%s8883_s4 + $0xe] sm:$0x3] }
 0x2c8   : > { %v2779_v51 = vadd.f32 %v2754_v48, %v2618_v7  ;;  %6772 = vmatmul.msk.bf16.gmra.mxu0 %vm318_vm1, %v3177_v43  ;;  %v3508_v48 = vld [vmem:[#allocation3 + $0x98] sm:$0xff] }
 0x2c9   : > { %6795 = vmatmul.msk.bf16.gmra.mxu3 %vm318_vm1, %v8042_v30  ;;  %6780 = vmatmul.msk.bf16.gmra.mxu1 %vm318_vm1, %v3338_v58  ;;  %v3588_v31 = vunpack.c.l.b16 %v3556_v57  ;;  %v3123_v58 = vld [vmem:[#allocation2 + $0x1a1] sm:$0xff]  ;;  %v3524_v55 = vpack.c.bf16 %v3508_v48, %v3508_v48  ;;  %v3541_v57 = vld [vmem:[#allocation3 + $0xa9] sm:$0xff] }
 0x2ca   : > { %6788 = vmatmul.msk.bf16.gmra.mxu2 %vm318_vm1, %v8045_v45 }
 0x2cb   : > { %v8061_v43 = vpack.c.b16 %v3588_v31, %v3587_v50 }
 0x2cc   : > { %v3072_v6 = vpop.f32.mrf.mxu3 }
 0x2cd   : > { %v8053_v8 = vadd.f32 %v3072_v6, %v2938_v24  ;;  %v2915_v60 = vpop.f32.mrf.mxu2  ;;  %v2595_v61 = vpop.f32.mrf.mxu0  ;;  %v3701_v24 = vunpack.c.l.b16 %v3521_v27 }
 0x2ce   : > { %v2940_v21 = vadd.f32 %v2915_v60, %v2779_v51  ;;  %v2619_v14 = vadd.f32 %v2595_v61, %v7917_v2  ;;  %v2756_v10 = vpop.f32.mrf.mxu1  ;;  %v3139_v60 = vpack.c.bf16 %v3123_v58, %v3123_v58 }
 0x2cf   : > { %v8058_v59 = vpack.c.b16 %v3702_v39, %v3701_v24  ;;  %v3557_v24 = vpack.c.bf16 %v3541_v57, %v3541_v57 }
 0x2d0   : > { %v2780_v11 = vadd.f32 %v2756_v10, %v2619_v14  ;;  %v3299_v14 = vpack.c.bf16 %v3283_v49, %v3283_v49 }
 0x2d4   : > { %v3074_v36 = vpop.f32.mrf.mxu3 }
 0x2d5   : > { %v8056_v37 = vadd.f32 %v3074_v36, %v2939_v40  ;;  %v2917_v63 = vpop.f32.mrf.mxu2  ;;  %v2598_v32 = vpop.f32.mrf.mxu0  ;;  %v3122_v40 = vld [vmem:[#allocation2 + $0x199] sm:$0xff]  ;;  %v3331_v36 = vunpack.c.l.b16 %v3299_v14 }
 0x2d6   : > { %v2941_v35 = vadd.f32 %v2917_v63, %v2780_v11  ;;  %v2620_v2 = vadd.f32 %v2598_v32, %v7961_v4  ;;  %v2759_v34 = vpop.f32.mrf.mxu1  ;;  %v3284_v4 = vld [vmem:[#allocation2 + $0x1a2] sm:$0xff]  ;;  %v3138_v41 = vpack.c.bf16 %v3122_v40, %v3122_v40  ;;  %v3558_v11 = vpack.c.bf16 %v3542_v46, %v3542_v46  ;;  %v3792_v14 = vld [vmem:[#allocation3 + $0xa] sm:$0xff] }
 0x2d7   : > { %v3704_v63 = vunpack.c.l.b16 %v3524_v55  ;;  %v3510_v55 = vld [vmem:[#allocation3 + $0xb0] sm:$0xff] }
 0x2d8   : > { %v2781_v17 = vadd.f32 %v2759_v34, %v2620_v2  ;;  %6773 = vmatmul.msk.bf16.gmra.mxu0 %vm318_vm1, %v7922_v20  ;;  %v3170_v39 = vunpack.c.l.b16 %v3138_v41  ;;  %v3590_v50 = vunpack.c.l.b16 %v3558_v11  ;;  %v3703_v34 = vunpack.c.l.b16 %v3523_v56 }
 0x2d9   : > { %6796 = vmatmul.msk.bf16.gmra.mxu3 %vm318_vm1, %v8058_v59  ;;  %6781 = vmatmul.msk.bf16.gmra.mxu1 %vm318_vm1, %v7924_v3  ;;  %v3300_v3 = vpack.c.bf16 %v3284_v4, %v3284_v4  ;;  %v3808_v56 = vpack.c.bf16 %v3792_v14, %v3792_v14  ;;  %v4283_v14 = vld [vmem:[#allocation3 + $0x1a] sm:$0xff] }
 0x2da   : > { %6789 = vmatmul.msk.bf16.gmra.mxu2 %vm318_vm1, %v8061_v43 }
 0x2db   : > { %v3332_v31 = vunpack.c.l.b16 %v3300_v3 }
 0x2dc   : > { %v3077_v7 = vpop.f32.mrf.mxu3 }
 0x2dd   : > { %v8071_v51 = vadd.f32 %v3077_v7, %v2940_v21  ;;  %v2920_v6 = vpop.f32.mrf.mxu2  ;;  %v2600_v20 = vpop.f32.mrf.mxu0  ;;  %v3171_v21 = vunpack.c.l.b16 %v3139_v60  ;;  %v3340_v4 = vpack.c.b16 %v3332_v31, %v3331_v36  ;;  %v3589_v7 = vunpack.c.l.b16 %v3557_v24  ;;  %v3509_v36 = vld [vmem:[#allocation3 + $0xa8] sm:$0xff] }
 0x2de   : > { %v2942_v61 = vadd.f32 %v2920_v6, %v2781_v17  ;;  %v2621_v10 = vadd.f32 %v2600_v20, %v7967_v23  ;;  %v2761_v29 = vpop.f32.mrf.mxu1  ;;  %v6638_v23 = vld [vmem:[%s8883_s4 + $0x10] sm:$0x3]  ;;  %v8082_v6 = vpack.c.b16 %v3704_v63, %v3703_v34  ;;  %v6636_v20 = vld [vmem:[%s8883_s4 + $0xc] sm:$0x3]  ;;  %v3526_v63 = vpack.c.bf16 %v3510_v55, %v3510_v55 }
 0x2df   : > { %v3179_v40 = vpack.c.b16 %v3171_v21, %v3170_v39  ;;  %v8080_v48 = vsel %vm621_vm0, %v6638_v23, 0  ;;  %v8086_v60 = vpack.c.b16 %v3590_v50, %v3589_v7  ;;  %v8101_v3 = vsel %vm621_vm0, %v6636_v20, 0 }
 0x2e0   : > { %v2782_v27 = vadd.f32 %v2761_v29, %v2621_v10  ;;  %4882 = vmatpush.bf16.msra.mxu2 %v8080_v48  ;;  %v8104_v10 = vsel %vm621_vm0, %v6637_v44, 0  ;;  %4554 = vmatpush.bf16.msra.mxu0 %v8101_v3  ;;  %v3525_v50 = vpack.c.bf16 %v3509_v36, %v3509_v36 }
 0x2e1   : > { %4718 = vmatpush.bf16.msra.mxu1 %v8104_v10 }
 0x2e4   : > { %v3079_v32 = vpop.f32.mrf.mxu3 }
 0x2e5   : > { %v8074_v2 = vadd.f32 %v3079_v32, %v2941_v35  ;;  %v2922_v17 = vpop.f32.mrf.mxu2  ;;  %v2603_v49 = vpop.f32.mrf.mxu0 }
 0x2e6   : > { %v2943_v58 = vadd.f32 %v2922_v17, %v2782_v27  ;;  %v2622_v41 = vadd.f32 %v2603_v49, %v7975_v53  ;;  %v2764_v35 = vpop.f32.mrf.mxu1  ;;  %v3791_v53 = vld [vmem:[#allocation3 + $0x2] sm:$0xff]  ;;  %v3840_v17 = vunpack.c.l.b16 %v3808_v56 }
 0x2e7   : > { %v3807_v27 = vpack.c.bf16 %v3791_v53, %v3791_v53 }
 0x2e8   : > { %v2783_v46 = vadd.f32 %v2764_v35, %v2622_v41  ;;  %6774 = vmatmul.msk.bf16.gmra.mxu0 %vm318_vm1, %v3179_v40  ;;  %v3706_v40 = vunpack.c.l.b16 %v3526_v63 }
 0x2e9   : > { %6797 = vmatmul.msk.bf16.gmra.mxu3 %vm318_vm1, %v8082_v6  ;;  %6782 = vmatmul.msk.bf16.gmra.mxu1 %vm318_vm1, %v3340_v4  ;;  %v3839_v34 = vunpack.c.l.b16 %v3807_v27 }
 0x2ea   : > { %6790 = vmatmul.msk.bf16.gmra.mxu2 %vm318_vm1, %v8086_v60 }
 0x2eb   : > { %v3855_v7 = vpack.c.b16 %v3840_v17, %v3839_v34 }
 0x2ec   : > { %v3082_v29 = vpop.f32.mrf.mxu3 }
 0x2ed   : > { %v8108_v57 = vadd.f32 %v3082_v29, %v2942_v61  ;;  %v2925_v11 = vpop.f32.mrf.mxu2  ;;  %v2605_v21 = vpop.f32.mrf.mxu0  ;;  %v3705_v61 = vunpack.c.l.b16 %v3525_v50  ;;  %v4284_v29 = vld [vmem:[#allocation3 + $0x22] sm:$0xff] }
 0x2ee   : > { %v2944_v39 = vadd.f32 %v2925_v11, %v2783_v46  ;;  %v2623_v31 = vadd.f32 %v2605_v21, %v7978_v25  ;;  %v2766_v24 = vpop.f32.mrf.mxu1  ;;  %v4299_v21 = vpack.c.bf16 %v4283_v14, %v4283_v14  ;;  %v4300_v36 = vpack.c.bf16 %v4284_v29, %v4284_v29 }
 0x2ef   : > { %v8113_v46 = vpack.c.b16 %v3706_v40, %v3705_v61 }
 0x2f0   : > { %v2784_v32 = vadd.f32 %v2766_v24, %v2623_v31  ;;  %v4331_v31 = vunpack.c.l.b16 %v4299_v21  ;;  %v4332_v24 = vunpack.c.l.b16 %v4300_v36 }
 0x2f4   : > { %v3084_v23 = vpop.f32.mrf.mxu3 }
 0x2f5   : > { %v8111_v49 = vadd.f32 %v3084_v23, %v2943_v58  ;;  %v2927_v4 = vpop.f32.mrf.mxu2  ;;  %v3213_v35 = vpop.f32.mrf.mxu0  ;;  %v8126_v58 = vld [vmem:[%s8881_s2] ss:$0 sm:$0xff]  ;;  %v4347_v23 = vpack.c.b16 %v4332_v24, %v4331_v31 }
 0x2f6   : > { %v2945_v41 = vadd.f32 %v2927_v4, %v2784_v32  ;;  %v3253_v20 = vadd.f32 %v3213_v35, %v7989_v38  ;;  %v3374_v25 = vpop.f32.mrf.mxu1  ;;  %v4286_v35 = vld [vmem:[#allocation3 + $0x3a] sm:$0xff] }
 0x2f8   : > { %v3414_v44 = vadd.f32 %v3374_v25, %v3253_v20  ;;  %6799 = vmatmul.msk.bf16.vlgmr.msrb.gmra.mxu0 %vm318_vm1, %v3855_v7 }
 0x2f9   : > { %6798 = vmatmul.msk.bf16.gmra.mxu3 %vm318_vm1, %v8113_v46  ;;  %6807 = vmatmul.msk.bf16.vlgmr.msrb.gmra.mxu1 %vm318_vm1, %v7994_v42 }
 0x2fa   : > { %6815 = vmatmul.msk.bf16.vlgmr.msrb.gmra.mxu2 %vm318_vm1, %v7981_v16  ;;  %v3430_v38 = vmul.f32 %v8126_v58, %v3414_v44  ;;  %5291 = vmatpush.bf16.msrb.mxu0 %v7756_v28  ;;  %v8137_v16 = vld [vmem:[%s8882_s3] ss:$0 sm:$0xff] }
 0x2fb   : > { %5597 = vmatpush.bf16.msrb.mxu2 %v7955_v26  ;;  %5436 = vmatpush.bf16.msrb.mxu1 %v7949_v22 }
 0x2fc   : > { %v3087_v53 = vpop.f32.mrf.mxu3  ;;  %v3446_v55 = vadd.f32 %v8137_v16, %v3430_v38 }
 0x2fd   : > { %v8132_v42 = vadd.f32 %v3087_v53, %v2944_v39  ;;  %v3635_v11 = vpop.f32.mrf.mxu2  ;;  %v3215_v27 = vpop.f32.mrf.mxu0 }
 0x2fe   : > { %v3462_v56 = vmax.f32 %v3446_v55, 0.0  ;;  %v3254_v26 = vadd.f32 %v3215_v27, %v7992_v19  ;;  %v3376_v28 = vpop.f32.mrf.mxu1  ;;  %v4302_v55 = vpack.c.bf16 %v4286_v35, %v4286_v35 }
 0x300   : > { %3479 = vst.msk [vmem:[#allocation3 + $0xd9] sm:$0xff] %vm318_vm1, %v3462_v56  ;;  %v3415_v22 = vadd.f32 %v3376_v28, %v3254_v26  ;;  %v4334_v56 = vunpack.c.l.b16 %v4302_v55 }
 0x302   : > { %v3431_v39 = vmul.f32 %v8126_v58, %v3415_v22 }
 0x304   : > { %v3089_v63 = vpop.f32.mrf.mxu3  ;;  %v3447_v50 = vadd.f32 %v8137_v16, %v3431_v39 }
 0x305   : > { %v8143_v32 = vadd.f32 %v3089_v63, %v2945_v41  ;;  %v3637_v34 = vpop.f32.mrf.mxu2  ;;  %v3218_v17 = vpop.f32.mrf.mxu0 }
 0x306   : > { %v3463_v40 = vmax.f32 %v3447_v50, 0.0  ;;  %v3255_v19 = vadd.f32 %v3218_v17, %v8005_v5  ;;  %v3379_v61 = vpop.f32.mrf.mxu1  ;;  %v4285_v5 = vld [vmem:[#allocation3 + $0x32] sm:$0xff] }
 0x307   : > { %v4301_v29 = vpack.c.bf16 %v4285_v5, %v4285_v5 }
 0x308   : > { %3480 = vst.msk [vmem:[#allocation3 + $0xe1] sm:$0xff] %vm318_vm1, %v3463_v40  ;;  %v3416_v4 = vadd.f32 %v3379_v61, %v3255_v19  ;;  %6800 = vmatmul.msk.bf16.gmra.mxu0 %vm318_vm1, %v4347_v23 }
 0x309   : > { %6823 = vmatmul.msk.bf16.vlgmr.msrb.gmra.mxu3 %vm318_vm1, %v4347_v23  ;;  %6808 = vmatmul.msk.bf16.gmra.mxu1 %vm318_vm1, %v8010_v18  ;;  %v4333_v27 = vunpack.c.l.b16 %v4301_v29 }
 0x30a   : > { %6816 = vmatmul.msk.bf16.gmra.mxu2 %vm318_vm1, %v7997_v54  ;;  %v3432_v7 = vmul.f32 %v8126_v58, %v3416_v4  ;;  %5758 = vmatpush.bf16.msrb.mxu3 %v7927_v12 }
 0x30b   : > { %v8165_v39 = vpack.c.b16 %v4334_v56, %v4333_v27 }
 0x30c   : > { %v3751_v41 = vpop.f32.mrf.mxu3  ;;  %v3448_v25 = vadd.f32 %v8137_v16, %v3432_v7 }
 0x30d   : > { %v8156_v20 = vadd.f32 %v3751_v41, %v3635_v11  ;;  %v3640_v44 = vpop.f32.mrf.mxu2  ;;  %v3220_v38 = vpop.f32.mrf.mxu0 }
 0x30e   : > { %v3464_v53 = vmax.f32 %v3448_v25, 0.0  ;;  %v3256_v14 = vadd.f32 %v3220_v38, %v8008_v15  ;;  %v3381_v18 = vpop.f32.mrf.mxu1 }
 0x310   : > { %3481 = vst.msk [vmem:[#allocation3 + $0xf1] sm:$0xff] %vm318_vm1, %v3464_v53  ;;  %v3417_v54 = vadd.f32 %v3381_v18, %v3256_v14 }
 0x312   : > { %v3433_v12 = vmul.f32 %v8126_v58, %v3417_v54 }
 0x314   : > { %v3753_v26 = vpop.f32.mrf.mxu3  ;;  %v3449_v28 = vadd.f32 %v8137_v16, %v3433_v12 }
 0x315   : > { %v8162_v11 = vadd.f32 %v3753_v26, %v3637_v34  ;;  %v3642_v21 = vpop.f32.mrf.mxu2  ;;  %v3223_v36 = vpop.f32.mrf.mxu0  ;;  %v4288_v34 = vld [vmem:[#allocation3 + $0x52] sm:$0xff]  ;;  %v4290_v26 = vld [vmem:[#allocation3 + $0x6a] sm:$0xff] }
 0x316   : > { %v3465_v22 = vmax.f32 %v3449_v28, 0.0  ;;  %v3257_v15 = vadd.f32 %v3223_v36, %v8021_v33  ;;  %v3384_v31 = vpop.f32.mrf.mxu1  ;;  %v4287_v33 = vld [vmem:[#allocation3 + $0x4a] sm:$0xff] }
 0x317   : > { %v4303_v41 = vpack.c.bf16 %v4287_v33, %v4287_v33 }
 0x318   : > { %3482 = vst.msk [vmem:[#allocation3 + $0xf9] sm:$0xff] %vm318_vm1, %v3465_v22  ;;  %v3418_v24 = vadd.f32 %v3384_v31, %v3257_v15  ;;  %6801 = vmatmul.msk.bf16.gmra.mxu0 %vm318_vm1, %v8165_v39 }
 0x319   : > { %6824 = vmatmul.msk.bf16.gmra.mxu3 %vm318_vm1, %v8165_v39  ;;  %6809 = vmatmul.msk.bf16.gmra.mxu1 %vm318_vm1, %v8026_v0  ;;  %v4304_v0 = vpack.c.bf16 %v4288_v34, %v4288_v34  ;;  %v4335_v35 = vunpack.c.l.b16 %v4303_v41 }
 0x31a   : > { %6817 = vmatmul.msk.bf16.gmra.mxu2 %vm318_vm1, %v8013_v13  ;;  %v3434_v63 = vmul.f32 %v8126_v58, %v3418_v24 }
 0x31b   : > { %v4336_v25 = vunpack.c.l.b16 %v4304_v0 }
 0x31c   : > { %v3756_v50 = vpop.f32.mrf.mxu3  ;;  %v3450_v40 = vadd.f32 %v8137_v16, %v3434_v63 }
 0x31d   : > { %v8178_v17 = vadd.f32 %v3756_v50, %v3640_v44  ;;  %v3645_v23 = vpop.f32.mrf.mxu2  ;;  %v3225_v19 = vpop.f32.mrf.mxu0  ;;  %v8187_v55 = vpack.c.b16 %v4336_v25, %v4335_v35  ;;  %v4292_v25 = vld [vmem:[#allocation3 + $0x82] sm:$0xff] }
 0x31e   : > { %v3466_v61 = vmax.f32 %v3450_v40, 0.0  ;;  %v3258_v4 = vadd.f32 %v3225_v19, %v8024_v62  ;;  %v3386_v7 = vpop.f32.mrf.mxu1 }
 0x320   : > { %3483 = vst.msk [vmem:[#allocation3 + $0x109] sm:$0xff] %vm318_vm1, %v3466_v61  ;;  %v3419_v13 = vadd.f32 %v3386_v7, %v3258_v4 }
 0x322   : > { %v3435_v5 = vmul.f32 %v8126_v58, %v3419_v13 }
 0x324   : > { %v3758_v38 = vpop.f32.mrf.mxu3  ;;  %v3451_v53 = vadd.f32 %v8137_v16, %v3435_v5 }
 0x325   : > { %v8184_v44 = vadd.f32 %v3758_v38, %v3642_v21  ;;  %v3647_v14 = vpop.f32.mrf.mxu2  ;;  %v3228_v18 = vpop.f32.mrf.mxu0 }
 0x326   : > { %v3467_v29 = vmax.f32 %v3451_v53, 0.0  ;;  %v3259_v62 = vadd.f32 %v3228_v18, %v8037_v52  ;;  %v3389_v54 = vpop.f32.mrf.mxu1  ;;  %v4289_v52 = vld [vmem:[#allocation3 + $0x62] sm:$0xff] }
 0x327   : > { %v4305_v63 = vpack.c.bf16 %v4289_v52, %v4289_v52 }
 0x328   : > { %3484 = vst.msk [vmem:[#allocation3 + $0x111] sm:$0xff] %vm318_vm1, %v3467_v29  ;;  %v3420_v12 = vadd.f32 %v3389_v54, %v3259_v62  ;;  %6802 = vmatmul.msk.bf16.gmra.mxu0 %vm318_vm1, %v8187_v55 }
 0x329   : > { %6825 = vmatmul.msk.bf16.gmra.mxu3 %vm318_vm1, %v8187_v55  ;;  %6810 = vmatmul.msk.bf16.gmra.mxu1 %vm318_vm1, %v8042_v30  ;;  %v4306_v30 = vpack.c.bf16 %v4290_v26, %v4290_v26  ;;  %v4337_v33 = vunpack.c.l.b16 %v4305_v63 }
 0x32a   : > { %6818 = vmatmul.msk.bf16.gmra.mxu2 %vm318_vm1, %v8029_v1  ;;  %v3436_v27 = vmul.f32 %v8126_v58, %v3420_v12 }
 0x32b   : > { %v4338_v34 = vunpack.c.l.b16 %v4306_v30 }
 0x32c   : > { %v3761_v56 = vpop.f32.mrf.mxu3  ;;  %v3452_v21 = vadd.f32 %v8137_v16, %v3436_v27 }
 0x32d   : > { %v8200_v28 = vadd.f32 %v3761_v56, %v3645_v23  ;;  %v3650_v36 = vpop.f32.mrf.mxu2  ;;  %v3230_v22 = vpop.f32.mrf.mxu0  ;;  %v8209_v41 = vpack.c.b16 %v4338_v34, %v4337_v33  ;;  %v4294_v33 = vld [vmem:[#allocation3 + $0x9a] sm:$0xff] }
 0x32e   : > { %v3468_v15 = vmax.f32 %v3452_v21, 0.0  ;;  %v3260_v31 = vadd.f32 %v3230_v22, %v8040_v9  ;;  %v3391_v24 = vpop.f32.mrf.mxu1 }
 0x330   : > { %3485 = vst.msk [vmem:[#allocation3 + $0x121] sm:$0xff] %vm318_vm1, %v3468_v15  ;;  %v3421_v1 = vadd.f32 %v3391_v24, %v3260_v31 }
 0x332   : > { %v3437_v50 = vmul.f32 %v8126_v58, %v3421_v1 }
 0x334   : > { %v3763_v40 = vpop.f32.mrf.mxu3  ;;  %v3453_v19 = vadd.f32 %v8137_v16, %v3437_v50 }
 0x335   : > { %v8206_v23 = vadd.f32 %v3763_v40, %v3647_v14  ;;  %v3652_v61 = vpop.f32.mrf.mxu2  ;;  %v3233_v4 = vpop.f32.mrf.mxu0 }
 0x336   : > { %v3469_v7 = vmax.f32 %v3453_v19, 0.0  ;;  %v3261_v9 = vadd.f32 %v3233_v4, %v8053_v8  ;;  %v3394_v0 = vpop.f32.mrf.mxu1  ;;  %v4291_v8 = vld [vmem:[#allocation3 + $0x7a] sm:$0xff] }
 0x337   : > { %v4307_v12 = vpack.c.bf16 %v4291_v8, %v4291_v8 }
 0x338   : > { %3486 = vst.msk [vmem:[#allocation3 + $0x129] sm:$0xff] %vm318_vm1, %v3469_v7  ;;  %v3422_v13 = vadd.f32 %v3394_v0, %v3261_v9  ;;  %6803 = vmatmul.msk.bf16.gmra.mxu0 %vm318_vm1, %v8209_v41 }
 0x339   : > { %6826 = vmatmul.msk.bf16.gmra.mxu3 %vm318_vm1, %v8209_v41  ;;  %6811 = vmatmul.msk.bf16.gmra.mxu1 %vm318_vm1, %v8058_v59  ;;  %v4308_v59 = vpack.c.bf16 %v4292_v25, %v4292_v25  ;;  %v4339_v56 = vunpack.c.l.b16 %v4307_v12 }
 0x33a   : > { %6819 = vmatmul.msk.bf16.gmra.mxu2 %vm318_vm1, %v8045_v45  ;;  %v3438_v5 = vmul.f32 %v8126_v58, %v3422_v13 }
 0x33b   : > { %v4340_v52 = vunpack.c.l.b16 %v4308_v59 }
 0x33c   : > { %v3766_v35 = vpop.f32.mrf.mxu3  ;;  %v3454_v53 = vadd.f32 %v8137_v16, %v3438_v5 }
 0x33d   : > { %v8222_v38 = vadd.f32 %v3766_v35, %v3650_v36  ;;  %v3655_v14 = vpop.f32.mrf.mxu2  ;;  %v3235_v18 = vpop.f32.mrf.mxu0  ;;  %v8231_v24 = vpack.c.b16 %v4340_v52, %v4339_v56 }
 0x33e   : > { %v3470_v29 = vmax.f32 %v3454_v53, 0.0  ;;  %v3262_v62 = vadd.f32 %v3235_v18, %v8056_v37  ;;  %v3396_v54 = vpop.f32.mrf.mxu1 }
 0x340   : > { %3487 = vst.msk [vmem:[#allocation3 + $0x139] sm:$0xff] %vm318_vm1, %v3470_v29  ;;  %v3423_v45 = vadd.f32 %v3396_v54, %v3262_v62 }
 0x342   : > { %v3439_v27 = vmul.f32 %v8126_v58, %v3423_v45 }
 0x344   : > { %v3768_v26 = vpop.f32.mrf.mxu3  ;;  %v3455_v36 = vadd.f32 %v8137_v16, %v3439_v27  ;;  %v4296_v27 = vld [vmem:[#allocation3 + $0xb2] sm:$0xff] }
 0x345   : > { %v8228_v21 = vadd.f32 %v3768_v26, %v3652_v61  ;;  %v3657_v22 = vpop.f32.mrf.mxu2  ;;  %v3238_v15 = vpop.f32.mrf.mxu0 }
 0x346   : > { %v3471_v31 = vmax.f32 %v3455_v36, 0.0  ;;  %v3263_v37 = vadd.f32 %v3238_v15, %v8071_v51  ;;  %v3399_v63 = vpop.f32.mrf.mxu1  ;;  %v4293_v51 = vld [vmem:[#allocation3 + $0x92] sm:$0xff]  ;;  %v3970_v36 = vld [vmem:[#allocation3 + $0xc8] sm:$0xff] }
 0x347   : > { %v4309_v0 = vpack.c.bf16 %v4293_v51, %v4293_v51 }
 0x348   : > { %3488 = vst.msk [vmem:[#allocation3 + $0x141] sm:$0xff] %vm318_vm1, %v3471_v31  ;;  %v3424_v30 = vadd.f32 %v3399_v63, %v3263_v37  ;;  %6804 = vmatmul.msk.bf16.gmra.mxu0 %vm318_vm1, %v8231_v24 }
 0x349   : > { %6827 = vmatmul.msk.bf16.gmra.mxu3 %vm318_vm1, %v8231_v24  ;;  %6812 = vmatmul.msk.bf16.gmra.mxu1 %vm318_vm1, %v8082_v6  ;;  %v4310_v6 = vpack.c.bf16 %v4294_v33, %v4294_v33  ;;  %v4341_v5 = vunpack.c.l.b16 %v4309_v0 }
 0x34a   : > { %6820 = vmatmul.msk.bf16.gmra.mxu2 %vm318_vm1, %v8061_v43  ;;  %v3440_v1 = vmul.f32 %v8126_v58, %v3424_v30  ;;  %v4312_v30 = vpack.c.bf16 %v4296_v27, %v4296_v27  ;;  %v4298_v27 = vld [vmem:[#allocation3 + $0xca] sm:$0xff] }
 0x34b   : > { %v4342_v35 = vunpack.c.l.b16 %v4310_v6 }
 0x34c   : > { %v3771_v50 = vpop.f32.mrf.mxu3  ;;  %v3456_v40 = vadd.f32 %v8137_v16, %v3440_v1  ;;  %v4133_v1 = vld [vmem:[#allocation3 + $0xc1] sm:$0xff] }
 0x34d   : > { %v8244_v34 = vadd.f32 %v3771_v50, %v3655_v14  ;;  %v3660_v19 = vpop.f32.mrf.mxu2  ;;  %v3240_v61 = vpop.f32.mrf.mxu0  ;;  %v8253_v62 = vpack.c.b16 %v4342_v35, %v4341_v5  ;;  %v3986_v50 = vpack.c.bf16 %v3970_v36, %v3970_v36 }
 0x34e   : > { %v3472_v4 = vmax.f32 %v3456_v40, 0.0  ;;  %v3264_v7 = vadd.f32 %v3240_v61, %v8074_v2  ;;  %v3401_v9 = vpop.f32.mrf.mxu1 }
 0x34f   : > { %v4018_v0 = vunpack.c.l.b16 %v3986_v50  ;;  %v4314_v50 = vpack.c.bf16 %v4298_v27, %v4298_v27  ;;  %v4615_v27 = vld [vmem:[#allocation3 + $0x51] sm:$0xff] }
 0x350   : > { %3489 = vst.msk [vmem:[#allocation3 + $0x151] sm:$0xff] %vm318_vm1, %v3472_v4  ;;  %v3425_v43 = vadd.f32 %v3401_v9, %v3264_v7  ;;  %v4344_v7 = vunpack.c.l.b16 %v4312_v30 }
 0x352   : > { %v3441_v13 = vmul.f32 %v8126_v58, %v3425_v43 }
 0x354   : > { %v3773_v8 = vpop.f32.mrf.mxu3  ;;  %v3457_v53 = vadd.f32 %v8137_v16, %v3441_v13 }
 0x355   : > { %v8250_v25 = vadd.f32 %v3773_v8, %v3657_v22  ;;  %v3662_v14 = vpop.f32.mrf.mxu2  ;;  %v3243_v18 = vpop.f32.mrf.mxu0  ;;  %v4134_v22 = vld [vmem:[#allocation3 + $0xc9] sm:$0xff] }
 0x356   : > { %v3473_v29 = vmax.f32 %v3457_v53, 0.0  ;;  %v3265_v2 = vadd.f32 %v3243_v18, %v8108_v57  ;;  %v3404_v54 = vpop.f32.mrf.mxu1  ;;  %v4295_v57 = vld [vmem:[#allocation3 + $0xaa] sm:$0xff]  ;;  %v4150_v51 = vpack.c.bf16 %v4134_v22, %v4134_v22 }
 0x357   : > { %v4311_v63 = vpack.c.bf16 %v4295_v57, %v4295_v57  ;;  %v4297_v57 = vld [vmem:[#allocation3 + $0xc2] sm:$0xff] }
 0x358   : > { %3490 = vst.msk [vmem:[#allocation3 + $0x159] sm:$0xff] %vm318_vm1, %v3473_v29  ;;  %v3426_v12 = vadd.f32 %v3404_v54, %v3265_v2  ;;  %6805 = vmatmul.msk.bf16.gmra.mxu0 %vm318_vm1, %v8253_v62  ;;  %v4182_v6 = vunpack.c.l.b16 %v4150_v51  ;;  %v4612_v51 = vld [vmem:[#allocation3 + $0x31] sm:$0xff] }
 0x359   : > { %6828 = vmatmul.msk.bf16.gmra.mxu3 %vm318_vm1, %v8253_v62  ;;  %6813 = vmatmul.msk.bf16.gmra.mxu1 %vm318_vm1, %v8113_v46  ;;  %v4343_v4 = vunpack.c.l.b16 %v4311_v63 }
 0x35a   : > { %6821 = vmatmul.msk.bf16.gmra.mxu2 %vm318_vm1, %v8086_v60  ;;  %v3442_v59 = vmul.f32 %v8126_v58, %v3426_v12  ;;  %v3969_v60 = vld [vmem:[#allocation3 + $0xc0] sm:$0xff] }
 0x35b   : > { %v3985_v40 = vpack.c.bf16 %v3969_v60, %v3969_v60  ;;  %v8275_v18 = vpack.c.b16 %v4344_v7, %v4343_v4  ;;  %v4346_v7 = vunpack.c.l.b16 %v4314_v50 }
 0x35c   : > { %v3776_v45 = vpop.f32.mrf.mxu3  ;;  %v3458_v52 = vadd.f32 %v8137_v16, %v3442_v59  ;;  %v4449_v59 = vld [vmem:[#allocation3 + $0x38] sm:$0xff] }
 0x35d   : > { %v8266_v56 = vadd.f32 %v3776_v45, %v3660_v19  ;;  %v3665_v26 = vpop.f32.mrf.mxu2  ;;  %v3245_v15 = vpop.f32.mrf.mxu0  ;;  %v4149_v19 = vpack.c.bf16 %v4133_v1, %v4133_v1  ;;  %v4017_v35 = vunpack.c.l.b16 %v3985_v40  ;;  %v4313_v1 = vpack.c.bf16 %v4297_v57, %v4297_v57 }
 0x35e   : > { %v3474_v31 = vmax.f32 %v3458_v52, 0.0  ;;  %v3266_v37 = vadd.f32 %v3245_v15, %v8111_v49  ;;  %v3406_v46 = vpop.f32.mrf.mxu1  ;;  %v4613_v15 = vld [vmem:[#allocation3 + $0x39] sm:$0xff] }
 0x35f   : > { %v4181_v8 = vunpack.c.l.b16 %v4149_v19  ;;  %v8278_v54 = vpack.c.b16 %v4018_v0, %v4017_v35  ;;  %v4628_v19 = vpack.c.bf16 %v4612_v51, %v4612_v51  ;;  %v4345_v4 = vunpack.c.l.b16 %v4313_v1 }
 0x360   : > { %3491 = vst.msk [vmem:[#allocation3 + $0x169] sm:$0xff] %vm318_vm1, %v3474_v31  ;;  %v3427_v33 = vadd.f32 %v3406_v46, %v3266_v37  ;;  %v4448_v37 = vld [vmem:[#allocation3 + $0x30] sm:$0xff]  ;;  %v4465_v46 = vpack.c.bf16 %v4449_v59, %v4449_v59 }
 0x361   : > { %v8280_v12 = vpack.c.b16 %v4182_v6, %v4181_v8 }
 0x362   : > { %v3443_v61 = vmul.f32 %v8126_v58, %v3427_v33  ;;  %v4629_v33 = vpack.c.bf16 %v4613_v15, %v4613_v15 }
 0x364   : > { %v3778_v9 = vpop.f32.mrf.mxu3  ;;  %v3459_v43 = vadd.f32 %v8137_v16, %v3443_v61  ;;  %v4661_v6 = vunpack.c.l.b16 %v4629_v33 }
 0x365   : > { %v8272_v49 = vadd.f32 %v3778_v9, %v3662_v14  ;;  %v3667_v13 = vpop.f32.mrf.mxu2  ;;  %v3248_v5 = vpop.f32.mrf.mxu0  ;;  %v4497_v9 = vunpack.c.l.b16 %v4465_v46 }
 0x366   : > { %v3475_v53 = vmax.f32 %v3459_v43, 0.0  ;;  %v3267_v29 = vadd.f32 %v3248_v5, %v8132_v42  ;;  %v3409_v2 = vpop.f32.mrf.mxu1 }
 0x368   : > { %3492 = vst.msk [vmem:[#allocation3 + $0x171] sm:$0xff] %vm318_vm1, %v3475_v53  ;;  %v3428_v14 = vadd.f32 %v3409_v2, %v3267_v29  ;;  %6806 = vmatmul.msk.bf16.gmra.mxu0 %vm318_vm1, %v8275_v18  ;;  %v4660_v53 = vunpack.c.l.b16 %v4628_v19  ;;  %v8301_v2 = vpack.c.b16 %v4346_v7, %v4345_v4 }
 0x369   : > { %6829 = vmatmul.msk.bf16.gmra.mxu3 %vm318_vm1, %v8275_v18  ;;  %6814 = vmatmul.msk.bf16.gmra.mxu1 %vm318_vm1, %v8278_v54 }
 0x36a   : > { %6822 = vmatmul.msk.bf16.gmra.mxu2 %vm318_vm1, %v8280_v12  ;;  %v3444_v42 = vmul.f32 %v8126_v58, %v3428_v14  ;;  %v4676_v59 = vpack.c.b16 %v4661_v6, %v4660_v53  ;;  %v5078_v6 = vld [vmem:[#allocation3 + $0xe1] sm:$0xff] }
 0x36c   : > { %v3781_v45 = vpop.f32.mrf.mxu3  ;;  %v3460_v36 = vadd.f32 %v8137_v16, %v3444_v42 }
 0x36d   : > { %v8292_v52 = vadd.f32 %v3781_v45, %v3665_v26  ;;  %v3670_v22 = vpop.f32.mrf.mxu2  ;;  %v3250_v31 = vpop.f32.mrf.mxu0  ;;  %v4464_v26 = vpack.c.bf16 %v4448_v37, %v4448_v37 }
 0x36e   : > { %v3476_v63 = vmax.f32 %v3460_v36, 0.0  ;;  %v3268_v30 = vadd.f32 %v3250_v31, %v8143_v32  ;;  %v3411_v60 = vpop.f32.mrf.mxu1  ;;  %v4450_v31 = vld [vmem:[#allocation3 + $0x48] sm:$0xff] }
 0x36f   : > { %v4496_v35 = vunpack.c.l.b16 %v4464_v26 }
 0x370   : > { %3493 = vst.msk [vmem:[#allocation3 + $0x181] sm:$0xff] %vm318_vm1, %v3476_v63  ;;  %v3429_v40 = vadd.f32 %v3411_v60, %v3268_v30  ;;  %v4631_v30 = vpack.c.bf16 %v4615_v27, %v4615_v27  ;;  %v4466_v60 = vpack.c.bf16 %v4450_v31, %v4450_v31 }
 0x372   : > { %v3445_v61 = vmul.f32 %v8126_v58, %v3429_v40  ;;  %v4512_v58 = vpack.c.b16 %v4497_v9, %v4496_v35  ;;  %v4663_v51 = vunpack.c.l.b16 %v4631_v30  ;;  %v4498_v33 = vunpack.c.l.b16 %v4466_v60  ;;  %v4617_v35 = vld [vmem:[#allocation3 + $0x69] sm:$0xff] }
 0x374   : > { %v3783_v0 = vpop.f32.mrf.mxu3  ;;  %v3461_v32 = vadd.f32 %v8137_v16, %v3445_v61 }
 0x375   : > { %v8298_v43 = vadd.f32 %v3783_v0, %v3667_v13  ;;  %v3672_v5 = vpop.f32.mrf.mxu2  ;;  %v3899_v8 = vpop.f32.mrf.mxu0 }
 0x376   : > { %v3477_v29 = vmax.f32 %v3461_v32, 0.0  ;;  %v3939_v14 = vadd.f32 %v3899_v8, %v8156_v20  ;;  %v4063_v42 = vpop.f32.mrf.mxu1  ;;  %v4451_v20 = vld [vmem:[#allocation3 + $0x50] sm:$0xff]  ;;  %v4453_v32 = vld [vmem:[#allocation3 + $0x68] sm:$0xff] }
 0x377   : > { %v4467_v63 = vpack.c.bf16 %v4451_v20, %v4451_v20 }
 0x378   : > { %3494 = vst.msk [vmem:[#allocation3 + $0x189] sm:$0xff] %vm318_vm1, %v3477_v29  ;;  %v4103_v13 = vadd.f32 %v4063_v42, %v3939_v14  ;;  %6831 = vmatmul.msk.bf16.vlgmr.msra.gmra.mxu0 %vm318_vm1, %v4512_v58  ;;  %v5077_v29 = vld [vmem:[#allocation3 + $0xd9] sm:$0xff] }
 0x379   : > { %6830 = vmatmul.msk.bf16.gmra.mxu3 %vm318_vm1, %v8301_v2  ;;  %6839 = vmatmul.msk.bf16.vlgmr.msra.gmra.mxu1 %vm318_vm1, %v4676_v59  ;;  %v4499_v1 = vunpack.c.l.b16 %v4467_v63  ;;  %v4452_v14 = vld [vmem:[#allocation3 + $0x60] sm:$0xff]  ;;  %v5094_v59 = vpack.c.bf16 %v5078_v6, %v5078_v6 }
 0x37a   : > { %6847 = vmatmul.msk.bf16.vlgmr.msra.gmra.mxu2 %vm318_vm1, %v8165_v39  ;;  %5919 = vmatpush.bf16.msra.mxu0 %v7952_v47  ;;  %v4614_v39 = vld [vmem:[#allocation3 + $0x49] sm:$0xff] }
 0x37b   : > { %6242 = vmatpush.bf16.msra.mxu2 %v8104_v10  ;;  %6081 = vmatpush.bf16.msra.mxu1 %v8101_v3  ;;  %v4630_v47 = vpack.c.bf16 %v4614_v39, %v4614_v39  ;;  %v4513_v4 = vpack.c.b16 %v4499_v1, %v4498_v33 }
 0x37c   : > { %v3786_v16 = vpop.f32.mrf.mxu3 }
 0x37d   : > { %v8314_v45 = vadd.f32 %v3786_v16, %v3670_v22  ;;  %v4227_v57 = vpop.f32.mrf.mxu2  ;;  %v3901_v15 = vpop.f32.mrf.mxu0  ;;  %v4662_v19 = vunpack.c.l.b16 %v4630_v47  ;;  %v4616_v16 = vld [vmem:[#allocation3 + $0x61] sm:$0xff] }
 0x37e   : > { %v4267_v36 = vadd.f32 %v4227_v57, %v4103_v13  ;;  %v3940_v37 = vadd.f32 %v3901_v15, %v8162_v11  ;;  %v4065_v46 = vpop.f32.mrf.mxu1  ;;  %v4469_v13 = vpack.c.bf16 %v4453_v32, %v4453_v32  ;;  %v4468_v57 = vpack.c.bf16 %v4452_v14, %v4452_v14 }
 0x37f   : > { %v4677_v7 = vpack.c.b16 %v4663_v51, %v4662_v19  ;;  %v4632_v27 = vpack.c.bf16 %v4616_v16, %v4616_v16  ;;  %v5126_v15 = vunpack.c.l.b16 %v5094_v59  ;;  %v4455_v19 = vld [vmem:[#allocation3 + $0x80] sm:$0xff] }
 0x380   : > { %v4104_v10 = vadd.f32 %v4065_v46, %v3940_v37  ;;  %v4500_v30 = vunpack.c.l.b16 %v4468_v57 }
 0x381   : > { %v4664_v60 = vunpack.c.l.b16 %v4632_v27 }
 0x384   : > { %v3788_v50 = vpop.f32.mrf.mxu3 }
 0x385   : > { %v8317_v3 = vadd.f32 %v3788_v50, %v3672_v5  ;;  %v4229_v22 = vpop.f32.mrf.mxu2  ;;  %v3904_v26 = vpop.f32.mrf.mxu0 }
 0x386   : > { %v4268_v40 = vadd.f32 %v4229_v22, %v4104_v10  ;;  %v3941_v61 = vadd.f32 %v3904_v26, %v8178_v17  ;;  %v4068_v11 = vpop.f32.mrf.mxu1  ;;  %v5080_v26 = vld [vmem:[#allocation3 + $0xf9] sm:$0xff] }
 0x388   : > { %v4105_v9 = vadd.f32 %v4068_v11, %v3941_v61  ;;  %6832 = vmatmul.msk.bf16.gmra.mxu0 %vm318_vm1, %v4513_v4  ;;  %v4619_v11 = vld [vmem:[#allocation3 + $0x81] sm:$0xff] }
 0x389   : > { %6855 = vmatmul.msk.bf16.vlgmr.msra.gmra.mxu3 %vm318_vm1, %v8280_v12  ;;  %6840 = vmatmul.msk.bf16.gmra.mxu1 %vm318_vm1, %v4677_v7 }
 0x38a   : > { %6848 = vmatmul.msk.bf16.gmra.mxu2 %vm318_vm1, %v8187_v55  ;;  %6403 = vmatpush.bf16.msra.mxu3 %v8080_v48  ;;  %v4633_v55 = vpack.c.bf16 %v4617_v35, %v4617_v35  ;;  %v5093_v48 = vpack.c.bf16 %v5077_v29, %v5077_v29  ;;  %v4471_v35 = vpack.c.bf16 %v4455_v19, %v4455_v19 }
 0x38b   : > { %v4635_v29 = vpack.c.bf16 %v4619_v11, %v4619_v11 }
 0x38c   : > { %v4391_v0 = vpop.f32.mrf.mxu3  ;;  %v4665_v37 = vunpack.c.l.b16 %v4633_v55  ;;  %v5125_v63 = vunpack.c.l.b16 %v5093_v48 }
 0x38d   : > { %v8327_v17 = vadd.f32 %v4391_v0, %v4267_v36  ;;  %v4232_v5 = vpop.f32.mrf.mxu2  ;;  %v3906_v53 = vpop.f32.mrf.mxu0  ;;  %v4501_v36 = vunpack.c.l.b16 %v4469_v13  ;;  %v4454_v0 = vld [vmem:[#allocation3 + $0x78] sm:$0xff]  ;;  %v4667_v16 = vunpack.c.l.b16 %v4635_v29 }
 0x38e   : > { %v4269_v8 = vadd.f32 %v4232_v5, %v4105_v9  ;;  %v3942_v42 = vadd.f32 %v3906_v53, %v8184_v44  ;;  %v4070_v58 = vpop.f32.mrf.mxu1  ;;  %v8332_v47 = vpack.c.b16 %v5126_v15, %v5125_v63  ;;  %v4678_v22 = vpack.c.b16 %v4665_v37, %v4664_v60  ;;  %v5079_v9 = vld [vmem:[#allocation3 + $0xf1] sm:$0xff]  ;;  %v4618_v53 = vld [vmem:[#allocation3 + $0x79] sm:$0xff] }
 0x38f   : > { %v4514_v51 = vpack.c.b16 %v4501_v36, %v4500_v30  ;;  %v5096_v5 = vpack.c.bf16 %v5080_v26, %v5080_v26  ;;  %v4457_v60 = vld [vmem:[#allocation3 + $0x98] sm:$0xff] }
 0x390   : > { %v4106_v20 = vadd.f32 %v4070_v58, %v3942_v42  ;;  %v4470_v42 = vpack.c.bf16 %v4454_v0, %v4454_v0  ;;  %v4634_v58 = vpack.c.bf16 %v4618_v53, %v4618_v53  ;;  %v4473_v11 = vpack.c.bf16 %v4457_v60, %v4457_v60 }
 0x391   : > { %v5128_v59 = vunpack.c.l.b16 %v5096_v5 }
 0x392   : > { %v4502_v57 = vunpack.c.l.b16 %v4470_v42  ;;  %v4666_v15 = vunpack.c.l.b16 %v4634_v58 }
 0x394   : > { %v4393_v31 = vpop.f32.mrf.mxu3 }
 0x395   : > { %v8330_v46 = vadd.f32 %v4393_v31, %v4268_v40  ;;  %v4234_v39 = vpop.f32.mrf.mxu2  ;;  %v3909_v44 = vpop.f32.mrf.mxu0 }
 0x396   : > { %v4270_v10 = vadd.f32 %v4234_v39, %v4106_v20  ;;  %v3943_v1 = vadd.f32 %v3909_v44, %v8200_v28  ;;  %v4073_v50 = vpop.f32.mrf.mxu1  ;;  %v4679_v39 = vpack.c.b16 %v4667_v16, %v4666_v15  ;;  %v5082_v44 = vld [vmem:[#allocation3 + $0x111] sm:$0xff] }
 0x397   : > { %v4459_v15 = vld [vmem:[#allocation3 + $0xb0] sm:$0xff] }
 0x398   : > { %v4107_v33 = vadd.f32 %v4073_v50, %v3943_v1  ;;  %6833 = vmatmul.msk.bf16.gmra.mxu0 %vm318_vm1, %v4514_v51  ;;  %v4621_v50 = vld [vmem:[#allocation3 + $0x99] sm:$0xff] }
 0x399   : > { %6856 = vmatmul.msk.bf16.gmra.mxu3 %vm318_vm1, %v8332_v47  ;;  %6841 = vmatmul.msk.bf16.gmra.mxu1 %vm318_vm1, %v4678_v22 }
 0x39a   : > { %6849 = vmatmul.msk.bf16.gmra.mxu2 %vm318_vm1, %v8209_v41  ;;  %v5095_v41 = vpack.c.bf16 %v5079_v9, %v5079_v9  ;;  %v4637_v9 = vpack.c.bf16 %v4621_v50, %v4621_v50  ;;  %v4475_v50 = vpack.c.bf16 %v4459_v15, %v4459_v15 }
 0x39c   : > { %v4396_v40 = vpop.f32.mrf.mxu3  ;;  %v5127_v20 = vunpack.c.l.b16 %v5095_v41  ;;  %v4669_v53 = vunpack.c.l.b16 %v4637_v9 }
 0x39d   : > { %v8341_v61 = vadd.f32 %v4396_v40, %v4269_v8  ;;  %v4237_v28 = vpop.f32.mrf.mxu2  ;;  %v3911_v7 = vpop.f32.mrf.mxu0  ;;  %v4503_v8 = vunpack.c.l.b16 %v4471_v35  ;;  %v4456_v40 = vld [vmem:[#allocation3 + $0x90] sm:$0xff] }
 0x39e   : > { %v4271_v4 = vadd.f32 %v4237_v28, %v4107_v33  ;;  %v3944_v6 = vadd.f32 %v3911_v7, %v8206_v23  ;;  %v4075_v32 = vpop.f32.mrf.mxu1  ;;  %v8346_v36 = vpack.c.b16 %v5128_v59, %v5127_v20  ;;  %v5081_v33 = vld [vmem:[#allocation3 + $0x109] sm:$0xff]  ;;  %v5098_v28 = vpack.c.bf16 %v5082_v44, %v5082_v44  ;;  %v4620_v7 = vld [vmem:[#allocation3 + $0x91] sm:$0xff] }
 0x39f   : > { %v4515_v63 = vpack.c.b16 %v4503_v8, %v4502_v57 }
 0x3a0   : > { %v4108_v14 = vadd.f32 %v4075_v32, %v3944_v6  ;;  %v4472_v6 = vpack.c.bf16 %v4456_v40, %v4456_v40  ;;  %v4636_v32 = vpack.c.bf16 %v4620_v7, %v4620_v7  ;;  %v5130_v5 = vunpack.c.l.b16 %v5098_v28 }
 0x3a2   : > { %v4504_v42 = vunpack.c.l.b16 %v4472_v6  ;;  %v4668_v59 = vunpack.c.l.b16 %v4636_v32 }
 0x3a4   : > { %v4398_v13 = vpop.f32.mrf.mxu3 }
 0x3a5   : > { %v8344_v55 = vadd.f32 %v4398_v13, %v4270_v10  ;;  %v4239_v48 = vpop.f32.mrf.mxu2  ;;  %v3914_v23 = vpop.f32.mrf.mxu0 }
 0x3a6   : > { %v4272_v27 = vadd.f32 %v4239_v48, %v4108_v14  ;;  %v3945_v31 = vadd.f32 %v3914_v23, %v8222_v38  ;;  %v4078_v37 = vpop.f32.mrf.mxu1  ;;  %v4680_v48 = vpack.c.b16 %v4669_v53, %v4668_v59  ;;  %v5084_v23 = vld [vmem:[#allocation3 + $0x129] sm:$0xff] }
 0x3a8   : > { %v4109_v30 = vadd.f32 %v4078_v37, %v3945_v31  ;;  %6834 = vmatmul.msk.bf16.gmra.mxu0 %vm318_vm1, %v4515_v63  ;;  %v4623_v37 = vld [vmem:[#allocation3 + $0xb1] sm:$0xff] }
 0x3a9   : > { %6857 = vmatmul.msk.bf16.gmra.mxu3 %vm318_vm1, %v8346_v36  ;;  %6842 = vmatmul.msk.bf16.gmra.mxu1 %vm318_vm1, %v4679_v39 }
 0x3aa   : > { %6850 = vmatmul.msk.bf16.gmra.mxu2 %vm318_vm1, %v8231_v24  ;;  %v5097_v24 = vpack.c.bf16 %v5081_v33, %v5081_v33  ;;  %v4639_v33 = vpack.c.bf16 %v4623_v37, %v4623_v37 }
 0x3ac   : > { %v4401_v10 = vpop.f32.mrf.mxu3  ;;  %v5129_v14 = vunpack.c.l.b16 %v5097_v24  ;;  %v4671_v7 = vunpack.c.l.b16 %v4639_v33  ;;  %v4463_v33 = vld [vmem:[#allocation3 + $0xe0] sm:$0xff] }
 0x3ad   : > { %v8355_v1 = vadd.f32 %v4401_v10, %v4271_v4  ;;  %v4242_v38 = vpop.f32.mrf.mxu2  ;;  %v3916_v22 = vpop.f32.mrf.mxu0  ;;  %v4505_v4 = vunpack.c.l.b16 %v4473_v11  ;;  %v4458_v10 = vld [vmem:[#allocation3 + $0xa8] sm:$0xff] }
 0x3ae   : > { %v4273_v51 = vadd.f32 %v4242_v38, %v4109_v30  ;;  %v3946_v26 = vadd.f32 %v3916_v22, %v8228_v21  ;;  %v4080_v19 = vpop.f32.mrf.mxu1  ;;  %v8360_v8 = vpack.c.b16 %v5130_v5, %v5129_v14  ;;  %v5083_v30 = vld [vmem:[#allocation3 + $0x121] sm:$0xff]  ;;  %v5100_v38 = vpack.c.bf16 %v5084_v23, %v5084_v23  ;;  %v4622_v22 = vld [vmem:[#allocation3 + $0xa9] sm:$0xff] }
 0x3af   : > { %v4516_v20 = vpack.c.b16 %v4505_v4, %v4504_v42 }
 0x3b0   : > { %v4110_v0 = vadd.f32 %v4080_v19, %v3946_v26  ;;  %v4474_v26 = vpack.c.bf16 %v4458_v10, %v4458_v10  ;;  %v4638_v19 = vpack.c.bf16 %v4622_v22, %v4622_v22  ;;  %v5132_v28 = vunpack.c.l.b16 %v5100_v38  ;;  %v5088_v22 = vld [vmem:[#allocation3 + $0x159] sm:$0xff] }
 0x3b2   : > { %v4506_v6 = vunpack.c.l.b16 %v4474_v26  ;;  %v4670_v5 = vunpack.c.l.b16 %v4638_v19  ;;  %v4791_v26 = vld [vmem:[#allocation3 + $0xe2] sm:$0xff] }
 0x3b4   : > { %v4403_v35 = vpop.f32.mrf.mxu3 }
 0x3b5   : > { %v8358_v29 = vadd.f32 %v4403_v35, %v4272_v27  ;;  %v4244_v41 = vpop.f32.mrf.mxu2  ;;  %v3919_v21 = vpop.f32.mrf.mxu0 }
 0x3b6   : > { %v4274_v58 = vadd.f32 %v4244_v41, %v4110_v0  ;;  %v3947_v13 = vadd.f32 %v3919_v21, %v8244_v34  ;;  %v4083_v16 = vpop.f32.mrf.mxu1  ;;  %v4681_v41 = vpack.c.b16 %v4671_v7, %v4670_v5  ;;  %v5086_v21 = vld [vmem:[#allocation3 + $0x141] sm:$0xff] }
 0x3b8   : > { %v4111_v57 = vadd.f32 %v4083_v16, %v3947_v13  ;;  %6835 = vmatmul.msk.bf16.gmra.mxu0 %vm318_vm1, %v4516_v20  ;;  %v5085_v20 = vld [vmem:[#allocation3 + $0x139] sm:$0xff] }
 0x3b9   : > { %6858 = vmatmul.msk.bf16.gmra.mxu3 %vm318_vm1, %v8360_v8  ;;  %6843 = vmatmul.msk.bf16.gmra.mxu1 %vm318_vm1, %v4680_v48  ;;  %v5101_v15 = vpack.c.bf16 %v5085_v20, %v5085_v20 }
 0x3ba   : > { %6851 = vmatmul.msk.bf16.gmra.mxu2 %vm318_vm1, %v8253_v62  ;;  %v5099_v62 = vpack.c.bf16 %v5083_v30, %v5083_v30 }
 0x3bb   : > { %v5133_v30 = vunpack.c.l.b16 %v5101_v15 }
 0x3bc   : > { %v4406_v27 = vpop.f32.mrf.mxu3  ;;  %v5131_v0 = vunpack.c.l.b16 %v5099_v62  ;;  %v4790_v62 = vld [vmem:[#allocation3 + $0xda] sm:$0xff] }
 0x3bd   : > { %v8369_v31 = vadd.f32 %v4406_v27, %v4273_v51  ;;  %v4247_v34 = vpop.f32.mrf.mxu2  ;;  %v3921_v39 = vpop.f32.mrf.mxu0  ;;  %v4507_v51 = vunpack.c.l.b16 %v4475_v50  ;;  %v5102_v27 = vpack.c.bf16 %v5086_v21, %v5086_v21 }
 0x3be   : > { %v4275_v63 = vadd.f32 %v4247_v34, %v4111_v57  ;;  %v3948_v44 = vadd.f32 %v3921_v39, %v8250_v25  ;;  %v4085_v60 = vpop.f32.mrf.mxu1  ;;  %v8374_v4 = vpack.c.b16 %v5132_v28, %v5131_v0 }
 0x3bf   : > { %v4517_v14 = vpack.c.b16 %v4507_v51, %v4506_v6  ;;  %v5134_v34 = vunpack.c.l.b16 %v5102_v27  ;;  %v5087_v51 = vld [vmem:[#allocation3 + $0x151] sm:$0xff]  ;;  %v4806_v6 = vpack.c.bf16 %v4790_v62, %v4790_v62 }
 0x3c0   : > { %v4112_v40 = vadd.f32 %v4085_v60, %v3948_v44  ;;  %v5103_v5 = vpack.c.bf16 %v5087_v51, %v5087_v51 }
 0x3c4   : > { %v4408_v11 = vpop.f32.mrf.mxu3 }
 0x3c5   : > { %v8372_v9 = vadd.f32 %v4408_v11, %v4274_v58  ;;  %v4249_v24 = vpop.f32.mrf.mxu2  ;;  %v3924_v25 = vpop.f32.mrf.mxu0  ;;  %v4462_v11 = vld [vmem:[#allocation3 + $0xd8] sm:$0xff] }
 0x3c6   : > { %v4276_v32 = vadd.f32 %v4249_v24, %v4112_v40  ;;  %v3949_v35 = vadd.f32 %v3924_v25, %v8266_v56  ;;  %v4088_v53 = vpop.f32.mrf.mxu1  ;;  %v5104_v24 = vpack.c.bf16 %v5088_v22, %v5088_v22 }
 0x3c8   : > { %v4113_v42 = vadd.f32 %v4088_v53, %v3949_v35  ;;  %6836 = vmatmul.msk.bf16.gmra.mxu0 %vm318_vm1, %v4517_v14  ;;  %v4478_v35 = vpack.c.bf16 %v4462_v11, %v4462_v11  ;;  %v5136_v53 = vunpack.c.l.b16 %v5104_v24 }
 0x3c9   : > { %6859 = vmatmul.msk.bf16.gmra.mxu3 %vm318_vm1, %v8374_v4  ;;  %6844 = vmatmul.msk.bf16.gmra.mxu1 %vm318_vm1, %v4681_v41 }
 0x3ca   : > { %6852 = vmatmul.msk.bf16.gmra.mxu2 %vm318_vm1, %v8275_v18 }
 0x3cc   : > { %v4411_v58 = vpop.f32.mrf.mxu3 }
 0x3cd   : > { %v8383_v59 = vadd.f32 %v4411_v58, %v4275_v63  ;;  %v4252_v13 = vpop.f32.mrf.mxu2  ;;  %v3926_v16 = vpop.f32.mrf.mxu0  ;;  %v8388_v63 = vpack.c.b16 %v5134_v34, %v5133_v30 }
 0x3ce   : > { %v4277_v56 = vadd.f32 %v4252_v13, %v4113_v42  ;;  %v3950_v48 = vadd.f32 %v3926_v16, %v8272_v49  ;;  %v4090_v57 = vpop.f32.mrf.mxu1  ;;  %v4838_v42 = vunpack.c.l.b16 %v4806_v6  ;;  %v5135_v13 = vunpack.c.l.b16 %v5103_v5  ;;  %v8438_v6 = vld [vmem:[%s8884_s5] ss:$0 sm:$0xff] }
 0x3cf   : > { %v4510_v16 = vunpack.c.l.b16 %v4478_v35 }
 0x3d0   : > { %v4114_v23 = vadd.f32 %v4090_v57, %v3950_v48  ;;  %v8404_v48 = vpack.c.b16 %v5136_v53, %v5135_v13  ;;  %v5496_v53 = vld [vmem:[#allocation3 + $0xf0] sm:$0xff] }
 0x3d4   : > { %v4413_v37 = vpop.f32.mrf.mxu3 }
 0x3d5   : > { %v8386_v39 = vadd.f32 %v4413_v37, %v4276_v32  ;;  %v4254_v18 = vpop.f32.mrf.mxu2  ;;  %v3929_v44 = vpop.f32.mrf.mxu0  ;;  %v4807_v32 = vpack.c.bf16 %v4791_v26, %v4791_v26 }
 0x3d6   : > { %v4278_v10 = vadd.f32 %v4254_v18, %v4114_v23  ;;  %v3951_v60 = vadd.f32 %v3929_v44, %v8292_v52  ;;  %v4093_v38 = vpop.f32.mrf.mxu1 }
 0x3d7   : > { %v4839_v58 = vunpack.c.l.b16 %v4807_v32 }
 0x3d8   : > { %v4115_v49 = vadd.f32 %v4093_v38, %v3951_v60  ;;  %6837 = vmatmul.msk.bf16.gmra.mxu0 %vm318_vm1, %v8278_v54  ;;  %v5089_v60 = vld [vmem:[#allocation3 + $0x169] sm:$0xff] }
 0x3d9   : > { %6860 = vmatmul.msk.bf16.gmra.mxu3 %vm318_vm1, %v8388_v63  ;;  %6845 = vmatmul.msk.bf16.gmra.mxu1 %vm318_vm1, %v8280_v12  ;;  %v4479_v12 = vpack.c.bf16 %v4463_v33, %v4463_v33  ;;  %v8409_v15 = vpack.c.b16 %v4839_v58, %v4838_v42  ;;  %v5105_v33 = vpack.c.bf16 %v5089_v60, %v5089_v60  ;;  %v4940_v58 = vld [vmem:[%s7322_s23] sm:$0xff] }
 0x3da   : > { %6853 = vmatmul.msk.bf16.gmra.mxu2 %vm318_vm1, %v8301_v2 }
 0x3db   : > { %v4511_v14 = vunpack.c.l.b16 %v4479_v12 }
 0x3dc   : > { %v4416_v50 = vpop.f32.mrf.mxu3 }
 0x3dd   : > { %v8399_v40 = vadd.f32 %v4416_v50, %v4277_v56  ;;  %v4257_v52 = vpop.f32.mrf.mxu2  ;;  %v3931_v28 = vpop.f32.mrf.mxu0  ;;  %v8407_v23 = vpack.c.b16 %v4511_v14, %v4510_v16 }
 0x3de   : > { %v4279_v19 = vadd.f32 %v4257_v52, %v4115_v49  ;;  %v3952_v7 = vadd.f32 %v3931_v28, %v8298_v43  ;;  %v4095_v0 = vpop.f32.mrf.mxu1  ;;  %v5137_v28 = vunpack.c.l.b16 %v5105_v33 }
 0x3e0   : > { %v4116_v25 = vadd.f32 %v4095_v0, %v3952_v7 }
 0x3e4   : > { %v4418_v41 = vpop.f32.mrf.mxu3 }
 0x3e5   : > { %v8402_v21 = vadd.f32 %v4418_v41, %v4278_v10  ;;  %v4259_v56 = vpop.f32.mrf.mxu2  ;;  %v3934_v43 = vpop.f32.mrf.mxu0 }
 0x3e6   : > { %v4280_v20 = vadd.f32 %v4259_v56, %v4116_v25  ;;  %v3953_v57 = vadd.f32 %v3934_v43, %v8314_v45  ;;  %v4098_v27 = vpop.f32.mrf.mxu1  ;;  %v5090_v45 = vld [vmem:[#allocation3 + $0x171] sm:$0xff]  ;;  %v5512_v56 = vpack.c.bf16 %v5496_v53, %v5496_v53 }
 0x3e7   : > { %v5106_v50 = vpack.c.bf16 %v5090_v45, %v5090_v45  ;;  %v5497_v25 = vld [vmem:[#allocation3 + $0xf8] sm:$0xff] }
 0x3e8   : > { %v4117_v34 = vadd.f32 %v4098_v27, %v3953_v57  ;;  %6838 = vmatmul.msk.bf16.gmra.mxu0 %vm318_vm1, %v8407_v23  ;;  %v5513_v42 = vpack.c.bf16 %v5497_v25, %v5497_v25 }
 0x3e9   : > { %6861 = vmatmul.msk.bf16.gmra.mxu3 %vm318_vm1, %v8404_v48  ;;  %6846 = vmatmul.msk.bf16.gmra.mxu1 %vm318_vm1, %v8332_v47  ;;  %v5138_v52 = vunpack.c.l.b16 %v5106_v50 }
 0x3ea   : > { %6854 = vmatmul.msk.bf16.gmra.mxu2 %vm318_vm1, %v8409_v15  ;;  %v5545_v57 = vunpack.c.l.b16 %v5513_v42 }
 0x3ec   : > { %v4421_v37 = vpop.f32.mrf.mxu3 }
 0x3ed   : > { %v8419_v30 = vadd.f32 %v4421_v37, %v4279_v19  ;;  %v4262_v18 = vpop.f32.mrf.mxu2  ;;  %v3936_v44 = vpop.f32.mrf.mxu0  ;;  %v8424_v19 = vpack.c.b16 %v5138_v52, %v5137_v28  ;;  %v5337_v52 = vld [vmem:[#allocation3 + $0xf2] sm:$0xff] }
 0x3ee   : > { %v4281_v10 = vadd.f32 %v4262_v18, %v4117_v34  ;;  %v3954_v38 = vadd.f32 %v3936_v44, %v8317_v3  ;;  %v4100_v49 = vpop.f32.mrf.mxu1  ;;  %v5544_v18 = vunpack.c.l.b16 %v5512_v56  ;;  %v5499_v28 = vld [vmem:[#allocation3 + $0x110] sm:$0xff] }
 0x3ef   : > { %v5515_v25 = vpack.c.bf16 %v5499_v28, %v5499_v28 }
 0x3f0   : > { %v4118_v22 = vadd.f32 %v4100_v49, %v3954_v38  ;;  %v8464_v38 = vpack.c.b16 %v5545_v57, %v5544_v18  ;;  %v4941_v49 = vld [vmem:[%s7322_s23 + $0x8] sm:$0xff]  ;;  %v4943_v18 = vld [vmem:[%s7322_s23 + $0x18] sm:$0xff] }
 0x3f4   : > { %v4423_v62 = vpop.f32.mrf.mxu3 }
 0x3f5   : > { %v8422_v26 = vadd.f32 %v4423_v62, %v4280_v20  ;;  %v4264_v51 = vpop.f32.mrf.mxu2  ;;  %v4556_v7 = vpop.f32.mrf.mxu0  ;;  %v5338_v62 = vld [vmem:[#allocation3 + $0xfa] sm:$0xff] }
 0x3f6   : > { %v4282_v11 = vadd.f32 %v4264_v51, %v4118_v22  ;;  %v4720_v0 = vpop.f32.mrf.mxu1  ;;  %v4596_v24 = vadd.f32 %v4556_v7, %v8327_v17 }
 0x3f8   : > { %6863 = vmatmul.msk.bf16.vlgmr.msrb.gmra.mxu0 %vm318_vm1, %v8278_v54  ;;  %v4760_v12 = vadd.f32 %v4720_v0, %v4596_v24  ;;  %v8445_v54 = vld [vmem:[%s8885_s6] ss:$0 sm:$0xff]  ;;  %v5353_v0 = vpack.c.bf16 %v5337_v52, %v5337_v52  ;;  %v5498_v24 = vld [vmem:[#allocation3 + $0x108] sm:$0xff] }
 0x3f9   : > { %6862 = vmatmul.msk.bf16.gmra.mxu3 %vm318_vm1, %v8424_v19  ;;  %6871 = vmatmul.msk.bf16.vlgmr.msrb.gmra.mxu1 %vm318_vm1, %v8301_v2 }
 0x3fa   : > { %6879 = vmatmul.msk.bf16.vlgmr.msrb.gmra.mxu2 %vm318_vm1, %v8407_v23  ;;  %v5385_v53 = vunpack.c.l.b16 %v5353_v0 }
 0x3fc   : > { %v4426_v3 = vpop.f32.mrf.mxu3 }
 0x3fd   : > { %v8440_v17 = vadd.f32 %v4426_v3, %v4281_v10  ;;  %v4884_v32 = vpop.f32.mrf.mxu2  ;;  %v4558_v2 = vpop.f32.mrf.mxu0 }
 0x3fe   : > { %v4924_v5 = vadd.f32 %v4884_v32, %v4760_v12  ;;  %v4722_v35 = vpop.f32.mrf.mxu1  ;;  %v4597_v41 = vadd.f32 %v4558_v2, %v8330_v46  ;;  %v5354_v32 = vpack.c.bf16 %v5338_v62, %v5338_v62 }
 0x400   : > { %v4959_v14 = vmul.f32 %v8438_v6, %v4924_v5  ;;  %v4761_v43 = vadd.f32 %v4722_v35, %v4597_v41  ;;  %v4942_v5 = vld [vmem:[%s7322_s23 + $0x10] sm:$0xff]  ;;  %v5514_v35 = vpack.c.bf16 %v5498_v24, %v5498_v24  ;;  %v4944_v24 = vld [vmem:[%s7322_s23 + $0x20] sm:$0xff] }
 0x402   : > { %v4978_v13 = vadd.f32 %v8445_v54, %v4959_v14 }
 0x404   : > { %v4428_v16 = vpop.f32.mrf.mxu3  ;;  %v4994_v20 = vadd.f32 %v4978_v13, %v4940_v58  ;;  %v5386_v58 = vunpack.c.l.b16 %v5354_v32  ;;  %v5547_v13 = vunpack.c.l.b16 %v5515_v25 }
 0x405   : > { %v8451_v27 = vadd.f32 %v4428_v16, %v4282_v11  ;;  %v4886_v46 = vpop.f32.mrf.mxu2  ;;  %v4561_v45 = vpop.f32.mrf.mxu0 }
 0x406   : > { %v5010_v34 = vmax.f32 %v4994_v20, 0.0  ;;  %v4925_v37 = vadd.f32 %v4886_v46, %v4761_v43  ;;  %v4725_v10 = vpop.f32.mrf.mxu1  ;;  %v4598_v60 = vadd.f32 %v4561_v45, %v8341_v61 }
 0x408   : > { %5026 = vst.msk [vmem:[%s8458_s18] sm:$0xff] %vm318_vm1, %v5010_v34  ;;  %v4960_v44 = vmul.f32 %v8438_v6, %v4925_v37  ;;  %6864 = vmatmul.msk.bf16.gmra.mxu0 %vm318_vm1, %v8407_v23  ;;  %v4762_v33 = vadd.f32 %v4725_v10, %v4598_v60  ;;  %v8490_v37 = vpack.c.b16 %v5386_v58, %v5385_v53 }
 0x409   : > { %6887 = vmatmul.msk.bf16.vlgmr.msrb.gmra.mxu3 %vm318_vm1, %v8332_v47  ;;  %6872 = vmatmul.msk.bf16.gmra.mxu1 %vm318_vm1, %v8409_v15 }
 0x40a   : > { %v4979_v50 = vadd.f32 %v8445_v54, %v4960_v44  ;;  %6880 = vmatmul.msk.bf16.gmra.mxu2 %vm318_vm1, %v8464_v38 }
 0x40c   : > { %v8476_v22 = vpop.f32.mrf.mxu3  ;;  %v4995_v61 = vadd.f32 %v4979_v50, %v4941_v49  ;;  %v5339_v49 = vld [vmem:[#allocation3 + $0x10a] sm:$0xff]  ;;  %v5340_v50 = vld [vmem:[#allocation3 + $0x112] sm:$0xff] }
 0x40d   : > { %v4889_v47 = vpop.f32.mrf.mxu2  ;;  %v4563_v11 = vpop.f32.mrf.mxu0  ;;  %v5355_v28 = vpack.c.bf16 %v5339_v49, %v5339_v49 }
 0x40e   : > { %v5011_v51 = vmax.f32 %v4995_v61, 0.0  ;;  %v4926_v23 = vadd.f32 %v4889_v47, %v4762_v33  ;;  %v4727_v7 = vpop.f32.mrf.mxu1  ;;  %v4599_v12 = vadd.f32 %v4563_v11, %v8344_v55  ;;  %v5546_v55 = vunpack.c.l.b16 %v5514_v35  ;;  %v5501_v61 = vld [vmem:[#allocation3 + $0x128] sm:$0xff] }
 0x40f   : > { %v5517_v0 = vpack.c.bf16 %v5501_v61, %v5501_v61  ;;  %v5387_v32 = vunpack.c.l.b16 %v5355_v28 }
 0x410   : > { %5027 = vst.msk [vmem:[%s8458_s18 + $0x8] sm:$0xff] %vm318_vm1, %v5011_v51  ;;  %v4961_v3 = vmul.f32 %v8438_v6, %v4926_v23  ;;  %v4763_v42 = vadd.f32 %v4727_v7, %v4599_v12  ;;  %v8492_v45 = vpack.c.b16 %v5547_v13, %v5546_v55  ;;  %v5500_v51 = vld [vmem:[#allocation3 + $0x120] sm:$0xff]  ;;  %v5356_v7 = vpack.c.bf16 %v5340_v50, %v5340_v50 }
 0x411   : > { %v5516_v12 = vpack.c.bf16 %v5500_v51, %v5500_v51  ;;  %v5549_v53 = vunpack.c.l.b16 %v5517_v0 }
 0x412   : > { %v4980_v2 = vadd.f32 %v8445_v54, %v4961_v3  ;;  %v5388_v35 = vunpack.c.l.b16 %v5356_v7 }
 0x414   : > { %v8484_v14 = vpop.f32.mrf.mxu3  ;;  %v4996_v41 = vadd.f32 %v4980_v2, %v4942_v5 }
 0x415   : > { %v4891_v56 = vpop.f32.mrf.mxu2  ;;  %v4566_v43 = vpop.f32.mrf.mxu0 }
 0x416   : > { %v5012_v16 = vmax.f32 %v4996_v41, 0.0  ;;  %v4927_v20 = vadd.f32 %v4891_v56, %v4763_v42  ;;  %v4730_v57 = vpop.f32.mrf.mxu1  ;;  %v4600_v34 = vadd.f32 %v4566_v43, %v8355_v1  ;;  %v8518_v43 = vpack.c.b16 %v5388_v35, %v5387_v32 }
 0x418   : > { %5028 = vst.msk [vmem:[%s8458_s18 + $0x10] sm:$0xff] %vm318_vm1, %v5012_v16  ;;  %v4962_v46 = vmul.f32 %v8438_v6, %v4927_v20  ;;  %6865 = vmatmul.msk.bf16.gmra.mxu0 %vm318_vm1, %v8464_v38  ;;  %v4764_v60 = vadd.f32 %v4730_v57, %v4600_v34  ;;  %v4945_v57 = vld [vmem:[%s7322_s23 + $0x28] sm:$0xff] }
 0x419   : > { %6888 = vmatmul.msk.bf16.gmra.mxu3 %vm318_vm1, %v8346_v36  ;;  %6873 = vmatmul.msk.bf16.gmra.mxu1 %vm318_vm1, %v8490_v37 }
 0x41a   : > { %v4981_v10 = vadd.f32 %v8445_v54, %v4962_v46  ;;  %6881 = vmatmul.msk.bf16.gmra.mxu2 %vm318_vm1, %v8492_v45 }
 0x41c   : > { %v8504_v1 = vpop.f32.mrf.mxu3  ;;  %v4997_v44 = vadd.f32 %v4981_v10, %v4943_v18  ;;  %v5341_v10 = vld [vmem:[#allocation3 + $0x122] sm:$0xff] }
 0x41d   : > { %v4894_v36 = vpop.f32.mrf.mxu2  ;;  %v4568_v47 = vpop.f32.mrf.mxu0 }
 0x41e   : > { %v5013_v33 = vmax.f32 %v4997_v44, 0.0  ;;  %v4928_v52 = vadd.f32 %v4894_v36, %v4764_v60  ;;  %v4732_v62 = vpop.f32.mrf.mxu1  ;;  %v4601_v11 = vadd.f32 %v4568_v47, %v8358_v29  ;;  %v5548_v29 = vunpack.c.l.b16 %v5516_v12  ;;  %v5342_v44 = vld [vmem:[#allocation3 + $0x12a] sm:$0xff]  ;;  %v5503_v60 = vld [vmem:[#allocation3 + $0x140] sm:$0xff] }
 0x41f   : > { %v5358_v28 = vpack.c.bf16 %v5342_v44, %v5342_v44  ;;  %v5519_v51 = vpack.c.bf16 %v5503_v60, %v5503_v60 }
 0x420   : > { %5029 = vst.msk [vmem:[%s8458_s18 + $0x18] sm:$0xff] %vm318_vm1, %v5013_v33  ;;  %v4963_v23 = vmul.f32 %v8438_v6, %v4928_v52  ;;  %v4765_v2 = vadd.f32 %v4732_v62, %v4601_v11  ;;  %v8520_v55 = vpack.c.b16 %v5549_v53, %v5548_v29  ;;  %v5357_v33 = vpack.c.bf16 %v5341_v10, %v5341_v10  ;;  %v5502_v52 = vld [vmem:[#allocation3 + $0x138] sm:$0xff] }
 0x421   : > { %v5518_v7 = vpack.c.bf16 %v5502_v52, %v5502_v52  ;;  %v5390_v32 = vunpack.c.l.b16 %v5358_v28  ;;  %v5505_v10 = vld [vmem:[#allocation3 + $0x158] sm:$0xff] }
 0x422   : > { %v4982_v3 = vadd.f32 %v8445_v54, %v4963_v23  ;;  %v4946_v23 = vld [vmem:[%s7322_s23 + $0x30] sm:$0xff]  ;;  %v5389_v0 = vunpack.c.l.b16 %v5357_v33 }
 0x424   : > { %v8512_v25 = vpop.f32.mrf.mxu3  ;;  %v4998_v5 = vadd.f32 %v4982_v3, %v4944_v24  ;;  %v8546_v29 = vpack.c.b16 %v5390_v32, %v5389_v0 }
 0x425   : > { %v4896_v41 = vpop.f32.mrf.mxu2  ;;  %v4571_v13 = vpop.f32.mrf.mxu0 }
 0x426   : > { %v5014_v42 = vmax.f32 %v4998_v5, 0.0  ;;  %v4929_v58 = vadd.f32 %v4896_v41, %v4765_v2  ;;  %v4735_v56 = vpop.f32.mrf.mxu1  ;;  %v4602_v20 = vadd.f32 %v4571_v13, %v8369_v31  ;;  %v5551_v5 = vunpack.c.l.b16 %v5519_v51 }
 0x428   : > { %5030 = vst.msk [vmem:[%s8458_s18 + $0x20] sm:$0xff] %vm318_vm1, %v5014_v42  ;;  %v4964_v16 = vmul.f32 %v8438_v6, %v4929_v58  ;;  %6866 = vmatmul.msk.bf16.gmra.mxu0 %vm318_vm1, %v8492_v45  ;;  %v4766_v18 = vadd.f32 %v4735_v56, %v4602_v20 }
 0x429   : > { %6889 = vmatmul.msk.bf16.gmra.mxu3 %vm318_vm1, %v8360_v8  ;;  %6874 = vmatmul.msk.bf16.gmra.mxu1 %vm318_vm1, %v8518_v43 }
 0x42a   : > { %v4983_v46 = vadd.f32 %v8445_v54, %v4964_v16  ;;  %6882 = vmatmul.msk.bf16.gmra.mxu2 %vm318_vm1, %v8520_v55  ;;  %v4947_v16 = vld [vmem:[%s7322_s23 + $0x38] sm:$0xff] }
 0x42c   : > { %v8532_v31 = vpop.f32.mrf.mxu3  ;;  %v4999_v34 = vadd.f32 %v4983_v46, %v4945_v57 }
 0x42d   : > { %v4899_v8 = vpop.f32.mrf.mxu2  ;;  %v4573_v50 = vpop.f32.mrf.mxu0 }
 0x42e   : > { %v5015_v49 = vmax.f32 %v4999_v34, 0.0  ;;  %v4930_v36 = vadd.f32 %v4899_v8, %v4766_v18  ;;  %v4737_v61 = vpop.f32.mrf.mxu1  ;;  %v4603_v62 = vadd.f32 %v4573_v50, %v8372_v9  ;;  %v5550_v9 = vunpack.c.l.b16 %v5518_v7  ;;  %v5343_v34 = vld [vmem:[#allocation3 + $0x13a] sm:$0xff]  ;;  %v5344_v18 = vld [vmem:[#allocation3 + $0x142] sm:$0xff]  ;;  %v5504_v50 = vld [vmem:[#allocation3 + $0x150] sm:$0xff] }
 0x42f   : > { %v5360_v52 = vpack.c.bf16 %v5344_v18, %v5344_v18  ;;  %v5520_v51 = vpack.c.bf16 %v5504_v50, %v5504_v50 }
 0x430   : > { %5031 = vst.msk [vmem:[%s8458_s18 + $0x28] sm:$0xff] %vm318_vm1, %v5015_v49  ;;  %v4965_v47 = vmul.f32 %v8438_v6, %v4930_v36  ;;  %v4767_v12 = vadd.f32 %v4737_v61, %v4603_v62  ;;  %v8548_v56 = vpack.c.b16 %v5551_v5, %v5550_v9  ;;  %v5359_v36 = vpack.c.bf16 %v5343_v34, %v5343_v34  ;;  %v4948_v62 = vld [vmem:[%s7322_s23 + $0x40] sm:$0xff]  ;;  %v5346_v34 = vld [vmem:[#allocation3 + $0x15a] sm:$0xff] }
 0x432   : > { %v4984_v11 = vadd.f32 %v8445_v54, %v4965_v47  ;;  %v5521_v47 = vpack.c.bf16 %v5505_v10, %v5505_v10 }
 0x434   : > { %v8540_v24 = vpop.f32.mrf.mxu3  ;;  %v5000_v3 = vadd.f32 %v4984_v11, %v4946_v23  ;;  %v5391_v23 = vunpack.c.l.b16 %v5359_v36 }
 0x435   : > { %v4901_v2 = vpop.f32.mrf.mxu2  ;;  %v4576_v41 = vpop.f32.mrf.mxu0 }
 0x436   : > { %v5016_v35 = vmax.f32 %v5000_v3, 0.0  ;;  %v4931_v53 = vadd.f32 %v4901_v2, %v4767_v12  ;;  %v4740_v42 = vpop.f32.mrf.mxu1  ;;  %v4604_v13 = vadd.f32 %v4576_v41, %v8383_v59  ;;  %v5392_v3 = vunpack.c.l.b16 %v5360_v52  ;;  %v4950_v52 = vld [vmem:[%s7322_s23 + $0x50] sm:$0xff] }
 0x437   : > { %v5553_v12 = vunpack.c.l.b16 %v5521_v47 }
 0x438   : > { %5032 = vst.msk [vmem:[%s8458_s18 + $0x30] sm:$0xff] %vm318_vm1, %v5016_v35  ;;  %v4966_v58 = vmul.f32 %v8438_v6, %v4931_v53  ;;  %6867 = vmatmul.msk.bf16.gmra.mxu0 %vm318_vm1, %v8520_v55  ;;  %v4768_v46 = vadd.f32 %v4740_v42, %v4604_v13  ;;  %v8574_v42 = vpack.c.b16 %v5392_v3, %v5391_v23  ;;  %v4949_v13 = vld [vmem:[%s7322_s23 + $0x48] sm:$0xff] }
 0x439   : > { %6890 = vmatmul.msk.bf16.gmra.mxu3 %vm318_vm1, %v8374_v4  ;;  %6875 = vmatmul.msk.bf16.gmra.mxu1 %vm318_vm1, %v8546_v29 }
 0x43a   : > { %v4985_v20 = vadd.f32 %v8445_v54, %v4966_v58  ;;  %6883 = vmatmul.msk.bf16.gmra.mxu2 %vm318_vm1, %v8548_v56 }
 0x43c   : > { %v8560_v59 = vpop.f32.mrf.mxu3  ;;  %v5001_v57 = vadd.f32 %v4985_v20, %v4947_v16 }
 0x43d   : > { %v4904_v4 = vpop.f32.mrf.mxu2  ;;  %v4578_v60 = vpop.f32.mrf.mxu0 }
 0x43e   : > { %v5017_v8 = vmax.f32 %v5001_v57, 0.0  ;;  %v4932_v44 = vadd.f32 %v4904_v4, %v4768_v46  ;;  %v4742_v49 = vpop.f32.mrf.mxu1  ;;  %v4605_v33 = vadd.f32 %v4578_v60, %v8386_v39  ;;  %v5552_v39 = vunpack.c.l.b16 %v5520_v51  ;;  %v5345_v46 = vld [vmem:[#allocation3 + $0x152] sm:$0xff] }
 0x43f   : > { %v5507_v4 = vld [vmem:[#allocation3 + $0x170] sm:$0xff]  ;;  %v5361_v60 = vpack.c.bf16 %v5345_v46, %v5345_v46 }
 0x440   : > { %5033 = vst.msk [vmem:[%s8458_s18 + $0x38] sm:$0xff] %vm318_vm1, %v5017_v8  ;;  %v4967_v61 = vmul.f32 %v8438_v6, %v4932_v44  ;;  %v4769_v0 = vadd.f32 %v4742_v49, %v4605_v33  ;;  %v8576_v58 = vpack.c.b16 %v5553_v12, %v5552_v39  ;;  %v5506_v49 = vld [vmem:[#allocation3 + $0x168] sm:$0xff]  ;;  %v5523_v33 = vpack.c.bf16 %v5507_v4, %v5507_v4 }
 0x441   : > { %v5347_v46 = vld [vmem:[#allocation3 + $0x16a] sm:$0xff] }
 0x442   : > { %v4986_v28 = vadd.f32 %v8445_v54, %v4967_v61  ;;  %v5362_v61 = vpack.c.bf16 %v5346_v34, %v5346_v34  ;;  %v5555_v3 = vunpack.c.l.b16 %v5523_v33  ;;  %v5509_v34 = vld [vmem:[#allocation3 + $0x188] sm:$0xff]  ;;  %v4952_v33 = vld [vmem:[%s7322_s23 + $0x60] sm:$0xff] }
 0x444   : > { %v8568_v11 = vpop.f32.mrf.mxu3  ;;  %v5002_v7 = vadd.f32 %v4986_v28, %v4948_v62  ;;  %v5522_v62 = vpack.c.bf16 %v5506_v49, %v5506_v49  ;;  %v5393_v28 = vunpack.c.l.b16 %v5361_v60  ;;  %v5508_v60 = vld [vmem:[#allocation3 + $0x180] sm:$0xff] }
 0x445   : > { %v4906_v32 = vpop.f32.mrf.mxu2  ;;  %v4581_v35 = vpop.f32.mrf.mxu0 }
 0x446   : > { %v5018_v5 = vmax.f32 %v5002_v7, 0.0  ;;  %v4933_v2 = vadd.f32 %v4906_v32, %v4769_v0  ;;  %v4745_v53 = vpop.f32.mrf.mxu1  ;;  %v4606_v9 = vadd.f32 %v4581_v35, %v8399_v40  ;;  %v5394_v0 = vunpack.c.l.b16 %v5362_v61 }
 0x447   : > { %v5525_v61 = vpack.c.bf16 %v5509_v34, %v5509_v34 }
 0x448   : > { %5034 = vst.msk [vmem:[%s8458_s18 + $0x40] sm:$0xff] %vm318_vm1, %v5018_v5  ;;  %v4968_v41 = vmul.f32 %v8438_v6, %v4933_v2  ;;  %6868 = vmatmul.msk.bf16.gmra.mxu0 %vm318_vm1, %v8548_v56  ;;  %v4770_v57 = vadd.f32 %v4745_v53, %v4606_v9 }
 0x449   : > { %6891 = vmatmul.msk.bf16.gmra.mxu3 %vm318_vm1, %v8388_v63  ;;  %6876 = vmatmul.msk.bf16.gmra.mxu1 %vm318_vm1, %v8574_v42 }
 0x44a   : > { %v4987_v16 = vadd.f32 %v8445_v54, %v4968_v41  ;;  %6884 = vmatmul.msk.bf16.gmra.mxu2 %vm318_vm1, %v8576_v58  ;;  %v8602_v41 = vpack.c.b16 %v5394_v0, %v5393_v28 }
 0x44c   : > { %v8588_v40 = vpop.f32.mrf.mxu3  ;;  %v5003_v20 = vadd.f32 %v4987_v16, %v4949_v13  ;;  %v4951_v13 = vld [vmem:[%s7322_s23 + $0x58] sm:$0xff] }
 0x44d   : > { %v4909_v63 = vpop.f32.mrf.mxu2  ;;  %v4583_v8 = vpop.f32.mrf.mxu0 }
 0x44e   : > { %v5019_v18 = vmax.f32 %v5003_v20, 0.0  ;;  %v4934_v10 = vadd.f32 %v4909_v63, %v4770_v57  ;;  %v4747_v44 = vpop.f32.mrf.mxu1  ;;  %v4607_v50 = vadd.f32 %v4583_v8, %v8402_v21  ;;  %v5554_v21 = vunpack.c.l.b16 %v5522_v62  ;;  %v5348_v63 = vld [vmem:[#allocation3 + $0x172] sm:$0xff] }
 0x450   : > { %5035 = vst.msk [vmem:[%s8458_s18 + $0x48] sm:$0xff] %vm318_vm1, %v5019_v18  ;;  %v4969_v36 = vmul.f32 %v8438_v6, %v4934_v10  ;;  %v4771_v7 = vadd.f32 %v4747_v44, %v4607_v50  ;;  %v8604_v9 = vpack.c.b16 %v5555_v3, %v5554_v21  ;;  %v5363_v44 = vpack.c.bf16 %v5347_v46, %v5347_v46 }
 0x451   : > { %v5364_v50 = vpack.c.bf16 %v5348_v63, %v5348_v63  ;;  %v5557_v3 = vunpack.c.l.b16 %v5525_v61  ;;  %v6140_v63 = vld [vmem:[#allocation3 + $0xf9] sm:$0xff] }
 0x452   : > { %v4988_v47 = vadd.f32 %v8445_v54, %v4969_v36  ;;  %v5395_v62 = vunpack.c.l.b16 %v5363_v44  ;;  %v4954_v61 = vld [vmem:[%s7322_s23 + $0x70] sm:$0xff] }
 0x453   : > { %v5396_v0 = vunpack.c.l.b16 %v5364_v50  ;;  %v6156_v50 = vpack.c.bf16 %v6140_v63, %v6140_v63  ;;  %v6142_v63 = vld [vmem:[#allocation3 + $0x111] sm:$0xff] }
 0x454   : > { %v8596_v51 = vpop.f32.mrf.mxu3  ;;  %v5004_v23 = vadd.f32 %v4988_v47, %v4950_v52  ;;  %v5524_v47 = vpack.c.bf16 %v5508_v60, %v5508_v60  ;;  %v6139_v60 = vld [vmem:[#allocation3 + $0xf1] sm:$0xff] }
 0x455   : > { %v4911_v12 = vpop.f32.mrf.mxu2  ;;  %v4586_v2 = vpop.f32.mrf.mxu0 }
 0x456   : > { %v5020_v32 = vmax.f32 %v5004_v23, 0.0  ;;  %v4935_v5 = vadd.f32 %v4911_v12, %v4771_v7  ;;  %v4750_v35 = vpop.f32.mrf.mxu1  ;;  %v4608_v53 = vadd.f32 %v4586_v2, %v8419_v30 }
 0x458   : > { %5036 = vst.msk [vmem:[%s8458_s18 + $0x50] sm:$0xff] %vm318_vm1, %v5020_v32  ;;  %v4970_v39 = vmul.f32 %v8438_v6, %v4935_v5  ;;  %6869 = vmatmul.msk.bf16.gmra.mxu0 %vm318_vm1, %v8576_v58  ;;  %v4772_v57 = vadd.f32 %v4750_v35, %v4608_v53  ;;  %v8630_v53 = vpack.c.b16 %v5396_v0, %v5395_v62 }
 0x459   : > { %6892 = vmatmul.msk.bf16.gmra.mxu3 %vm318_vm1, %v8404_v48  ;;  %6877 = vmatmul.msk.bf16.gmra.mxu1 %vm318_vm1, %v8602_v41 }
 0x45a   : > { %v4989_v16 = vadd.f32 %v8445_v54, %v4970_v39  ;;  %6885 = vmatmul.msk.bf16.gmra.mxu2 %vm318_vm1, %v8604_v9 }
 0x45c   : > { %v8616_v30 = vpop.f32.mrf.mxu3  ;;  %v5005_v20 = vadd.f32 %v4989_v16, %v4951_v13  ;;  %v4953_v16 = vld [vmem:[%s7322_s23 + $0x68] sm:$0xff] }
 0x45d   : > { %v4914_v48 = vpop.f32.mrf.mxu2  ;;  %v4588_v10 = vpop.f32.mrf.mxu0 }
 0x45e   : > { %v5021_v4 = vmax.f32 %v5005_v20, 0.0  ;;  %v4936_v18 = vadd.f32 %v4914_v48, %v4772_v57  ;;  %v4752_v8 = vpop.f32.mrf.mxu1  ;;  %v4609_v36 = vadd.f32 %v4588_v10, %v8422_v26  ;;  %v5556_v26 = vunpack.c.l.b16 %v5524_v47  ;;  %v5670_v48 = vld [vmem:[#allocation3 + $0x189] sm:$0xff]  ;;  %v5669_v10 = vld [vmem:[#allocation3 + $0x181] sm:$0xff] }
 0x45f   : > { %v5686_v44 = vpack.c.bf16 %v5670_v48, %v5670_v48  ;;  %v6155_v47 = vpack.c.bf16 %v6139_v60, %v6139_v60 }
 0x460   : > { %5037 = vst.msk [vmem:[%s8458_s18 + $0x58] sm:$0xff] %vm318_vm1, %v5021_v4  ;;  %v4971_v49 = vmul.f32 %v8438_v6, %v4936_v18  ;;  %v4773_v7 = vadd.f32 %v4752_v8, %v4609_v36  ;;  %v8632_v13 = vpack.c.b16 %v5557_v3, %v5556_v26  ;;  %v6188_v3 = vunpack.c.l.b16 %v6156_v50 }
 0x461   : > { %v5718_v62 = vunpack.c.l.b16 %v5686_v44  ;;  %v6141_v44 = vld [vmem:[#allocation3 + $0x109] sm:$0xff] }
 0x462   : > { %v4990_v52 = vadd.f32 %v8445_v54, %v4971_v49  ;;  %v6157_v60 = vpack.c.bf16 %v6141_v44, %v6141_v44 }
 0x464   : > { %v8624_v28 = vpop.f32.mrf.mxu3  ;;  %v5006_v23 = vadd.f32 %v4990_v52, %v4952_v33  ;;  %v5685_v33 = vpack.c.bf16 %v5669_v10, %v5669_v10 }
 0x465   : > { %v4916_v12 = vpop.f32.mrf.mxu2  ;;  %v4591_v2 = vpop.f32.mrf.mxu0 }
 0x466   : > { %v5022_v32 = vmax.f32 %v5006_v23, 0.0  ;;  %v4937_v5 = vadd.f32 %v4916_v12, %v4773_v7  ;;  %v4755_v21 = vpop.f32.mrf.mxu1  ;;  %v4610_v39 = vadd.f32 %v4591_v2, %v8440_v17  ;;  %v5717_v12 = vunpack.c.l.b16 %v5685_v33 }
 0x467   : > { %v6189_v33 = vunpack.c.l.b16 %v6157_v60 }
 0x468   : > { %5038 = vst.msk [vmem:[%s8458_s18 + $0x60] sm:$0xff] %vm318_vm1, %v5022_v32  ;;  %v4972_v35 = vmul.f32 %v8438_v6, %v4937_v5  ;;  %6870 = vmatmul.msk.bf16.gmra.mxu0 %vm318_vm1, %v8604_v9  ;;  %v4774_v46 = vadd.f32 %v4755_v21, %v4610_v39  ;;  %v8654_v21 = vpack.c.b16 %v5718_v62, %v5717_v12  ;;  %v6144_v12 = vld [vmem:[#allocation3 + $0x129] sm:$0xff] }
 0x469   : > { %6893 = vmatmul.msk.bf16.gmra.mxu3 %vm318_vm1, %v8424_v19  ;;  %6878 = vmatmul.msk.bf16.gmra.mxu1 %vm318_vm1, %v8630_v53 }
 0x46a   : > { %v4991_v20 = vadd.f32 %v8445_v54, %v4972_v35  ;;  %6886 = vmatmul.msk.bf16.gmra.mxu2 %vm318_vm1, %v8632_v13 }
 0x46c   : > { %v8644_v17 = vpop.f32.mrf.mxu3  ;;  %v5007_v57 = vadd.f32 %v4991_v20, %v4953_v16 }
 0x46d   : > { %v4919_v19 = vpop.f32.mrf.mxu2  ;;  %v4593_v18 = vpop.f32.mrf.mxu0 }
 0x46e   : > { %v5023_v34 = vmax.f32 %v5007_v57, 0.0  ;;  %v4938_v4 = vadd.f32 %v4919_v19, %v4774_v46  ;;  %v4757_v8 = vpop.f32.mrf.mxu1  ;;  %v4611_v36 = vadd.f32 %v4593_v18, %v8451_v27  ;;  %v6187_v27 = vunpack.c.l.b16 %v6155_v47  ;;  %v4955_v57 = vld [vmem:[%s7322_s23 + $0x78] sm:$0xff] }
 0x470   : > { %5039 = vst.msk [vmem:[%s8458_s18 + $0x68] sm:$0xff] %vm318_vm1, %v5023_v34  ;;  %v4973_v49 = vmul.f32 %v8438_v6, %v4938_v4  ;;  %v4775_v0 = vadd.f32 %v4757_v8, %v4611_v36  ;;  %v6203_v20 = vpack.c.b16 %v6188_v3, %v6187_v27  ;;  %v6160_v27 = vpack.c.bf16 %v6144_v12, %v6144_v12 }
 0x472   : > { %v4992_v52 = vadd.f32 %v8445_v54, %v4973_v49 }
 0x474   : > { %v8652_v23 = vpop.f32.mrf.mxu3  ;;  %v5008_v7 = vadd.f32 %v4992_v52, %v4954_v61 }
 0x475   : > { %v4921_v32 = vpop.f32.mrf.mxu2  ;;  %v5293_v26 = vpop.f32.mrf.mxu0 }
 0x476   : > { %v5024_v5 = vmax.f32 %v5008_v7, 0.0  ;;  %v4939_v2 = vadd.f32 %v4921_v32, %v4775_v0  ;;  %v5294_v35 = vadd.f32 %v5293_v26, %v8476_v22  ;;  %v5438_v39 = vpop.f32.mrf.mxu1  ;;  %v6143_v26 = vld [vmem:[#allocation3 + $0x121] sm:$0xff] }
 0x478   : > { %5040 = vst.msk [vmem:[%s8458_s18 + $0x70] sm:$0xff] %vm318_vm1, %v5024_v5  ;;  %v4974_v16 = vmul.f32 %v8438_v6, %v4939_v2  ;;  %v5478_v46 = vadd.f32 %v5438_v39, %v5294_v35  ;;  %6895 = vmatmul.msk.bf16.vlgmr.msra.gmra.mxu0 %vm318_vm1, %v8409_v15  ;;  %v6158_v15 = vpack.c.bf16 %v6142_v63, %v6142_v63 }
 0x479   : > { %6894 = vmatmul.msk.bf16.gmra.mxu3 %vm318_vm1, %v8654_v21  ;;  %6903 = vmatmul.msk.bf16.vlgmr.msra.gmra.mxu1 %vm318_vm1, %v8464_v38  ;;  %v6159_v39 = vpack.c.bf16 %v6143_v26, %v6143_v26 }
 0x47a   : > { %v4993_v48 = vadd.f32 %v8445_v54, %v4974_v16  ;;  %6911 = vmatmul.msk.bf16.vlgmr.msra.gmra.mxu2 %vm318_vm1, %v6203_v20  ;;  %v6190_v49 = vunpack.c.l.b16 %v6158_v15  ;;  %v6192_v16 = vunpack.c.l.b16 %v6160_v27  ;;  %v6147_v27 = vld [vmem:[#allocation3 + $0x151] sm:$0xff] }
 0x47c   : > { %v8669_v22 = vpop.f32.mrf.mxu3  ;;  %v5009_v6 = vadd.f32 %v4993_v48, %v4955_v57  ;;  %v6204_v62 = vpack.c.b16 %v6190_v49, %v6189_v33  ;;  %v6191_v48 = vunpack.c.l.b16 %v6159_v39 }
 0x47d   : > { %v5599_v19 = vpop.f32.mrf.mxu2  ;;  %v5295_v18 = vpop.f32.mrf.mxu0 }
 0x47e   : > { %v5025_v34 = vmax.f32 %v5009_v6, 0.0  ;;  %v5639_v4 = vadd.f32 %v5599_v19, %v5478_v46  ;;  %v5296_v10 = vadd.f32 %v5295_v18, %v8484_v14  ;;  %v5440_v8 = vpop.f32.mrf.mxu1  ;;  %v6205_v63 = vpack.c.b16 %v6192_v16, %v6191_v48 }
 0x480   : > { %5041 = vst.msk [vmem:[%s8458_s18 + $0x78] sm:$0xff] %vm318_vm1, %v5025_v34  ;;  %v5479_v54 = vadd.f32 %v5440_v8, %v5296_v10  ;;  %v6146_v10 = vld [vmem:[#allocation3 + $0x141] sm:$0xff] }
 0x481   : > { %v6162_v60 = vpack.c.bf16 %v6146_v10, %v6146_v10  ;;  %v6150_v10 = vld [vmem:[#allocation3 + $0x171] sm:$0xff] }
 0x484   : > { %v8674_v38 = vpop.f32.mrf.mxu3 }
 0x485   : > { %v5601_v36 = vpop.f32.mrf.mxu2  ;;  %v5298_v61 = vpop.f32.mrf.mxu0 }
 0x486   : > { %v5640_v50 = vadd.f32 %v5601_v36, %v5479_v54  ;;  %v5299_v52 = vadd.f32 %v5298_v61, %v8504_v1  ;;  %v5443_v47 = vpop.f32.mrf.mxu1  ;;  %v6145_v54 = vld [vmem:[#allocation3 + $0x139] sm:$0xff] }
 0x487   : > { %v6161_v36 = vpack.c.bf16 %v6145_v54, %v6145_v54  ;;  %v6166_v54 = vpack.c.bf16 %v6150_v10, %v6150_v10 }
 0x488   : > { %v5480_v14 = vadd.f32 %v5443_v47, %v5299_v52  ;;  %6896 = vmatmul.msk.bf16.gmra.mxu0 %vm318_vm1, %v8490_v37 }
 0x489   : > { %6919 = vmatmul.msk.bf16.vlgmr.msra.gmra.mxu3 %vm318_vm1, %v8490_v37  ;;  %6904 = vmatmul.msk.bf16.gmra.mxu1 %vm318_vm1, %v8492_v45  ;;  %v6193_v47 = vunpack.c.l.b16 %v6161_v36  ;;  %v6198_v36 = vunpack.c.l.b16 %v6166_v54 }
 0x48a   : > { %6912 = vmatmul.msk.bf16.gmra.mxu2 %vm318_vm1, %v6204_v62 }
 0x48c   : > { %v5760_v7 = vpop.f32.mrf.mxu3 }
 0x48d   : > { %v8684_v0 = vadd.f32 %v5760_v7, %v5639_v4  ;;  %v5604_v3 = vpop.f32.mrf.mxu2  ;;  %v5300_v32 = vpop.f32.mrf.mxu0 }
 0x48e   : > { %v5641_v1 = vadd.f32 %v5604_v3, %v5480_v14  ;;  %v5301_v5 = vadd.f32 %v5300_v32, %v8512_v25  ;;  %v5445_v2 = vpop.f32.mrf.mxu1  ;;  %v6148_v32 = vld [vmem:[#allocation3 + $0x159] sm:$0xff] }
 0x490   : > { %v5481_v35 = vadd.f32 %v5445_v2, %v5301_v5 }
 0x494   : > { %v5762_v37 = vpop.f32.mrf.mxu3 }
 0x495   : > { %v8687_v20 = vadd.f32 %v5762_v37, %v5640_v50  ;;  %v5606_v45 = vpop.f32.mrf.mxu2  ;;  %v5303_v46 = vpop.f32.mrf.mxu0  ;;  %v6194_v50 = vunpack.c.l.b16 %v6162_v60  ;;  %v6163_v37 = vpack.c.bf16 %v6147_v27, %v6147_v27 }
 0x496   : > { %v5642_v57 = vadd.f32 %v5606_v45, %v5481_v35  ;;  %v5304_v6 = vadd.f32 %v5303_v46, %v8532_v31  ;;  %v5448_v19 = vpop.f32.mrf.mxu1  ;;  %v6164_v35 = vpack.c.bf16 %v6148_v32, %v6148_v32 }
 0x497   : > { %v6206_v7 = vpack.c.b16 %v6194_v50, %v6193_v47  ;;  %v6195_v48 = vunpack.c.l.b16 %v6163_v37  ;;  %v5993_v37 = vld [vmem:[#allocation3 + $0x1a0] sm:$0xff] }
 0x498   : > { %v5482_v25 = vadd.f32 %v5448_v19, %v5304_v6  ;;  %6897 = vmatmul.msk.bf16.gmra.mxu0 %vm318_vm1, %v8518_v43  ;;  %v6196_v16 = vunpack.c.l.b16 %v6164_v35 }
 0x499   : > { %6920 = vmatmul.msk.bf16.gmra.mxu3 %vm318_vm1, %v8518_v43  ;;  %6905 = vmatmul.msk.bf16.gmra.mxu1 %vm318_vm1, %v8520_v55 }
 0x49a   : > { %6913 = vmatmul.msk.bf16.gmra.mxu2 %vm318_vm1, %v6205_v63  ;;  %v6207_v63 = vpack.c.b16 %v6196_v16, %v6195_v48  ;;  %v6154_v16 = vld [vmem:[#allocation3 + $0x1a1] sm:$0xff] }
 0x49c   : > { %v5765_v34 = vpop.f32.mrf.mxu3 }
 0x49d   : > { %v8697_v4 = vadd.f32 %v5765_v34, %v5641_v1  ;;  %v5609_v18 = vpop.f32.mrf.mxu2  ;;  %v5305_v8 = vpop.f32.mrf.mxu0 }
 0x49e   : > { %v5643_v31 = vadd.f32 %v5609_v18, %v5482_v25  ;;  %v5306_v44 = vadd.f32 %v5305_v8, %v8540_v24  ;;  %v5450_v15 = vpop.f32.mrf.mxu1 }
 0x4a0   : > { %v5483_v49 = vadd.f32 %v5450_v15, %v5306_v44  ;;  %v6149_v15 = vld [vmem:[#allocation3 + $0x169] sm:$0xff] }
 0x4a4   : > { %v5767_v43 = vpop.f32.mrf.mxu3 }
 0x4a5   : > { %v8700_v61 = vadd.f32 %v5767_v43, %v5642_v57  ;;  %v5611_v55 = vpop.f32.mrf.mxu2  ;;  %v5308_v52 = vpop.f32.mrf.mxu0 }
 0x4a6   : > { %v5644_v33 = vadd.f32 %v5611_v55, %v5483_v49  ;;  %v5309_v62 = vadd.f32 %v5308_v52, %v8560_v59  ;;  %v5453_v14 = vpop.f32.mrf.mxu1  ;;  %v6165_v49 = vpack.c.bf16 %v6149_v15, %v6149_v15 }
 0x4a8   : > { %v5484_v24 = vadd.f32 %v5453_v14, %v5309_v62  ;;  %6898 = vmatmul.msk.bf16.gmra.mxu0 %vm318_vm1, %v8546_v29 }
 0x4a9   : > { %6921 = vmatmul.msk.bf16.gmra.mxu3 %vm318_vm1, %v8546_v29  ;;  %6906 = vmatmul.msk.bf16.gmra.mxu1 %vm318_vm1, %v8548_v56 }
 0x4aa   : > { %6914 = vmatmul.msk.bf16.gmra.mxu2 %vm318_vm1, %v6206_v7 }
 0x4ac   : > { %v5770_v3 = vpop.f32.mrf.mxu3 }
 0x4ad   : > { %v8710_v12 = vadd.f32 %v5770_v3, %v5643_v31  ;;  %v5614_v1 = vpop.f32.mrf.mxu2  ;;  %v5310_v5 = vpop.f32.mrf.mxu0 }
 0x4ae   : > { %v5645_v59 = vadd.f32 %v5614_v1, %v5484_v24  ;;  %v5311_v2 = vadd.f32 %v5310_v5, %v8568_v11  ;;  %v5455_v26 = vpop.f32.mrf.mxu1 }
 0x4b0   : > { %v5485_v39 = vadd.f32 %v5455_v26, %v5311_v2 }
 0x4b4   : > { %v5772_v29 = vpop.f32.mrf.mxu3 }
 0x4b5   : > { %v8713_v45 = vadd.f32 %v5772_v29, %v5644_v33  ;;  %v5616_v56 = vpop.f32.mrf.mxu2  ;;  %v5313_v46 = vpop.f32.mrf.mxu0  ;;  %v6197_v33 = vunpack.c.l.b16 %v6165_v49  ;;  %v6153_v29 = vld [vmem:[#allocation3 + $0x199] sm:$0xff] }
 0x4b6   : > { %v5646_v57 = vadd.f32 %v5616_v56, %v5485_v39  ;;  %v5314_v6 = vadd.f32 %v5313_v46, %v8588_v40  ;;  %v5458_v19 = vpop.f32.mrf.mxu1 }
 0x4b7   : > { %v6208_v62 = vpack.c.b16 %v6198_v36, %v6197_v33 }
 0x4b8   : > { %v5486_v11 = vadd.f32 %v5458_v19, %v5314_v6  ;;  %6899 = vmatmul.msk.bf16.gmra.mxu0 %vm318_vm1, %v8574_v42 }
 0x4b9   : > { %6922 = vmatmul.msk.bf16.gmra.mxu3 %vm318_vm1, %v8574_v42  ;;  %6907 = vmatmul.msk.bf16.gmra.mxu1 %vm318_vm1, %v8576_v58 }
 0x4ba   : > { %6915 = vmatmul.msk.bf16.gmra.mxu2 %vm318_vm1, %v6207_v63 }
 0x4bc   : > { %v5775_v25 = vpop.f32.mrf.mxu3 }
 0x4bd   : > { %v8723_v34 = vadd.f32 %v5775_v25, %v5645_v59  ;;  %v5619_v18 = vpop.f32.mrf.mxu2  ;;  %v5315_v31 = vpop.f32.mrf.mxu0  ;;  %v6170_v25 = vpack.c.bf16 %v6154_v16, %v6154_v16 }
 0x4be   : > { %v5647_v40 = vadd.f32 %v5619_v18, %v5486_v11  ;;  %v5316_v8 = vadd.f32 %v5315_v31, %v8596_v51  ;;  %v5460_v44 = vpop.f32.mrf.mxu1  ;;  %v6169_v11 = vpack.c.bf16 %v6153_v29, %v6153_v29 }
 0x4bf   : > { %v6202_v15 = vunpack.c.l.b16 %v6170_v25 }
 0x4c0   : > { %v5487_v60 = vadd.f32 %v5460_v44, %v5316_v8  ;;  %v6201_v44 = vunpack.c.l.b16 %v6169_v11 }
 0x4c2   : > { %v6210_v33 = vpack.c.b16 %v6202_v15, %v6201_v44  ;;  %v8775_v15 = vld [vmem:[%s8884_s5] ss:$0 sm:$0xff] }
 0x4c4   : > { %v5777_v42 = vpop.f32.mrf.mxu3 }
 0x4c5   : > { %v8726_v43 = vadd.f32 %v5777_v42, %v5646_v57  ;;  %v5621_v58 = vpop.f32.mrf.mxu2  ;;  %v5318_v55 = vpop.f32.mrf.mxu0  ;;  %v6313_v57 = vld [vmem:[#allocation3 + $0x18a] sm:$0xff] }
 0x4c6   : > { %v5648_v50 = vadd.f32 %v5621_v58, %v5487_v60  ;;  %v5319_v52 = vadd.f32 %v5318_v55, %v8616_v30  ;;  %v5463_v47 = vpop.f32.mrf.mxu1  ;;  %v6329_v10 = vpack.c.bf16 %v6313_v57, %v6313_v57 }
 0x4c8   : > { %v5488_v51 = vadd.f32 %v5463_v47, %v5319_v52  ;;  %6900 = vmatmul.msk.bf16.gmra.mxu0 %vm318_vm1, %v8602_v41  ;;  %v6361_v60 = vunpack.c.l.b16 %v6329_v10 }
 0x4c9   : > { %6923 = vmatmul.msk.bf16.gmra.mxu3 %vm318_vm1, %v8602_v41  ;;  %6908 = vmatmul.msk.bf16.gmra.mxu1 %vm318_vm1, %v8604_v9 }
 0x4ca   : > { %6916 = vmatmul.msk.bf16.gmra.mxu2 %vm318_vm1, %v6208_v62 }
 0x4cc   : > { %v5780_v14 = vpop.f32.mrf.mxu3 }
 0x4cd   : > { %v8736_v7 = vadd.f32 %v5780_v14, %v5647_v40  ;;  %v5624_v24 = vpop.f32.mrf.mxu2  ;;  %v5320_v30 = vpop.f32.mrf.mxu0  ;;  %v6315_v14 = vld [vmem:[#allocation3 + $0x1a2] sm:$0xff] }
 0x4ce   : > { %v5649_v3 = vadd.f32 %v5624_v24, %v5488_v51  ;;  %v5321_v1 = vadd.f32 %v5320_v30, %v8624_v28  ;;  %v5465_v32 = vpop.f32.mrf.mxu1  ;;  %v5992_v28 = vld [vmem:[#allocation3 + $0x198] sm:$0xff] }
 0x4cf   : > { %v6008_v6 = vpack.c.bf16 %v5992_v28, %v5992_v28  ;;  %v6314_v51 = vld [vmem:[#allocation3 + $0x19a] sm:$0xff] }
 0x4d0   : > { %v5489_v59 = vadd.f32 %v5465_v32, %v5321_v1  ;;  %v6330_v1 = vpack.c.bf16 %v6314_v51, %v6314_v51  ;;  %v6331_v32 = vpack.c.bf16 %v6315_v14, %v6315_v14 }
 0x4d1   : > { %v6040_v31 = vunpack.c.l.b16 %v6008_v6 }
 0x4d4   : > { %v5782_v5 = vpop.f32.mrf.mxu3 }
 0x4d5   : > { %v8739_v2 = vadd.f32 %v5782_v5, %v5648_v50  ;;  %v5626_v26 = vpop.f32.mrf.mxu2  ;;  %v5323_v27 = vpop.f32.mrf.mxu0 }
 0x4d6   : > { %v5650_v41 = vadd.f32 %v5626_v26, %v5489_v59  ;;  %v5324_v9 = vadd.f32 %v5323_v27, %v8644_v17  ;;  %v5468_v35 = vpop.f32.mrf.mxu1  ;;  %v6312_v17 = vld [vmem:[#allocation3 + $0x182] sm:$0xff]  ;;  %v6362_v27 = vunpack.c.l.b16 %v6330_v1 }
 0x4d8   : > { %v5490_v39 = vadd.f32 %v5468_v35, %v5324_v9  ;;  %6901 = vmatmul.msk.bf16.gmra.mxu0 %vm318_vm1, %v8630_v53  ;;  %v6363_v9 = vunpack.c.l.b16 %v6331_v32 }
 0x4d9   : > { %6924 = vmatmul.msk.bf16.gmra.mxu3 %vm318_vm1, %v8630_v53  ;;  %6909 = vmatmul.msk.bf16.gmra.mxu1 %vm318_vm1, %v8632_v13  ;;  %v6009_v53 = vpack.c.bf16 %v5993_v37, %v5993_v37 }
 0x4da   : > { %6917 = vmatmul.msk.bf16.gmra.mxu2 %vm318_vm1, %v8654_v21  ;;  %v6328_v21 = vpack.c.bf16 %v6312_v17, %v6312_v17  ;;  %v6371_v28 = vpack.c.b16 %v6363_v9, %v6362_v27 }
 0x4db   : > { %v6041_v8 = vunpack.c.l.b16 %v6009_v53 }
 0x4dc   : > { %v5785_v56 = vpop.f32.mrf.mxu3  ;;  %v6360_v54 = vunpack.c.l.b16 %v6328_v21 }
 0x4dd   : > { %v8750_v46 = vadd.f32 %v5785_v56, %v5649_v3  ;;  %v5629_v48 = vpop.f32.mrf.mxu2  ;;  %v5325_v63 = vpop.f32.mrf.mxu0  ;;  %v6049_v55 = vpack.c.b16 %v6041_v8, %v6040_v31 }
 0x4de   : > { %v5651_v19 = vadd.f32 %v5629_v48, %v5490_v39  ;;  %v5326_v13 = vadd.f32 %v5325_v63, %v8652_v23  ;;  %v5470_v18 = vpop.f32.mrf.mxu1  ;;  %v6370_v52 = vpack.c.b16 %v6361_v60, %v6360_v54  ;;  %v6927_v60 = vld [vmem:[%s7322_s23 + $0x80] sm:$0xff] }
 0x4e0   : > { %v5491_v40 = vadd.f32 %v5470_v18, %v5326_v13 }
 0x4e4   : > { %v5787_v49 = vpop.f32.mrf.mxu3 }
 0x4e5   : > { %v8753_v42 = vadd.f32 %v5787_v49, %v5650_v41  ;;  %v5631_v36 = vpop.f32.mrf.mxu2  ;;  %v5328_v50 = vpop.f32.mrf.mxu0 }
 0x4e6   : > { %v5652_v58 = vadd.f32 %v5631_v36, %v5491_v40  ;;  %v5329_v23 = vadd.f32 %v5328_v50, %v8669_v22  ;;  %v5473_v47 = vpop.f32.mrf.mxu1  ;;  %v8782_v36 = vld [vmem:[%s8885_s6] ss:$0 sm:$0xff] }
 0x4e8   : > { %v5492_v62 = vadd.f32 %v5473_v47, %v5329_v23  ;;  %6902 = vmatmul.msk.bf16.gmra.mxu0 %vm318_vm1, %v6370_v52 }
 0x4e9   : > { %6925 = vmatmul.msk.bf16.gmra.mxu3 %vm318_vm1, %v6370_v52  ;;  %6910 = vmatmul.msk.bf16.gmra.mxu1 %vm318_vm1, %v6049_v55 }
 0x4ea   : > { %6918 = vmatmul.msk.bf16.gmra.mxu2 %vm318_vm1, %v6210_v33 }
 0x4ec   : > { %v5790_v24 = vpop.f32.mrf.mxu3 }
 0x4ed   : > { %v8760_v3 = vadd.f32 %v5790_v24, %v5651_v19  ;;  %v5634_v30 = vpop.f32.mrf.mxu2  ;;  %v5330_v22 = vpop.f32.mrf.mxu0  ;;  %v6928_v24 = vld [vmem:[%s7322_s23 + $0x88] sm:$0xff] }
 0x4ee   : > { %v5653_v59 = vadd.f32 %v5634_v30, %v5492_v62  ;;  %v5331_v5 = vadd.f32 %v5330_v22, %v8674_v38  ;;  %v5475_v26 = vpop.f32.mrf.mxu1 }
 0x4f0   : > { %v5493_v41 = vadd.f32 %v5475_v26, %v5331_v5 }
 0x4f4   : > { %v5792_v35 = vpop.f32.mrf.mxu3 }
 0x4f5   : > { %v8763_v39 = vadd.f32 %v5792_v35, %v5652_v58  ;;  %v5636_v37 = vpop.f32.mrf.mxu2  ;;  %v5921_v16 = vpop.f32.mrf.mxu0 }
 0x4f6   : > { %v5654_v29 = vadd.f32 %v5636_v37, %v5493_v41  ;;  %v6083_v56 = vpop.f32.mrf.mxu1  ;;  %v5961_v63 = vadd.f32 %v5921_v16, %v8684_v0 }
 0x4f8   : > { %v6123_v18 = vadd.f32 %v6083_v56, %v5961_v63 }
 0x4f9   : > { %6926 = vmatmul.msk.bf16.gmra.mxu3 %vm318_vm1, %v6371_v28  ;;  %v6929_v28 = vld [vmem:[%s7322_s23 + $0x90] sm:$0xff] }
 0x4fc   : > { %v5795_v17 = vpop.f32.mrf.mxu3 }
 0x4fd   : > { %v8766_v57 = vadd.f32 %v5795_v17, %v5653_v59  ;;  %v6244_v48 = vpop.f32.mrf.mxu2  ;;  %v5923_v6 = vpop.f32.mrf.mxu0 }
 0x4fe   : > { %v6085_v38 = vpop.f32.mrf.mxu1  ;;  %v6284_v21 = vadd.f32 %v6244_v48, %v6123_v18  ;;  %v5962_v40 = vadd.f32 %v5923_v6, %v8687_v20 }
 0x500   : > { %v6124_v49 = vadd.f32 %v6085_v38, %v5962_v40 }
 0x504   : > { %v5797_v19 = vpop.f32.mrf.mxu3 }
 0x505   : > { %v8769_v53 = vadd.f32 %v5797_v19, %v5654_v29  ;;  %v6246_v11 = vpop.f32.mrf.mxu2  ;;  %v5926_v25 = vpop.f32.mrf.mxu0 }
 0x506   : > { %v6088_v13 = vpop.f32.mrf.mxu1  ;;  %v6285_v50 = vadd.f32 %v6246_v11, %v6124_v49  ;;  %v5963_v52 = vadd.f32 %v5926_v25, %v8697_v4  ;;  %v6930_v25 = vld [vmem:[%s7322_s23 + $0x98] sm:$0xff]  ;;  %v6931_v49 = vld [vmem:[%s7322_s23 + $0xa0] sm:$0xff] }
 0x508   : > { %v6125_v30 = vadd.f32 %v6088_v13, %v5963_v52 }
 0x50c   : > { %v6405_v10 = vpop.f32.mrf.mxu3 }
 0x50d   : > { %v6445_v31 = vadd.f32 %v6405_v10, %v6284_v21  ;;  %v6249_v8 = vpop.f32.mrf.mxu2  ;;  %v5928_v44 = vpop.f32.mrf.mxu0 }
 0x50e   : > { %v6090_v54 = vpop.f32.mrf.mxu1  ;;  %v6286_v59 = vadd.f32 %v6249_v8, %v6125_v30  ;;  %v5964_v4 = vadd.f32 %v5928_v44, %v8700_v61 }
 0x50f   : > { %v6478_v0 = vmul.f32 %v8775_v15, %v6445_v31 }
 0x510   : > { %v6126_v37 = vadd.f32 %v6090_v54, %v5964_v4 }
 0x511   : > { %v6494_v20 = vadd.f32 %v8782_v36, %v6478_v0 }
 0x513   : > { %v6510_v58 = vadd.f32 %v6927_v60, %v6494_v20 }
 0x514   : > { %v6407_v55 = vpop.f32.mrf.mxu3 }
 0x515   : > { %v6526_v33 = vmax.f32 %v6510_v58, 0.0  ;;  %v6446_v23 = vadd.f32 %v6407_v55, %v6285_v50  ;;  %v6251_v47 = vpop.f32.mrf.mxu2  ;;  %v5931_v62 = vpop.f32.mrf.mxu0 }
 0x516   : > { %v6093_v14 = vpop.f32.mrf.mxu1  ;;  %v6287_v56 = vadd.f32 %v6251_v47, %v6126_v37  ;;  %v5965_v61 = vadd.f32 %v5931_v62, %v8710_v12 }
 0x517   : > { %6943 = vst.msk [vmem:[%s8458_s18 + $0x80] sm:$0xff] %vm318_vm1, %v6526_v33  ;;  %v6479_v51 = vmul.f32 %v8775_v15, %v6446_v23 }
 0x518   : > { %v6127_v13 = vadd.f32 %v6093_v14, %v5965_v61  ;;  %v6932_v14 = vld [vmem:[%s7322_s23 + $0xa8] sm:$0xff] }
 0x519   : > { %v6495_v1 = vadd.f32 %v8782_v36, %v6479_v51 }
 0x51b   : > { %v6511_v32 = vadd.f32 %v6928_v24, %v6495_v1 }
 0x51c   : > { %v6410_v22 = vpop.f32.mrf.mxu3 }
 0x51d   : > { %v6527_v5 = vmax.f32 %v6511_v32, 0.0  ;;  %v6447_v26 = vadd.f32 %v6410_v22, %v6286_v59  ;;  %v6254_v41 = vpop.f32.mrf.mxu2  ;;  %v5933_v27 = vpop.f32.mrf.mxu0 }
 0x51e   : > { %v6095_v35 = vpop.f32.mrf.mxu1  ;;  %v6288_v10 = vadd.f32 %v6254_v41, %v6127_v13  ;;  %v5966_v12 = vadd.f32 %v5933_v27, %v8713_v45 }
 0x51f   : > { %6944 = vst.msk [vmem:[%s8458_s18 + $0x88] sm:$0xff] %vm318_vm1, %v6527_v5  ;;  %v6480_v9 = vmul.f32 %v8775_v15, %v6447_v26 }
 0x520   : > { %v6128_v20 = vadd.f32 %v6095_v35, %v5966_v12 }
 0x521   : > { %v6496_v29 = vadd.f32 %v8782_v36, %v6480_v9  ;;  %v6933_v9 = vld [vmem:[%s7322_s23 + $0xb0] sm:$0xff] }
 0x523   : > { %v6512_v16 = vadd.f32 %v6929_v28, %v6496_v29 }
 0x524   : > { %v6412_v17 = vpop.f32.mrf.mxu3 }
 0x525   : > { %v6528_v48 = vmax.f32 %v6512_v16, 0.0  ;;  %v6448_v6 = vadd.f32 %v6412_v17, %v6287_v56  ;;  %v6256_v38 = vpop.f32.mrf.mxu2  ;;  %v5936_v19 = vpop.f32.mrf.mxu0 }
 0x526   : > { %v6098_v11 = vpop.f32.mrf.mxu1  ;;  %v6289_v55 = vadd.f32 %v6256_v38, %v6128_v20  ;;  %v5967_v45 = vadd.f32 %v5936_v19, %v8723_v34  ;;  %v6934_v38 = vld [vmem:[%s7322_s23 + $0xb8] sm:$0xff] }
 0x527   : > { %6945 = vst.msk [vmem:[%s8458_s18 + $0x90] sm:$0xff] %vm318_vm1, %v6528_v48  ;;  %v6481_v63 = vmul.f32 %v8775_v15, %v6448_v6 }
 0x528   : > { %v6129_v24 = vadd.f32 %v6098_v11, %v5967_v45 }
 0x529   : > { %v6497_v18 = vadd.f32 %v8782_v36, %v6481_v63 }
 0x52b   : > { %v6513_v21 = vadd.f32 %v6930_v25, %v6497_v18 }
 0x52c   : > { %v6415_v40 = vpop.f32.mrf.mxu3 }
 0x52d   : > { %v6529_v31 = vmax.f32 %v6513_v21, 0.0  ;;  %v6449_v8 = vadd.f32 %v6415_v40, %v6288_v10  ;;  %v6259_v44 = vpop.f32.mrf.mxu2  ;;  %v5938_v0 = vpop.f32.mrf.mxu0 }
 0x52e   : > { %v6100_v60 = vpop.f32.mrf.mxu1  ;;  %v6290_v59 = vadd.f32 %v6259_v44, %v6129_v24  ;;  %v5968_v34 = vadd.f32 %v5938_v0, %v8726_v43 }
 0x52f   : > { %6946 = vst.msk [vmem:[%s8458_s18 + $0x98] sm:$0xff] %vm318_vm1, %v6529_v31  ;;  %v6482_v54 = vmul.f32 %v8775_v15, %v6449_v8  ;;  %v6935_v8 = vld [vmem:[%s7322_s23 + $0xc0] sm:$0xff] }
 0x530   : > { %v6130_v35 = vadd.f32 %v6100_v60, %v5968_v34 }
 0x531   : > { %v6498_v58 = vadd.f32 %v8782_v36, %v6482_v54 }
 0x533   : > { %v6514_v50 = vadd.f32 %v6931_v49, %v6498_v58 }
 0x534   : > { %v6417_v33 = vpop.f32.mrf.mxu3 }
 0x535   : > { %v6530_v52 = vmax.f32 %v6514_v50, 0.0  ;;  %v6450_v23 = vadd.f32 %v6417_v33, %v6289_v55  ;;  %v6261_v47 = vpop.f32.mrf.mxu2  ;;  %v5941_v62 = vpop.f32.mrf.mxu0 }
 0x536   : > { %v6103_v1 = vpop.f32.mrf.mxu1  ;;  %v6291_v29 = vadd.f32 %v6261_v47, %v6130_v35  ;;  %v5969_v43 = vadd.f32 %v5941_v62, %v8736_v7 }
 0x537   : > { %6947 = vst.msk [vmem:[%s8458_s18 + $0xa0] sm:$0xff] %vm318_vm1, %v6530_v52  ;;  %v6483_v51 = vmul.f32 %v8775_v15, %v6450_v23  ;;  %v6936_v52 = vld [vmem:[%s7322_s23 + $0xc8] sm:$0xff] }
 0x538   : > { %v6131_v63 = vadd.f32 %v6103_v1, %v5969_v43 }
 0x539   : > { %v6499_v30 = vadd.f32 %v8782_v36, %v6483_v51 }
 0x53b   : > { %v6515_v32 = vadd.f32 %v6932_v14, %v6499_v30 }
 0x53c   : > { %v6420_v22 = vpop.f32.mrf.mxu3 }
 0x53d   : > { %v6531_v5 = vmax.f32 %v6515_v32, 0.0  ;;  %v6451_v4 = vadd.f32 %v6420_v22, %v6290_v59  ;;  %v6264_v26 = vpop.f32.mrf.mxu2  ;;  %v5943_v41 = vpop.f32.mrf.mxu0  ;;  %v6937_v59 = vld [vmem:[%s7322_s23 + $0xd0] sm:$0xff] }
 0x53e   : > { %v6105_v16 = vpop.f32.mrf.mxu1  ;;  %v6292_v13 = vadd.f32 %v6264_v26, %v6131_v63  ;;  %v5970_v10 = vadd.f32 %v5943_v41, %v8739_v2 }
 0x53f   : > { %6948 = vst.msk [vmem:[%s8458_s18 + $0xa8] sm:$0xff] %vm318_vm1, %v6531_v5  ;;  %v6484_v27 = vmul.f32 %v8775_v15, %v6451_v4 }
 0x540   : > { %v6132_v44 = vadd.f32 %v6105_v16, %v5970_v10 }
 0x541   : > { %v6500_v28 = vadd.f32 %v8782_v36, %v6484_v27 }
 0x543   : > { %v6516_v37 = vadd.f32 %v6933_v9, %v6500_v28 }
 0x544   : > { %v6422_v56 = vpop.f32.mrf.mxu3 }
 0x545   : > { %v6532_v17 = vmax.f32 %v6516_v37, 0.0  ;;  %v6452_v48 = vadd.f32 %v6422_v56, %v6291_v29  ;;  %v6266_v61 = vpop.f32.mrf.mxu2  ;;  %v5946_v19 = vpop.f32.mrf.mxu0  ;;  %v6938_v29 = vld [vmem:[%s7322_s23 + $0xd8] sm:$0xff] }
 0x546   : > { %v6108_v40 = vpop.f32.mrf.mxu1  ;;  %v6293_v49 = vadd.f32 %v6266_v61, %v6132_v44  ;;  %v5971_v2 = vadd.f32 %v5946_v19, %v8750_v46 }
 0x547   : > { %6949 = vst.msk [vmem:[%s8458_s18 + $0xb0] sm:$0xff] %vm318_vm1, %v6532_v17  ;;  %v6485_v6 = vmul.f32 %v8775_v15, %v6452_v48 }
 0x548   : > { %v6133_v23 = vadd.f32 %v6108_v40, %v5971_v2 }
 0x549   : > { %v6501_v11 = vadd.f32 %v8782_v36, %v6485_v6 }
 0x54b   : > { %v6517_v25 = vadd.f32 %v6934_v38, %v6501_v11  ;;  %v6939_v11 = vld [vmem:[%s7322_s23 + $0xe0] sm:$0xff] }
 0x54c   : > { %v6425_v18 = vpop.f32.mrf.mxu3 }
 0x54d   : > { %v6533_v21 = vmax.f32 %v6517_v25, 0.0  ;;  %v6453_v7 = vadd.f32 %v6425_v18, %v6292_v13  ;;  %v6269_v31 = vpop.f32.mrf.mxu2  ;;  %v5948_v54 = vpop.f32.mrf.mxu0 }
 0x54e   : > { %v6110_v33 = vpop.f32.mrf.mxu1  ;;  %v6294_v51 = vadd.f32 %v6269_v31, %v6133_v23  ;;  %v5972_v46 = vadd.f32 %v5948_v54, %v8753_v42 }
 0x54f   : > { %6950 = vst.msk [vmem:[%s8458_s18 + $0xb8] sm:$0xff] %vm318_vm1, %v6533_v21  ;;  %v6486_v12 = vmul.f32 %v8775_v15, %v6453_v7 }
 0x550   : > { %v6134_v22 = vadd.f32 %v6110_v33, %v5972_v46 }
 0x551   : > { %v6502_v0 = vadd.f32 %v8782_v36, %v6486_v12 }
 0x553   : > { %v6518_v60 = vadd.f32 %v6935_v8, %v6502_v0  ;;  %v6940_v0 = vld [vmem:[%s7322_s23 + $0xe8] sm:$0xff] }
 0x554   : > { %v6427_v20 = vpop.f32.mrf.mxu3 }
 0x555   : > { %v6534_v58 = vmax.f32 %v6518_v60, 0.0  ;;  %v6454_v50 = vadd.f32 %v6427_v20, %v6293_v49  ;;  %v6271_v45 = vpop.f32.mrf.mxu2  ;;  %v5951_v24 = vpop.f32.mrf.mxu0 }
 0x556   : > { %v6113_v34 = vpop.f32.mrf.mxu1  ;;  %v6295_v41 = vadd.f32 %v6271_v45, %v6134_v22  ;;  %v5973_v35 = vadd.f32 %v5951_v24, %v8760_v3  ;;  %v6941_v45 = vld [vmem:[%s7322_s23 + $0xf0] sm:$0xff] }
 0x557   : > { %6951 = vst.msk [vmem:[%s8458_s18 + $0xc0] sm:$0xff] %vm318_vm1, %v6534_v58  ;;  %v6487_v55 = vmul.f32 %v8775_v15, %v6454_v50 }
 0x558   : > { %v6135_v16 = vadd.f32 %v6113_v34, %v5973_v35 }
 0x559   : > { %v6503_v47 = vadd.f32 %v8782_v36, %v6487_v55 }
 0x55b   : > { %v6519_v62 = vadd.f32 %v6936_v52, %v6503_v47 }
 0x55c   : > { %v6430_v14 = vpop.f32.mrf.mxu3 }
 0x55d   : > { %v6535_v30 = vmax.f32 %v6519_v62, 0.0  ;;  %v6455_v1 = vadd.f32 %v6430_v14, %v6294_v51  ;;  %v6274_v4 = vpop.f32.mrf.mxu2  ;;  %v5953_v28 = vpop.f32.mrf.mxu0 }
 0x55e   : > { %v6296_v43 = vadd.f32 %v6274_v4, %v6135_v16  ;;  %v6115_v48 = vpop.f32.mrf.mxu1  ;;  %v5974_v3 = vadd.f32 %v5953_v28, %v8763_v39 }
 0x55f   : > { %6952 = vst.msk [vmem:[%s8458_s18 + $0xc8] sm:$0xff] %vm318_vm1, %v6535_v30  ;;  %v6488_v32 = vmul.f32 %v8775_v15, %v6455_v1  ;;  %v6942_v1 = vld [vmem:[%s7322_s23 + $0xf8] sm:$0xff] }
 0x560   : > { %v6136_v13 = vadd.f32 %v6115_v48, %v5974_v3 }
 0x561   : > { %v6504_v5 = vadd.f32 %v8782_v36, %v6488_v32 }
 0x563   : > { %v6520_v26 = vadd.f32 %v6937_v59, %v6504_v5 }
 0x564   : > { %v6432_v27 = vpop.f32.mrf.mxu3 }
 0x565   : > { %v6536_v9 = vmax.f32 %v6520_v26, 0.0  ;;  %v6456_v42 = vadd.f32 %v6432_v27, %v6295_v41  ;;  %v6276_v6 = vpop.f32.mrf.mxu2  ;;  %v5956_v25 = vpop.f32.mrf.mxu0 }
 0x566   : > { %v6297_v10 = vadd.f32 %v6276_v6, %v6136_v13  ;;  %v5975_v31 = vadd.f32 %v5956_v25, %v8766_v57  ;;  %v6118_v12 = vpop.f32.mrf.mxu1 }
 0x567   : > { %6953 = vst.msk [vmem:[%s8458_s18 + $0xd0] sm:$0xff] %vm318_vm1, %v6536_v9  ;;  %v6489_v37 = vmul.f32 %v8775_v15, %v6456_v42 }
 0x568   : > { %v6137_v54 = vadd.f32 %v6118_v12, %v5975_v31 }
 0x569   : > { %v6505_v56 = vadd.f32 %v8782_v36, %v6489_v37 }
 0x56b   : > { %v6521_v17 = vadd.f32 %v6938_v29, %v6505_v56 }
 0x56c   : > { %v6435_v61 = vpop.f32.mrf.mxu3 }
 0x56d   : > { %v6537_v38 = vmax.f32 %v6521_v17, 0.0  ;;  %v6457_v19 = vadd.f32 %v6435_v61, %v6296_v43  ;;  %v6279_v8 = vpop.f32.mrf.mxu2  ;;  %v5958_v49 = vpop.f32.mrf.mxu0 }
 0x56e   : > { %v6298_v58 = vadd.f32 %v6279_v8, %v6137_v54  ;;  %v5976_v57 = vadd.f32 %v5958_v49, %v8769_v53  ;;  %v6120_v52 = vpop.f32.mrf.mxu1 }
 0x56f   : > { %6954 = vst.msk [vmem:[%s8458_s18 + $0xd8] sm:$0xff] %vm318_vm1, %v6537_v38  ;;  %v6490_v63 = vmul.f32 %v8775_v15, %v6457_v19 }
 0x570   : > { %v6138_v47 = vadd.f32 %v6120_v52, %v5976_v57 }
 0x571   : > { %v6506_v18 = vadd.f32 %v8782_v36, %v6490_v63 }
 0x573   : > { %v6522_v21 = vadd.f32 %v6939_v11, %v6506_v18 }
 0x574   : > { %v6437_v7 = vpop.f32.mrf.mxu3 }
 0x575   : > { %v6538_v40 = vmax.f32 %v6522_v21, 0.0  ;;  %v6458_v39 = vadd.f32 %v6437_v7, %v6297_v10  ;;  %v6281_v23 = vpop.f32.mrf.mxu2 }
 0x576   : > { %v6299_v14 = vadd.f32 %v6281_v23, %v6138_v47 }
 0x577   : > { %6955 = vst.msk [vmem:[%s8458_s18 + $0xe0] sm:$0xff] %vm318_vm1, %v6538_v40  ;;  %v6491_v44 = vmul.f32 %v8775_v15, %v6458_v39 }
 0x579   : > { %v6507_v60 = vadd.f32 %v8782_v36, %v6491_v44 }
 0x57b   : > { %v6523_v20 = vadd.f32 %v6940_v0, %v6507_v60 }
 0x57c   : > { %v6440_v2 = vpop.f32.mrf.mxu3 }
 0x57d   : > { %v6539_v50 = vmax.f32 %v6523_v20, 0.0  ;;  %v6459_v55 = vadd.f32 %v6440_v2, %v6298_v58 }
 0x57f   : > { %6956 = vst.msk [vmem:[%s8458_s18 + $0xe8] sm:$0xff] %vm318_vm1, %v6539_v50  ;;  %v6492_v33 = vmul.f32 %v8775_v15, %v6459_v55 }
 0x581   : > { %v6508_v62 = vadd.f32 %v8782_v36, %v6492_v33 }
 0x583   : > { %v6524_v51 = vadd.f32 %v6941_v45, %v6508_v62 }
 0x584   : > { %v6442_v24 = vpop.f32.mrf.mxu3 }
 0x585   : > { %v6540_v30 = vmax.f32 %v6524_v51, 0.0  ;;  %v6460_v46 = vadd.f32 %v6442_v24, %v6299_v14 }
 0x587   : > { %6957 = vst.msk [vmem:[%s8458_s18 + $0xf0] sm:$0xff] %vm318_vm1, %v6540_v30  ;;  %v6493_v53 = vmul.f32 %v8775_v15, %v6460_v46 }
 0x589   : > { %v6509_v32 = vadd.f32 %v8782_v36, %v6493_v53 }
 0x58b   : > { %v6525_v59 = vadd.f32 %v6942_v1, %v6509_v32 }
 0x58d   : > { %v6541_v22 = vmax.f32 %v6525_v59, 0.0 }
 0x58f   : > { %6958 = vst.msk [vmem:[%s8458_s18 + $0xf8] sm:$0xff] %vm318_vm1, %v6541_v22 }
 0x590 PF: > { %s17_s24 = sadd.s32 1, %s6986_s24  }
 0x591   : > { %p14_p4 = scmp.ge.s32.totalorder %s17_s24, 4  }
 0x593   :  { %16 = sbr.rel (!%p14_p4) target bundleno = 1 (0x1), region = 106 }

</bundles_post_ra>
